<compile_context>
chip_gen: v5e
topology: v5e:2x2
jax: 0.10.0
libtpu: 0.0.40
codegen_flags: <defaults>
</compile_context>

<pallas_src>
import functools

import jax
import jax.numpy as jnp
from jax.experimental import pallas as pl
from jax.experimental.pallas import tpu as pltpu

CIN, COUT = 16, 32
KH, KW = 3, 16
SH, SW = 3, 10
OPH, OPW = 1, 1                   # output_padding
LANES = KH * SW * COUT            # 960 lanes: (kh, kw_off, cout), lane-dense slab

# Folded-matmul validity for this exact module config.
assert SH == KH, "row groups are independent only when stride_h == kernel_h"
assert SW < KW <= 2 * SW, "single one-block shift covers the width overlap only then"
assert KW + OPW <= 2 * SW, "extra width block must cover kernel tail + output_padding"
assert OPH <= KH


def convt_sigmoid_kernel(x_ref, w_ref, b_ref, o_ref):
    # x_ref: (rows_tile, 2*Cin)  bf16   rows = (ih, w_block); lanes = [x, x shifted]
    # w_ref: (2*Cin, LANES)      bf16   packed transposed-conv weights (resident)
    # b_ref: (1, LANES)          f32    bias tiled over (kh, kw_off)
    # o_ref: (rows_tile, LANES)  f32
    r = jnp.dot(x_ref[...], w_ref[...], preferred_element_type=jnp.float32)
    o_ref[...] = jax.nn.sigmoid(r + b_ref[...])


def pack_params(weight, bias, dtype=jnp.bfloat16):
    """Pack PyTorch-layout ConvTranspose2d params once (hoisted out of the call path).

    weight: (Cin, Cout, KH, KW), bias: (Cout,).
    Lane index = kh*(SW*COUT) + kw_off*COUT + co.
      rows [0, Cin)      pair with the aligned input:  kw = kw_off           (kw_off < SW)
      rows [Cin, 2*Cin)  pair with the shifted input:  kw = SW + kw_off      (kw_off < KW-SW, rest 0)
    """
    cin, cout, kh, kw = weight.shape
    assert (cin, cout, kh, kw) == (CIN, COUT, KH, KW)
    w_a = jnp.transpose(weight[:, :, :, :SW], (0, 2, 3, 1)).reshape(cin, LANES)
    w_b = jnp.transpose(weight[:, :, :, SW:], (0, 2, 3, 1))            # (cin, KH, KW-SW, COUT)
    w_b = jnp.pad(w_b, ((0, 0), (0, 0), (0, 2 * SW - KW), (0, 0))).reshape(cin, LANES)
    wcat = jnp.concatenate([w_a, w_b], axis=0).astype(dtype)           # (2*cin, 960)
    btile = jnp.tile(bias, KH * SW).reshape(1, LANES).astype(jnp.float32)
    return wcat, btile


def conv_transpose_sigmoid(x_nchw, wcat, btile, *, rows_tile=1024):
    """ConvTranspose2d(16,32,(3,16),stride=(3,10),output_padding=(1,1)) + sigmoid.

    x_nchw: (N, 16, H, W) f32.  wcat/btile from pack_params.  Returns NCHW f32.
    rows_tile: M-tile size (multiple of 8).  1024 fits every generation's default
    scoped VMEM; 2048 is a good choice on v6e / v7x.
    """
    n, cin, h, w = x_nchw.shape
    assert cin == CIN
    h_out = (h - 1) * SH + KH + OPH          # = 3*h + 1
    w_out = (w - 1) * SW + KW + OPW          # = 10*w + 7
    hg, wblk = h + 1, w + 1                  # +1 padded row group / +1 width block
    m = hg * wblk

    rows_tile = min(rows_tile, ((m + 7) // 8) * 8)   # multiple of 8, not larger than needed
    m_pad = ((m + rows_tile - 1) // rows_tile) * rows_tile
    num_tiles = m_pad // rows_tile

    # Build the folded LHS:  xcat[:, ih*wblk + blk] = [x[ih, blk], x[ih, blk-1]]
    x = jnp.transpose(x_nchw, (0, 2, 3, 1))                             # (n, h, w, cin)
    x_a = jnp.pad(x, ((0, 0), (0, 1), (0, 1), (0, 0)))                  # aligned
    x_s = jnp.pad(x, ((0, 0), (0, 1), (1, 0), (0, 0)))                  # shifted one block
    xcat = jnp.concatenate([x_a, x_s], axis=-1).reshape(n, m, 2 * cin)
    xcat = jnp.pad(xcat, ((0, 0), (0, m_pad - m), (0, 0))).astype(wcat.dtype)

    cost = pl.CostEstimate(
        flops=2 * n * m_pad * (2 * CIN) * LANES,
        transcendentals=n * m_pad * LANES,
        bytes_accessed=(n * m_pad * 2 * CIN * xcat.dtype.itemsize
                        + 2 * CIN * LANES * wcat.dtype.itemsize
                        + n * m_pad * LANES * 4),
    )

    out_raw = pl.pallas_call(
        convt_sigmoid_kernel,
        out_shape=jax.ShapeDtypeStruct((n, m_pad, LANES), jnp.float32),
        grid=(n, num_tiles),
        in_specs=[
            pl.BlockSpec((None, rows_tile, 2 * CIN), lambda b, r: (b, r, 0)),
            pl.BlockSpec((2 * CIN, LANES), lambda b, r: (0, 0)),
            pl.BlockSpec((1, LANES), lambda b, r: (0, 0)),
        ],
        out_specs=pl.BlockSpec((None, rows_tile, LANES), lambda b, r: (b, r, 0)),
        compiler_params=pltpu.CompilerParams(
            dimension_semantics=("parallel", "parallel")),
        cost_estimate=cost,
    )(xcat, wcat, btile)

    # (n, m, LANES) row-major == (n, ih, blk, kh, kw_off, co).  The zero-padded
    # ih == h row group and the bias-only tail of the last width block become
    # exactly the output_padding row / column after the slice.
    y = out_raw[:, :m, :].reshape(n, hg, wblk, KH, SW, COUT)
    y = jnp.transpose(y, (0, 5, 1, 3, 2, 4))                            # (n, co, ih, kh, blk, kw)
    y = y.reshape(n, COUT, hg * KH, wblk * SW)[:, :, :h_out, :w_out]
    return y


def reference(x_nchw, weight, bias):
    """Pure-JAX scatter-add reference for ConvTranspose2d + sigmoid (NCHW, f32)."""
    n, cin, h, w = x_nchw.shape
    h_out = (h - 1) * SH + KH + OPH
    w_out = (w - 1) * SW + KW + OPW
    t = jnp.einsum('nchw,cokl->nohwkl', x_nchw, weight)
    y = jnp.zeros((n, COUT, h_out, w_out), jnp.float32)
    for kh in range(KH):
        for kw in range(KW):
            y = y.at[:, :, kh:kh + SH * h:SH, kw:kw + SW * w:SW].add(t[:, :, :, :, kh, kw])
    y = y + bias[None, :, None, None]
    return jax.nn.sigmoid(y)


if __name__ == "__main__":
    key = jax.random.PRNGKey(0)
    k1, k2, k3 = jax.random.split(key, 3)
    # Small test shapes; channels fixed by the module (16 -> 32).  rows_tile=128
    # keeps the test fast while still exercising multiple row tiles + M padding
    # (M = 17*17 = 289 -> 3 tiles of 128), i.e. the same code path used at the
    # spec shape (2, 16, 520, 100) with the default rows_tile=1024.
    N, H, W = 2, 16, 16
    x = jax.random.normal(k1, (N, CIN, H, W), jnp.float32)
    weight = jax.random.normal(k2, (CIN, COUT, KH, KW), jnp.float32) * 0.05
    bias = jax.random.normal(k3, (COUT,), jnp.float32) * 0.1

    wcat, btile = pack_params(weight, bias)            # packed once, outside the call path
    fwd = jax.jit(functools.partial(conv_transpose_sigmoid, rows_tile=128))
    out = jax.block_until_ready(fwd(x, wcat, btile))

    ref = reference(x, weight, bias)
    assert out.shape == (N, COUT, (H - 1) * SH + KH + OPH, (W - 1) * SW + KW + OPW)
    max_err = float(jnp.max(jnp.abs(out - ref)))
    # bf16 operands (f32 accumulate): allow a few e-3 on sigmoid outputs in [0, 1].
    assert jnp.allclose(out, ref, atol=5e-3, rtol=5e-3), f"max abs err {max_err}"
    print("KERNEL_OK")
</pallas_src>

<mosaic_0001>
module attributes {stable_mosaic.version = 11 : i64} {
  func.func @convt_sigmoid_kernel(%arg0: i32, %arg1: i32, %arg2: memref<1x128x32xbf16, #tpu.memory_space<vmem>>, %arg3: memref<32x960xbf16, #tpu.memory_space<vmem>>, %arg4: memref<1x960xf32, #tpu.memory_space<vmem>>, %arg5: memref<1x128x960xf32, #tpu.memory_space<vmem>>) attributes {dimension_semantics = [#tpu.dimension_semantics<parallel>, #tpu.dimension_semantics<parallel>], iteration_bounds = array<i64: 2, 3>, scalar_prefetch = 0 : i64, scratch_operands = 0 : i64, tpu.core_type = #tpu.core_type<tc>, window_params = [{transform_indices = @transform_0, window_bounds = array<i64: 1, 128, 32>}, {pipeline_mode = #tpu.pipeline_mode<synchronous>, transform_indices = @transform_1, window_bounds = array<i64: 32, 960>}, {pipeline_mode = #tpu.pipeline_mode<synchronous>, transform_indices = @transform_2, window_bounds = array<i64: 1, 960>}, {transform_indices = @transform_3, window_bounds = array<i64: 1, 128, 960>}]} {
    %c0 = arith.constant 0 : index
    %c0_0 = arith.constant 0 : index
    %c0_1 = arith.constant 0 : index
    %0 = vector.load %arg2[%c0, %c0_0, %c0_1] : memref<1x128x32xbf16, #tpu.memory_space<vmem>>, vector<1x128x32xbf16>
    %1 = vector.shape_cast %0 : vector<1x128x32xbf16> to vector<128x32xbf16>
    %c0_2 = arith.constant 0 : index
    %c0_3 = arith.constant 0 : index
    %2 = vector.load %arg3[%c0_2, %c0_3] : memref<32x960xbf16, #tpu.memory_space<vmem>>, vector<32x960xbf16>
    %cst = arith.constant dense<0.000000e+00> : vector<128x960xf32>
    %3 = tpu.matmul %1, %2, %cst {dimension_numbers = #tpu.dot_dimension_numbers<[1], [0], [0], [1], [0, 0, 1, 1], [], []>} : vector<128x32xbf16>, vector<32x960xbf16>, vector<128x960xf32> -> vector<128x960xf32>
    %c0_4 = arith.constant 0 : index
    %c0_5 = arith.constant 0 : index
    %4 = vector.load %arg4[%c0_4, %c0_5] : memref<1x960xf32, #tpu.memory_space<vmem>>, vector<1x960xf32>
    %5 = vector.broadcast %4 : vector<1x960xf32> to vector<128x960xf32>
    %6 = arith.addf %3, %5 : vector<128x960xf32>
    %7 = arith.negf %6 : vector<128x960xf32>
    %8 = math.exp %7 : vector<128x960xf32>
    %cst_6 = arith.constant 1.000000e+00 : f32
    %9 = vector.broadcast %cst_6 : f32 to vector<128x960xf32>
    %10 = arith.addf %9, %8 : vector<128x960xf32>
    %11 = arith.divf %9, %10 : vector<128x960xf32>
    %c0_7 = arith.constant 0 : index
    %c0_8 = arith.constant 0 : index
    %c0_9 = arith.constant 0 : index
    %12 = vector.load %arg5[%c0_7, %c0_8, %c0_9] : memref<1x128x960xf32, #tpu.memory_space<vmem>>, vector<1x128x960xf32>
    %13 = vector.shape_cast %12 : vector<1x128x960xf32> to vector<128x960xf32>
    %14 = vector.shape_cast %11 : vector<128x960xf32> to vector<1x128x960xf32>
    tpu.vector_store %arg5[%c0_7, %c0_8, %c0_9], %14 {strides = array<i32>} : memref<1x128x960xf32, #tpu.memory_space<vmem>>, vector<1x128x960xf32>,
    return
  }
  func.func @transform_0(%arg0: i32, %arg1: i32) -> (i32, i32, i32) {
    %c0_i32 = arith.constant 0 : i32
    %c0_i32_0 = arith.constant 0 : i32
    return %arg0, %arg1, %c0_i32 : i32, i32, i32
  }
  func.func @transform_1(%arg0: i32, %arg1: i32) -> (i32, i32) {
    %c0_i32 = arith.constant 0 : i32
    %c0_i32_0 = arith.constant 0 : i32
    %c0_i32_1 = arith.constant 0 : i32
    return %c0_i32, %c0_i32_0 : i32, i32
  }
  func.func @transform_2(%arg0: i32, %arg1: i32) -> (i32, i32) {
    %c0_i32 = arith.constant 0 : i32
    %c0_i32_0 = arith.constant 0 : i32
    %c0_i32_1 = arith.constant 0 : i32
    return %c0_i32, %c0_i32_0 : i32, i32
  }
  func.func @transform_3(%arg0: i32, %arg1: i32) -> (i32, i32, i32) {
    %c0_i32 = arith.constant 0 : i32
    %c0_i32_0 = arith.constant 0 : i32
    return %arg0, %arg1, %c0_i32 : i32, i32, i32
  }
}

</mosaic_0001>

<bundles_post_ra>
// kernel: conv_transpose_sigmoid.1
= control target key start
LH: loop header
LB: loop body
LE: loop exit
PB: predicated region body
PF: predicated region fallthrough
CT: control target
= control target key end

     0   :  { %8 = vsyncpa [#allocation3], 0  ;;  %s6965_s0 = inlined_call_operand.vmem [shape: bf16[2,384,32], index: 0, kind: input, shape index: {}]   ;;  %s6966_s1 = inlined_call_operand.hbm [shape: bf16[32,960], index: 1, kind: input, shape index: {}]   ;;  %s6967_s2 = inlined_call_operand.hbm [shape: f32[1,960], index: 2, kind: input, shape index: {}]   ;;  %s6968_s3 = inlined_call_operand.vmem [shape: f32[2,384,960], index: 3, kind: output, shape index: {}]  }
   0x1   :  { %9 = vsyncpa [#allocation5], 0  ;;  %s4551_s12 = smov 0   ;;  %s4553_s13 = smov 0  }
   0x2   :  { %s4555_s14 = smov 0   ;;  %s4557_s15 = smov 0  }
   0x3   :  { %s4559_s16 = smov 0  }
   0x4 LB: > { %s3511_s17 = sadd.s32 4294967295, %s4525_s16   ;;  %s24_s18 = sadd.s32 1, %s4517_s14  ;;  %s4525_s16 = sphi %s4559_s16, %s15_s16   ;;  %s4521_s15 = sphi %s4557_s15, %s7184_s15   ;;  %s4517_s14 = sphi %s4555_s14, %s7183_s14   ;;  %s4513_s13 = sphi %s4553_s13, %s7182_s13   ;;  %s4509_s12 = sphi %s4551_s12, %s7181_s12  }
   0x5   : > { %p25_p0 = scmp.ge.s32.totalorder %s24_s18, 3  ;;  %s27_s19 = sadd.s32 1, %s4521_s15 }
   0x6   : > { %p3513_p1 = scmp.ge.s32.totalorder %s4525_s16, 1  ;;  %p130_p2 = scmp.lt.s32.totalorder %s4525_s16, 7 }
   0x7   : > { %s7186_s18 = smov (%p25_p0, %s24_s18), 0  ;;  %s7188_s19 = smov (!%p25_p0, %s27_s19), %s4521_s15 }
   0x8   : > { %p4584_p3 = pnand %p3513_p1, %p130_p2  ;;  %p29_p4 = scmp.ge.s32.totalorder %s7188_s19, 2 }
   0x9   : > { %p4588_p5 = scmp.eq.s32.totalorder %s3511_s17, 0  ;;  %s141_s24 = sshll.u32 %s6966_s1, 4  ;;  %s142_s24 = int_to_ptr.hbm [resolvable:$true] %s141_s24 }
   0xa   : > { %p3849_p6 = pneg %p4584_p3  ;;  %s7190_s19 = smov (%p29_p4, %s7188_s19), 0 }
   0xb   : > { %s4527_s25 = smov [#allocation2]   ;;  %s4528_s27 = smov 512  }
   0xc   : > { %s143_s26 = sshll.u32 %s4527_s25, 4  ;;  %p3850_p7 = pnand %p4588_p5, %p3849_p6  ;;  %s144_s26 = int_to_ptr.vmem [resolvable:$true] %s143_s26 }
   0xd   : > { %s4529_s28 = smov 32   ;;  %s156_s4 = sshll.u32 %s6967_s2, 4  ;;  %s157_s4 = int_to_ptr.hbm [resolvable:$true] %s156_s4 }
   0xe   : > { %3852 = dma.hbm_to_vmem [thread:$0]  (!%p3850_p7), %s142_s24, 2048, %s144_s26, [#allocation3], %s4528_s27, %s4528_s27, %s4529_s28  }
   0xf   : > { %s4530_s5 = smov [#allocation4]   ;;  %184 = sbr.rel (%p4584_p3) target bundleno = 727 (0x2d7), region = 32 }
  0x10   : > { %s158_s6 = sshll.u32 %s4530_s5, 4  ;;  %s159_s6 = int_to_ptr.vmem [resolvable:$true] %s158_s6 }
  0x11   : > { %3855 = dma.hbm_to_vmem [thread:$0]  (!%p3850_p7), %s157_s4, 128, %s159_s6, [#allocation5]  }
  0x14   : > { %4500 = dma.done.wait (%p4588_p5), [#allocation3], 2048  }
  0x15   : > { %4502 = vsyncadd (%p4588_p5), [#allocation3], 4294965248 }
  0x16   : > { %4504 = dma.done.wait (%p4588_p5), [#allocation5], 128  }
  0x17   : > { %4506 = vsyncadd (%p4588_p5), [#allocation5], 4294967168  ;;  %s3520_s7 = sshll.u32 %s4509_s12, 4  ;;  %p224_p8 = scmp.lt.s32.totalorder %s4513_s13, 1  ;;  %v3591_v0 = vld [vmem:[#allocation2 + $0x40] sm:$0xf] }
  0x18   : > { %p226_p9 = scmp.lt.s32.totalorder %s3520_s7, 47  ;;  %v3835_v1 = vld [vmem:[#allocation2 + $0x5c] sm:$0xf0]  ;;  %v3831_v2 = vld [vmem:[#allocation2 + $0x44] sm:$0xf]  ;;  %vm415_vm0 = vcmask 261120  }
  0x19   : > { %s7192_s13 = smov (!%p224_p8, %s4513_s13), 1  ;;  %v3592_v3 = vor.u32 %v3835_v1, %v3591_v0  ;;  %v3593_v4 = vld [vmem:[#allocation2 + $0x60] sm:$0xf0]  ;;  %v3599_v5 = vld [vmem:[#allocation2 + $0x48] sm:$0xf] }
  0x1a   : > { %s7194_s7 = smov (!%p226_p9, %s3520_s7), 47  ;;  %s3839_s8 = smul.u32 48, %s7192_s13  ;;  %v3836_v6 = vld [vmem:[#allocation2 + $0x64] sm:$0xf0]  ;;  %v3596_v7 = vor.u32 %v3831_v2, %v3593_v4  ;;  %v3832_v9 = vld [vmem:[#allocation2 + $0x4c] sm:$0xf] }
  0x1b   : > { %s3523_s9 = sshll.u32 %s7194_s7, 3  ;;  %s3840_s10 = smul.u32 384, %s7192_s13  ;;  %v3600_v8 = vor.u32 %v3836_v6, %v3599_v5  ;;  %v3601_v10 = vld [vmem:[#allocation2 + $0x68] sm:$0xf0]  ;;  %v3559_v11 = vld [vmem:[#allocation2] sm:$0xf]  ;;  %446 = vmatpush.bf16.msra.mxu0 %v3592_v3 }
  0x1c   : > { %s229_s12 = sadd.s32 %s3839_s8, %s7194_s7  ;;  %v3604_v12 = vor.u32 %v3832_v9, %v3601_v10  ;;  %v3827_v13 = vld [vmem:[#allocation2 + $0x1c] sm:$0xf0]  ;;  %v3823_v14 = vld [vmem:[#allocation2 + $0x4] sm:$0xf]  ;;  %495 = vmatpush.bf16.msra.mxu1 %v3596_v7  ;;  %v3567_v18 = vld [vmem:[#allocation2 + $0x8] sm:$0xf] }
  0x1d   : > { %s4617_s11 = sadd.s32 %s3840_s10, %s3523_s9  ;;  %v3561_v15 = vld [vmem:[#allocation2 + $0x20] sm:$0xf0]  ;;  %544 = vmatpush.bf16.msra.mxu2 %v3600_v8  ;;  %v3560_v16 = vor.u32 %v3827_v13, %v3559_v11  ;;  %v3828_v19 = vld [vmem:[#allocation2 + $0x24] sm:$0xf0]  ;;  %v3824_v20 = vld [vmem:[#allocation2 + $0xc] sm:$0xf] }
  0x1e   : > { %v3564_v17 = vor.u32 %v3823_v14, %v3561_v15  ;;  %593 = vmatpush.bf16.msra.mxu3 %v3604_v12  ;;  %v3568_v21 = vor.u32 %v3828_v19, %v3567_v18  ;;  %v3569_v22 = vld [vmem:[#allocation2 + $0x28] sm:$0xf0]  ;;  %s3521_s13 = sshll.u32 %s229_s12, 2  ;;  %v3615_v23 = vld [vmem:[#allocation2 + $0x58] sm:$0xf]  ;;  %v277_v56 = vld [vmem:[#allocation4] sm:$0xff] }
  0x1f   : > { %v3572_v24 = vor.u32 %v3824_v20, %v3569_v22  ;;  %s4622_s21 = scalar_lea.vmem %s6965_s0, %s3521_s13  ;;  %v3838_v25 = vld [vmem:[#allocation2 + $0x74] sm:$0xf0]  ;;  %v3834_v26 = vld [vmem:[#allocation2 + $0x5c] sm:$0xf]  ;;  %447 = vmatpush.bf16.msra.mxu0 %v3560_v16  ;;  %v3607_v31 = vld [vmem:[#allocation2 + $0x50] sm:$0xf] }
  0x20   : > { %v3617_v27 = vld [vmem:[#allocation2 + $0x78] sm:$0xf0]  ;;  %v4625_v28 = vld [vmem:[%s4622_s21] sm:$0xff]  ;;  %v3616_v29 = vor.u32 %v3838_v25, %v3615_v23  ;;  %v3837_v32 = vld [vmem:[#allocation2 + $0x6c] sm:$0xf0]  ;;  %496 = vmatpush.bf16.msra.mxu1 %v3564_v17  ;;  %v4706_v57 = vperm.slane %v277_v56, 0 }
  0x21   : > { %v3620_v30 = vor.u32 %v3834_v26, %v3617_v27  ;;  %545 = vmatpush.bf16.msra.mxu2 %v3568_v21  ;;  %v3608_v33 = vor.u32 %v3837_v32, %v3607_v31  ;;  %v3833_v34 = vld [vmem:[#allocation2 + $0x54] sm:$0xf]  ;;  %v4636_v37 = vld [vmem:[%s4622_s21 + $0x8] sm:$0xff]  ;;  %v3583_v39 = vld [vmem:[#allocation2 + $0x18] sm:$0xf]  ;;  %v4708_v58 = vperm.slane %v277_v56, 1 }
  0x22   : > { %v3609_v35 = vld [vmem:[#allocation2 + $0x70] sm:$0xf0]  ;;  %594 = vmatpush.bf16.msra.mxu3 %v3572_v24  ;;  %3621 = vmatmul.msk.bf16.vlgmr.msra.gmra.mxu0 %vm415_vm0, %v4625_v28  ;;  %v3830_v40 = vld [vmem:[#allocation2 + $0x34] sm:$0xf0]  ;;  %v3826_v41 = vld [vmem:[#allocation2 + $0x1c] sm:$0xf] }
  0x23   : > { %v3612_v36 = vor.u32 %v3833_v34, %v3609_v35  ;;  %3629 = vmatmul.msk.bf16.vlgmr.msra.gmra.mxu1 %vm415_vm0, %v4625_v28  ;;  %642 = vmatpush.bf16.msrb.mxu0 %v3608_v33  ;;  %v4647_v38 = vld [vmem:[%s4622_s21 + $0x10] sm:$0xff]  ;;  %v3584_v42 = vor.u32 %v3830_v40, %v3583_v39  ;;  %v3585_v43 = vld [vmem:[#allocation2 + $0x38] sm:$0xf0]  ;;  %v4669_v52 = vld [vmem:[%s4622_s21 + $0x20] sm:$0xff]  ;;  %v4718_v1 = vperm.slane %v277_v56, 2  ;;  %v4722_v2 = vperm.slane %v277_v56, 3 }
  0x24   : > { %3637 = vmatmul.msk.bf16.vlgmr.msra.gmra.mxu2 %vm415_vm0, %v4625_v28  ;;  %v3575_v44 = vld [vmem:[#allocation2 + $0x10] sm:$0xf]  ;;  %v3588_v46 = vor.u32 %v3826_v41, %v3585_v43  ;;  %v3825_v48 = vld [vmem:[#allocation2 + $0x14] sm:$0xf]  ;;  %v4658_v51 = vld [vmem:[%s4622_s21 + $0x18] sm:$0xff]  ;;  %s3524_s22 = sshll.u32 %s4617_s11, 3 }
  0x25   : > { %740 = vmatpush.bf16.msrb.mxu2 %v3616_v29  ;;  %3645 = vmatmul.msk.bf16.vlgmr.msra.gmra.mxu3 %vm415_vm0, %v4625_v28  ;;  %v3829_v45 = vld [vmem:[#allocation2 + $0x2c] sm:$0xf0]  ;;  %v3577_v49 = vld [vmem:[#allocation2 + $0x30] sm:$0xf0]  ;;  %v4680_v53 = vld [vmem:[%s4622_s21 + $0x28] sm:$0xff]  ;;  %s4783_s25 = scalar_lea.vmem %s6968_s3, %s3524_s22 }
  0x26   : > { %789 = vmatpush.bf16.msrb.mxu3 %v3620_v30  ;;  %691 = vmatpush.bf16.msrb.mxu1 %v3612_v36  ;;  %v3576_v47 = vor.u32 %v3829_v45, %v3575_v44  ;;  %v3580_v50 = vor.u32 %v3825_v48, %v3577_v49  ;;  %v4691_v54 = vld [vmem:[%s4622_s21 + $0x30] sm:$0xff]  ;;  %v3822_v55 = vld [vmem:[%s4622_s21 + $0x38] sm:$0xff] }
  0x28   : > { %643 = vmatpush.bf16.msrb.mxu0 %v3576_v47 }
  0x29   : > { %741 = vmatpush.bf16.msrb.mxu2 %v3584_v42 }
  0x2a   : > { %790 = vmatpush.bf16.msrb.mxu3 %v3588_v46  ;;  %692 = vmatpush.bf16.msrb.mxu1 %v3580_v50 }
  0x32   : > { %3622 = vmatmul.msk.bf16.gmra.mxu0 %vm415_vm0, %v4636_v37 }
  0x33   : > { %3630 = vmatmul.msk.bf16.gmra.mxu1 %vm415_vm0, %v4636_v37 }
  0x34   : > { %3638 = vmatmul.msk.bf16.gmra.mxu2 %vm415_vm0, %v4636_v37 }
  0x35   : > { %3646 = vmatmul.msk.bf16.gmra.mxu3 %vm415_vm0, %v4636_v37 }
  0x42   : > { %3623 = vmatmul.msk.bf16.gmra.mxu0 %vm415_vm0, %v4647_v38 }
  0x43   : > { %3631 = vmatmul.msk.bf16.gmra.mxu1 %vm415_vm0, %v4647_v38 }
  0x44   : > { %3639 = vmatmul.msk.bf16.gmra.mxu2 %vm415_vm0, %v4647_v38 }
  0x45   : > { %3647 = vmatmul.msk.bf16.gmra.mxu3 %vm415_vm0, %v4647_v38 }
  0x52   : > { %3624 = vmatmul.msk.bf16.gmra.mxu0 %vm415_vm0, %v4658_v51 }
  0x53   : > { %3632 = vmatmul.msk.bf16.gmra.mxu1 %vm415_vm0, %v4658_v51 }
  0x54   : > { %3640 = vmatmul.msk.bf16.gmra.mxu2 %vm415_vm0, %v4658_v51 }
  0x55   : > { %3648 = vmatmul.msk.bf16.gmra.mxu3 %vm415_vm0, %v4658_v51 }
  0x62   : > { %3625 = vmatmul.msk.bf16.gmra.mxu0 %vm415_vm0, %v4669_v52 }
  0x63   : > { %3633 = vmatmul.msk.bf16.gmra.mxu1 %vm415_vm0, %v4669_v52 }
  0x64   : > { %3641 = vmatmul.msk.bf16.gmra.mxu2 %vm415_vm0, %v4669_v52 }
  0x65   : > { %3649 = vmatmul.msk.bf16.gmra.mxu3 %vm415_vm0, %v4669_v52 }
  0x72   : > { %3626 = vmatmul.msk.bf16.gmra.mxu0 %vm415_vm0, %v4680_v53 }
  0x73   : > { %3634 = vmatmul.msk.bf16.gmra.mxu1 %vm415_vm0, %v4680_v53 }
  0x74   : > { %3642 = vmatmul.msk.bf16.gmra.mxu2 %vm415_vm0, %v4680_v53 }
  0x75   : > { %3650 = vmatmul.msk.bf16.gmra.mxu3 %vm415_vm0, %v4680_v53 }
  0x82   : > { %3627 = vmatmul.msk.bf16.gmra.mxu0 %vm415_vm0, %v4691_v54 }
  0x83   : > { %3635 = vmatmul.msk.bf16.gmra.mxu1 %vm415_vm0, %v4691_v54 }
  0x84   : > { %3643 = vmatmul.msk.bf16.gmra.mxu2 %vm415_vm0, %v4691_v54 }
  0x85   : > { %3651 = vmatmul.msk.bf16.gmra.mxu3 %vm415_vm0, %v4691_v54 }
  0x92   : > { %3628 = vmatmul.msk.bf16.gmra.mxu0 %vm415_vm0, %v3822_v55 }
  0x93   : > { %3636 = vmatmul.msk.bf16.gmra.mxu1 %vm415_vm0, %v3822_v55 }
  0x94   : > { %3644 = vmatmul.msk.bf16.gmra.mxu2 %vm415_vm0, %v3822_v55 }
  0x95   : > { %3652 = vmatmul.msk.bf16.gmra.mxu3 %vm415_vm0, %v3822_v55 }
  0x9f   : > { %v449_v59 = vpop.f32.mrf.mxu0 }
  0xa0   : > { %v450_v60 = vadd.f32 %v449_v59, %v4706_v57  ;;  %v498_v61 = vpop.f32.mrf.mxu1 }
  0xa1   : > { %v499_v62 = vadd.f32 %v498_v61, %v4708_v58 }
  0xa2   : > { %v3685_v63 = vmul.f32 -1.442695, %v450_v60  ;;  %3653 = vmatmul.msk.bf16.vlgmr.msrb.gmra.mxu0 %vm415_vm0, %v4625_v28 }
  0xa3   : > { %v3686_v0 = vmul.f32 -1.442695, %v499_v62  ;;  %3661 = vmatmul.msk.bf16.vlgmr.msrb.gmra.mxu1 %vm415_vm0, %v4625_v28 }
  0xa4   : > { %3669 = vmatmul.msk.bf16.vlgmr.msrb.gmra.mxu2 %vm415_vm0, %v4625_v28  ;;  %3904 = vpow2.f32 %v3685_v63 }
  0xa5   : > { %3677 = vmatmul.msk.bf16.vlgmr.msrb.gmra.mxu3 %vm415_vm0, %v4625_v28  ;;  %3906 = vpow2.f32 %v3686_v0 }
  0xa7   : > { %v547_v3 = vpop.f32.mrf.mxu2  ;;  %v451_v6 = vpop.f32.mrf.mxu0 }
  0xa8   : > { %v548_v4 = vadd.f32 %v547_v3, %v4718_v1  ;;  %v596_v5 = vpop.f32.mrf.mxu3  ;;  %v452_v8 = vadd.f32 %v451_v6, %v4706_v57  ;;  %v500_v9 = vpop.f32.mrf.mxu1 }
  0xa9   : > { %v597_v7 = vadd.f32 %v596_v5, %v4722_v2  ;;  %v501_v11 = vadd.f32 %v500_v9, %v4708_v58 }
  0xaa   : > { %v3687_v10 = vmul.f32 -1.442695, %v548_v4  ;;  %v3905_v12 = vpop.eup %3904  ;;  %v3693_v16 = vmul.f32 -1.442695, %v452_v8 }
  0xab   : > { %v3688_v13 = vmul.f32 -1.442695, %v597_v7  ;;  %v3907_v14 = vpop.eup %3906  ;;  %v4728_v15 = vadd.f32 1.0, %v3905_v12  ;;  %v3694_v18 = vmul.f32 -1.442695, %v501_v11 }
  0xac   : > { %3908 = vpow2.f32 %v3687_v10  ;;  %v4730_v17 = vadd.f32 1.0, %v3907_v14 }
  0xad   : > { %3910 = vpow2.f32 %v3688_v13  ;;  %v1353_v22 = vand.u32 2147483647, %v4728_v15  ;;  %v1355_v23 = vand.u32 2147483648, %v4728_v15  ;;  %vm1349_vm1 = vweird.f32 %v4728_v15 }
  0xae   : > { %3912 = vrcp.f32 %v4728_v15  ;;  %v1368_v26 = vand.u32 2147483647, %v4730_v17  ;;  %v1370_v30 = vand.u32 2147483648, %v4730_v17  ;;  %vm1364_vm2 = vweird.f32 %v4730_v17 }
  0xaf   : > { %3914 = vrcp.f32 %v4730_v17  ;;  %v549_v19 = vpop.f32.mrf.mxu2  ;;  %v454_v24 = vpop.f32.mrf.mxu0  ;;  %vm4754_vm3 = vcmp.eq.f32.partialorder %v1353_v22, 8.507059e+37  ;;  %v1356_v41 = vor.u32 1.1754944e-38, %v1355_v23 }
  0xb0   : > { %3916 = vpow2.f32 %v3693_v16  ;;  %v550_v20 = vadd.f32 %v549_v19, %v4718_v1  ;;  %v598_v21 = vpop.f32.mrf.mxu3  ;;  %v455_v34 = vadd.f32 %v454_v24, %v4706_v57  ;;  %v503_v35 = vpop.f32.mrf.mxu1  ;;  %vm4762_vm4 = vcmp.eq.f32.partialorder %v1368_v26, 8.507059e+37 }
  0xb1   : > { %3918 = vpow2.f32 %v3694_v18  ;;  %v599_v28 = vadd.f32 %v598_v21, %v4722_v2  ;;  %v1371_v48 = vor.u32 1.1754944e-38, %v1370_v30  ;;  %v504_v49 = vadd.f32 %v503_v35, %v4708_v58 }
  0xb2   : > { %v3909_v25 = vpop.eup %3908  ;;  %v3695_v27 = vmul.f32 -1.442695, %v550_v20  ;;  %3654 = vmatmul.msk.bf16.gmra.mxu0 %vm415_vm0, %v4636_v37  ;;  %v3701_v55 = vmul.f32 -1.442695, %v455_v34 }
  0xb3   : > { %v3911_v29 = vpop.eup %3910  ;;  %v4740_v31 = vadd.f32 1.0, %v3909_v25  ;;  %3662 = vmatmul.msk.bf16.gmra.mxu1 %vm415_vm0, %v4636_v37  ;;  %v3696_v45 = vmul.f32 -1.442695, %v599_v28  ;;  %v4778_v5 = vmul.f32 -1.442695, %v504_v49 }
  0xb4   : > { %v3913_v32 = vpop.eup %3912  ;;  %v4746_v33 = vadd.f32 1.0, %v3911_v29  ;;  %3670 = vmatmul.msk.bf16.gmra.mxu2 %vm415_vm0, %v4636_v37 }
  0xb5   : > { %v3915_v36 = vpop.eup %3914  ;;  %v1345_v39 = vmul.f32 %v3913_v32, %v4728_v15  ;;  %3920 = vrcp.f32 %v4740_v31  ;;  %3678 = vmatmul.msk.bf16.gmra.mxu3 %vm415_vm0, %v4636_v37  ;;  %vm1350_vm5 = vweird.f32 %v3913_v32  ;;  %v1383_v37 = vand.u32 2147483647, %v4740_v31 }
  0xb6   : > { %v3917_v42 = vpop.eup %3916  ;;  %v1360_v43 = vmul.f32 %v3915_v36, %v4730_v17  ;;  %3922 = vpow2.f32 %v3695_v27  ;;  %v1385_v59 = vand.u32 2147483648, %v4740_v31  ;;  %vm1365_vm6 = vweird.f32 %v3915_v36  ;;  %vm1351_vm7 = vmor %vm1349_vm1, %vm1350_vm5 }
  0xb7   : > { %v3919_v46 = vpop.eup %3918  ;;  %v1346_v47 = vsub.f32 1.0, %v1345_v39  ;;  %3924 = vrcp.f32 %v4746_v33  ;;  %v4771_v60 = vadd.f32 1.0, %v3917_v42  ;;  %v1398_v63 = vand.u32 2147483647, %v4746_v33  ;;  %v552_v9 = vpop.f32.mrf.mxu2  ;;  %vm1366_vm10 = vmor %vm1364_vm2, %vm1365_vm6 }
  0xb8   : > { %v1361_v50 = vsub.f32 1.0, %v1360_v43  ;;  %v4773_v61 = vadd.f32 1.0, %v3919_v46  ;;  %3926 = vpow2.f32 %v3696_v45  ;;  %v1400_v4 = vand.u32 2147483648, %v4746_v33  ;;  %v601_v40 = vpop.f32.mrf.mxu3 }
  0xb9   : > { %v1347_v56 = vmul.f32 %v3913_v32, %v1346_v47  ;;  %3928 = vrcp.f32 %v4771_v60  ;;  %vm1379_vm8 = vweird.f32 %v4740_v31  ;;  %vm1394_vm9 = vweird.f32 %v4746_v33 }
  0xba   : > { %v1362_v62 = vmul.f32 %v3915_v36, %v1361_v50  ;;  %vm4794_vm11 = vcmp.eq.f32.partialorder %v1383_v37, 8.507059e+37  ;;  %v1386_v13 = vor.u32 1.1754944e-38, %v1385_v59  ;;  %3930 = vrcp.f32 %v4773_v61 }
  0xbb   : > { %v3921_v0 = vpop.eup %3920  ;;  %v1348_v3 = vadd.f32 %v3913_v32, %v1347_v56  ;;  %vm4802_vm12 = vcmp.eq.f32.partialorder %v1398_v63, 8.507059e+37  ;;  %v1401_v20 = vor.u32 1.1754944e-38, %v1400_v4  ;;  %v1473_v21 = vand.u32 2147483647, %v4771_v60  ;;  %v456_v63 = vpop.f32.mrf.mxu0 }
  0xbc   : > { %v3923_v6 = vpop.eup %3922  ;;  %v1363_v7 = vadd.f32 %v3915_v36, %v1362_v62  ;;  %v1375_v8 = vmul.f32 %v3921_v0, %v4740_v31  ;;  %v553_v22 = vadd.f32 %v552_v9, %v4718_v1  ;;  %vm1380_vm13 = vweird.f32 %v3921_v0 }
  0xbd   : > { %v3925_v10 = vpop.eup %3924  ;;  %v1352_v11 = vsel %vm1351_vm7, %v3913_v32, %v1348_v3  ;;  %v4812_v26 = vadd.f32 1.0, %v3923_v6  ;;  %vm1469_vm15 = vweird.f32 %v4771_v60  ;;  %v1475_v28 = vand.u32 2147483648, %v4771_v60  ;;  %vm1381_vm1 = vmor %vm1379_vm8, %vm1380_vm13 }
  0xbe   : > { %v1357_v14 = vsel %vm4754_vm3, %v1356_v41, %v1352_v11  ;;  %v1367_v15 = vsel %vm1366_vm10, %v3915_v36, %v1363_v7  ;;  %v1376_v16 = vsub.f32 1.0, %v1375_v8  ;;  %v1390_v18 = vmul.f32 %v3925_v10, %v4746_v33  ;;  %v3927_v23 = vpop.eup %3926 }
  0xbf   : > { %3264 = vst [vmem:[%s4783_s25] sm:$0xff] %v1357_v14  ;;  %v1372_v17 = vsel %vm4762_vm4, %v1371_v48, %v1367_v15  ;;  %v3929_v27 = vpop.eup %3928  ;;  %vm1395_vm14 = vweird.f32 %v3925_v10  ;;  %3932 = vpow2.f32 %v3701_v55  ;;  %v4817_v34 = vadd.f32 1.0, %v3927_v23 }
  0xc0   : > { %3265 = vst [vmem:[%s4783_s25 + $0x8] sm:$0xff] %v1372_v17  ;;  %v1377_v24 = vmul.f32 %v3921_v0, %v1376_v16  ;;  %v1391_v25 = vsub.f32 1.0, %v1390_v18  ;;  %v1465_v32 = vmul.f32 %v3929_v27, %v4771_v60  ;;  %v3931_v35 = vpop.eup %3930  ;;  %vm4821_vm2 = vcmp.eq.f32.partialorder %v1473_v21, 8.507059e+37  ;;  %vm1396_vm4 = vmor %vm1394_vm9, %vm1395_vm14  ;;  %v505_v16 = vpop.f32.mrf.mxu1 }
  0xc1   : > { %vm1484_vm3 = vweird.f32 %v4773_v61  ;;  %v1488_v39 = vand.u32 2147483647, %v4773_v61  ;;  %3934 = vrcp.f32 %v4812_v26  ;;  %v1480_v31 = vmul.f32 %v3931_v35, %v4773_v61  ;;  %v554_v18 = vpop.f32.mrf.mxu2 }
  0xc2   : > { %v1378_v29 = vadd.f32 %v3921_v0, %v1377_v24  ;;  %v1392_v30 = vmul.f32 %v3925_v10, %v1391_v25  ;;  %3655 = vmatmul.msk.bf16.gmra.mxu0 %vm415_vm0, %v4647_v38  ;;  %v1466_v43 = vsub.f32 1.0, %v1465_v32  ;;  %vm1470_vm5 = vweird.f32 %v3929_v27 }
  0xc3   : > { %3663 = vmatmul.msk.bf16.gmra.mxu1 %vm415_vm0, %v4647_v38  ;;  %v1490_v45 = vand.u32 2147483648, %v4773_v61  ;;  %v1503_v46 = vand.u32 2147483647, %v4812_v26  ;;  %v1481_v49 = vsub.f32 1.0, %v1480_v31  ;;  %3936 = vrcp.f32 %v4817_v34  ;;  %vm1471_vm8 = vmor %vm1469_vm15, %vm1470_vm5 }
  0xc4   : > { %v1382_v41 = vsel %vm1381_vm1, %v3921_v0, %v1378_v29  ;;  %v1393_v42 = vadd.f32 %v3925_v10, %v1392_v30  ;;  %3671 = vmatmul.msk.bf16.gmra.mxu2 %vm415_vm0, %v4647_v38  ;;  %v1467_v48 = vmul.f32 %v3929_v27, %v1466_v43  ;;  %v1476_v37 = vor.u32 1.1754944e-38, %v1475_v28 }
  0xc5   : > { %v1387_v44 = vsel %vm4794_vm11, %v1386_v13, %v1382_v41  ;;  %3679 = vmatmul.msk.bf16.gmra.mxu3 %vm415_vm0, %v4647_v38  ;;  %v3933_v50 = vpop.eup %3932  ;;  %vm4848_vm6 = vcmp.eq.f32.partialorder %v1488_v39, 8.507059e+37  ;;  %v1505_v56 = vand.u32 2147483648, %v4812_v26  ;;  %v1482_v38 = vmul.f32 %v3931_v35, %v1481_v49 }
  0xc6   : > { %3266 = vst [vmem:[%s4783_s25 + $0x10] sm:$0xff] %v1387_v44  ;;  %v1397_v47 = vsel %vm1396_vm4, %v3925_v10, %v1393_v42  ;;  %v1468_v59 = vadd.f32 %v3929_v27, %v1467_v48  ;;  %vm1485_vm7 = vweird.f32 %v3931_v35  ;;  %v4854_v62 = vadd.f32 1.0, %v3933_v50 }
  0xc7   : > { %v1402_v33 = vsel %vm4802_vm12, %v1401_v20, %v1397_v47  ;;  %v3935_v0 = vpop.eup %3934  ;;  %v1491_v3 = vor.u32 1.1754944e-38, %v1490_v45  ;;  %vm1499_vm9 = vweird.f32 %v4812_v26  ;;  %3938 = vpow2.f32 %v4778_v5  ;;  %vm1486_vm11 = vmor %vm1484_vm3, %vm1485_vm7  ;;  %v603_v20 = vpop.f32.mrf.mxu3 }
  0xc8   : > { %3267 = vst [vmem:[%s4783_s25 + $0x18] sm:$0xff] %v1402_v33  ;;  %v3703_v4 = vmul.f32 -1.442695, %v553_v22  ;;  %v1472_v6 = vsel %vm1471_vm8, %v3929_v27, %v1468_v59  ;;  %v1483_v7 = vadd.f32 %v3931_v35, %v1482_v38  ;;  %v1495_v8 = vmul.f32 %v3935_v0, %v4812_v26 }
  0xc9   : > { %vm4862_vm10 = vcmp.eq.f32.partialorder %v1503_v46, 8.507059e+37  ;;  %v602_v10 = vadd.f32 %v601_v40, %v4722_v2  ;;  %v1477_v60 = vsel %vm4821_vm2, %v1476_v37, %v1472_v6  ;;  %v1506_v11 = vor.u32 1.1754944e-38, %v1505_v56  ;;  %v3937_v12 = vpop.eup %3936 }
  0xca   : > { %3940 = vrcp.f32 %v4854_v62  ;;  %v457_v5 = vadd.f32 %v456_v63, %v4706_v57  ;;  %3273 = vst [vmem:[%s4783_s25 + $0x40] sm:$0xff] %v1477_v60  ;;  %v1487_v13 = vsel %vm1486_vm11, %v3931_v35, %v1483_v7  ;;  %v1496_v14 = vsub.f32 1.0, %v1495_v8  ;;  %v459_v7 = vpop.f32.mrf.mxu0 }
  0xcb   : > { %vm1514_vm12 = vweird.f32 %v4817_v34  ;;  %v1518_v15 = vand.u32 2147483647, %v4817_v34  ;;  %v1492_v61 = vsel %vm4848_vm6, %v1491_v3, %v1487_v13  ;;  %v1510_v19 = vmul.f32 %v3937_v12, %v4817_v34 }
  0xcc   : > { %v1520_v17 = vand.u32 2147483648, %v4817_v34  ;;  %3942 = vpow2.f32 %v3703_v4  ;;  %3274 = vst [vmem:[%s4783_s25 + $0x48] sm:$0xff] %v1492_v61  ;;  %v1497_v21 = vmul.f32 %v3935_v0, %v1496_v14  ;;  %vm1500_vm13 = vweird.f32 %v3935_v0 }
  0xcd   : > { %vm1515_vm14 = vweird.f32 %v3937_v12  ;;  %v3704_v22 = vmul.f32 -1.442695, %v602_v10  ;;  %v3939_v23 = vpop.eup %3938  ;;  %v1511_v24 = vsub.f32 1.0, %v1510_v19  ;;  %v3709_v25 = vmul.f32 -1.442695, %v457_v5  ;;  %vm1501_vm15 = vmor %vm1499_vm9, %vm1500_vm13 }
  0xce   : > { %v506_v27 = vadd.f32 %v505_v16, %v4708_v58  ;;  %v555_v28 = vadd.f32 %v554_v18, %v4718_v1  ;;  %v1498_v29 = vadd.f32 %v3935_v0, %v1497_v21  ;;  %v4884_v30 = vadd.f32 1.0, %v3939_v23  ;;  %vm1516_vm3 = vmor %vm1514_vm12, %vm1515_vm14 }
  0xcf   : > { %3944 = vpow2.f32 %v3704_v22  ;;  %v604_v32 = vadd.f32 %v603_v20, %v4722_v2  ;;  %v1512_v36 = vmul.f32 %v3937_v12, %v1511_v24  ;;  %vm4889_vm1 = vcmp.eq.f32.partialorder %v1518_v15, 8.507059e+37  ;;  %v606_v13 = vpop.f32.mrf.mxu3 }
  0xd0   : > { %v3941_v35 = vpop.eup %3940  ;;  %3946 = vpow2.f32 %v3709_v25  ;;  %v3710_v39 = vmul.f32 -1.442695, %v506_v27  ;;  %v3711_v40 = vmul.f32 -1.442695, %v555_v28  ;;  %v1502_v41 = vsel %vm1501_vm15, %v3935_v0, %v1498_v29 }
  0xd1   : > { %v1585_v43 = vmul.f32 %v3941_v35, %v4854_v62  ;;  %3948 = vrcp.f32 %v4884_v30  ;;  %v1507_v44 = vsel %vm4862_vm10, %v1506_v11, %v1502_v41  ;;  %v1513_v26 = vadd.f32 %v3937_v12, %v1512_v36  ;;  %v508_v41 = vpop.f32.mrf.mxu1 }
  0xd2   : > { %v3943_v31 = vpop.eup %3942  ;;  %v1521_v45 = vor.u32 1.1754944e-38, %v1520_v17  ;;  %vm1589_vm2 = vweird.f32 %v4854_v62  ;;  %3656 = vmatmul.msk.bf16.gmra.mxu0 %vm415_vm0, %v4658_v51  ;;  %3275 = vst [vmem:[%s4783_s25 + $0x50] sm:$0xff] %v1507_v44  ;;  %v1593_v47 = vand.u32 2147483647, %v4854_v62  ;;  %3950 = vpow2.f32 %v3710_v39 }
  0xd3   : > { %v1586_v46 = vsub.f32 1.0, %v1585_v43  ;;  %v4905_v48 = vadd.f32 1.0, %v3943_v31  ;;  %3664 = vmatmul.msk.bf16.gmra.mxu1 %vm415_vm0, %v4658_v51  ;;  %v1517_v49 = vsel %vm1516_vm3, %v3937_v12, %v1513_v26  ;;  %v1595_v50 = vand.u32 2147483648, %v4854_v62 }
  0xd4   : > { %3672 = vmatmul.msk.bf16.gmra.mxu2 %vm415_vm0, %v4658_v51  ;;  %3952 = vpow2.f32 %v3711_v40  ;;  %v3712_v33 = vmul.f32 -1.442695, %v604_v32  ;;  %v1522_v37 = vsel %vm4889_vm1, %v1521_v45, %v1517_v49  ;;  %vm1590_vm4 = vweird.f32 %v3941_v35 }
  0xd5   : > { %3680 = vmatmul.msk.bf16.gmra.mxu3 %vm415_vm0, %v4658_v51  ;;  %v3945_v34 = vpop.eup %3944  ;;  %v1587_v55 = vmul.f32 %v3941_v35, %v1586_v46  ;;  %3954 = vrcp.f32 %v4905_v48  ;;  %3276 = vst [vmem:[%s4783_s25 + $0x58] sm:$0xff] %v1522_v37  ;;  %v1608_v59 = vand.u32 2147483647, %v4884_v30  ;;  %v1610_v3 = vand.u32 2147483648, %v4884_v30  ;;  %vm1591_vm5 = vmor %vm1589_vm2, %vm1590_vm4 }
  0xd6   : > { %v3947_v56 = vpop.eup %3946  ;;  %v4919_v38 = vadd.f32 1.0, %v3945_v34  ;;  %3956 = vpow2.f32 %v3712_v33  ;;  %vm1594_vm6 = vcmp.eq.f32.partialorder %v1593_v47, 8.507059e+37  ;;  %v1596_v51 = vor.u32 1.1754944e-38, %v1595_v50 }
  0xd7   : > { %v3949_v63 = vpop.eup %3948  ;;  %v1588_v0 = vadd.f32 %v3941_v35, %v1587_v55  ;;  %v4922_v4 = vadd.f32 1.0, %v3947_v56  ;;  %v1623_v10 = vand.u32 2147483647, %v4905_v48  ;;  %v1625_v60 = vand.u32 2147483648, %v4905_v48 }
  0xd8   : > { %v1600_v6 = vmul.f32 %v3949_v63, %v4884_v30  ;;  %v3951_v8 = vpop.eup %3950  ;;  %3958 = vrcp.f32 %v4919_v38  ;;  %vm1604_vm7 = vweird.f32 %v4884_v30  ;;  %vm4933_vm8 = vcmp.eq.f32.partialorder %v1608_v59, 8.507059e+37 }
  0xd9   : > { %v1592_v9 = vsel %vm1591_vm5, %v3941_v35, %v1588_v0  ;;  %3960 = vrcp.f32 %v4922_v4  ;;  %v1611_v14 = vor.u32 1.1754944e-38, %v1610_v3  ;;  %vm1619_vm9 = vweird.f32 %v4905_v48 }
  0xda   : > { %v3953_v11 = vpop.eup %3952  ;;  %v1597_v5 = vsel %vm1594_vm6, %v1596_v51, %v1592_v9  ;;  %v1601_v12 = vsub.f32 1.0, %v1600_v6  ;;  %v460_v15 = vadd.f32 %v459_v7, %v4706_v57  ;;  %vm1605_vm10 = vweird.f32 %v3949_v63 }
  0xdb   : > { %v3955_v62 = vpop.eup %3954  ;;  %3281 = vst [vmem:[%s4783_s25 + $0x80] sm:$0xff] %v1597_v5  ;;  %v1638_v61 = vand.u32 2147483647, %v4919_v38  ;;  %vm4941_vm11 = vcmp.eq.f32.partialorder %v1623_v10, 8.507059e+37  ;;  %v1626_v20 = vor.u32 1.1754944e-38, %v1625_v60  ;;  %v1640_v21 = vand.u32 2147483648, %v4919_v38  ;;  %vm1606_vm13 = vmor %vm1604_vm7, %vm1605_vm10 }
  0xdc   : > { %v1602_v16 = vmul.f32 %v3949_v63, %v1601_v12  ;;  %v1615_v18 = vmul.f32 %v3955_v62, %v4905_v48  ;;  %v3957_v19 = vpop.eup %3956  ;;  %v4946_v22 = vadd.f32 1.0, %v3951_v8  ;;  %vm1634_vm12 = vweird.f32 %v4919_v38  ;;  %v557_v48 = vpop.f32.mrf.mxu2 }
  0xdd   : > { %v4949_v25 = vadd.f32 1.0, %v3953_v11  ;;  %vm1620_vm14 = vweird.f32 %v3955_v62  ;;  %vm1709_vm15 = vweird.f32 %v4922_v4  ;;  %v1713_v28 = vand.u32 2147483647, %v4922_v4 }
  0xde   : > { %v1603_v23 = vadd.f32 %v3949_v63, %v1602_v16  ;;  %v1616_v24 = vsub.f32 1.0, %v1615_v18  ;;  %v3959_v27 = vpop.eup %3958  ;;  %v1715_v29 = vand.u32 2147483648, %v4922_v4  ;;  %3962 = vrcp.f32 %v4946_v22  ;;  %vm1621_vm2 = vmor %vm1619_vm9, %vm1620_vm14 }
  0xdf   : > { %v4957_v32 = vpop.eup %3960  ;;  %v1630_v39 = vmul.f32 %v3959_v27, %v4919_v38  ;;  %vm4960_vm1 = vcmp.eq.f32.partialorder %v1638_v61, 8.507059e+37  ;;  %v4964_v30 = vadd.f32 1.0, %v3957_v19  ;;  %v1641_v43 = vor.u32 1.1754944e-38, %v1640_v21  ;;  %v510_v19 = vpop.f32.mrf.mxu1 }
  0xe0   : > { %v1607_v35 = vsel %vm1606_vm13, %v3949_v63, %v1603_v23  ;;  %v1617_v36 = vmul.f32 %v3955_v62, %v1616_v24  ;;  %v1705_v31 = vmul.f32 %v4957_v32, %v4922_v4  ;;  %v1728_v44 = vand.u32 2147483647, %v4946_v22 }
  0xe1   : > { %v1612_v42 = vsel %vm4933_vm8, %v1611_v14, %v1607_v35  ;;  %v1631_v45 = vsub.f32 1.0, %v1630_v39  ;;  %v1730_v46 = vand.u32 2147483648, %v4946_v22  ;;  %3964 = vrcp.f32 %v4949_v25  ;;  %v461_v14 = vpop.f32.mrf.mxu0 }
  0xe2   : > { %3282 = vst [vmem:[%s4783_s25 + $0x88] sm:$0xff] %v1612_v42  ;;  %v1618_v26 = vadd.f32 %v3955_v62, %v1617_v36  ;;  %3657 = vmatmul.msk.bf16.gmra.mxu0 %vm415_vm0, %v4669_v52  ;;  %v1706_v47 = vsub.f32 1.0, %v1705_v31  ;;  %vm4979_vm3 = vcmp.eq.f32.partialorder %v1713_v28, 8.507059e+37  ;;  %v1716_v50 = vor.u32 1.1754944e-38, %v1715_v29 }
  0xe3   : > { %v3717_v33 = vmul.f32 -1.442695, %v460_v15  ;;  %3665 = vmatmul.msk.bf16.gmra.mxu1 %vm415_vm0, %v4669_v52  ;;  %v1632_v37 = vmul.f32 %v3959_v27, %v1631_v45  ;;  %vm1635_vm4 = vweird.f32 %v3959_v27  ;;  %3966 = vrcp.f32 %v4964_v30 }
  0xe4   : > { %3673 = vmatmul.msk.bf16.gmra.mxu2 %vm415_vm0, %v4669_v52  ;;  %v1622_v34 = vsel %vm1621_vm2, %v3955_v62, %v1618_v26  ;;  %v3963_v55 = vpop.eup %3962  ;;  %v1707_v59 = vmul.f32 %v4957_v32, %v1706_v47  ;;  %vm1710_vm5 = vweird.f32 %v4957_v32  ;;  %vm1724_vm6 = vweird.f32 %v4946_v22  ;;  %vm1636_vm8 = vmor %vm1634_vm12, %vm1635_vm4  ;;  %v559_v42 = vpop.f32.mrf.mxu2 }
  0xe5   : > { %3681 = vmatmul.msk.bf16.gmra.mxu3 %vm415_vm0, %v4669_v52  ;;  %v1627_v56 = vsel %vm4941_vm11, %v1626_v20, %v1622_v34  ;;  %v1633_v63 = vadd.f32 %v3959_v27, %v1632_v37  ;;  %v1720_v0 = vmul.f32 %v3963_v55, %v4946_v22  ;;  %vm4997_vm7 = vcmp.eq.f32.partialorder %v1728_v44, 8.507059e+37  ;;  %vm1711_vm10 = vmor %vm1709_vm15, %vm1710_vm5 }
  0xe6   : > { %3283 = vst [vmem:[%s4783_s25 + $0x90] sm:$0xff] %v1627_v56  ;;  %v1731_v51 = vor.u32 1.1754944e-38, %v1730_v46  ;;  %v1743_v52 = vand.u32 2147483647, %v4949_v25  ;;  %v1708_v6 = vadd.f32 %v4957_v32, %v1707_v59  ;;  %vm1739_vm9 = vweird.f32 %v4949_v25 }
  0xe7   : > { %v1745_v7 = vand.u32 2147483648, %v4949_v25  ;;  %3968 = vpow2.f32 %v3717_v33  ;;  %v509_v8 = vadd.f32 %v508_v41, %v4708_v58  ;;  %v3965_v9 = vpop.eup %3964  ;;  %v1637_v10 = vsel %vm1636_vm8, %v3959_v27, %v1633_v63 }
  0xe8   : > { %v1721_v60 = vsub.f32 1.0, %v1720_v0  ;;  %vm1725_vm11 = vweird.f32 %v3963_v55  ;;  %v558_v38 = vadd.f32 %v557_v48, %v4718_v1  ;;  %v1642_v11 = vsel %vm4960_vm1, %v1641_v43, %v1637_v10  ;;  %v608_v48 = vpop.f32.mrf.mxu3 }
  0xe9   : > { %v1712_v5 = vsel %vm1711_vm10, %v4957_v32, %v1708_v6  ;;  %v1735_v12 = vmul.f32 %v3965_v9, %v4949_v25  ;;  %vm1754_vm12 = vweird.f32 %v4964_v30  ;;  %v1758_v62 = vand.u32 2147483647, %v4964_v30  ;;  %v3967_v4 = vpop.eup %3966  ;;  %3284 = vst [vmem:[%s4783_s25 + $0x98] sm:$0xff] %v1642_v11  ;;  %vm1726_vm14 = vmor %vm1724_vm6, %vm1725_vm11  ;;  %v464_v59 = vpop.f32.mrf.mxu0 }
  0xea   : > { %v1717_v15 = vsel %vm4979_vm3, %v1716_v50, %v1712_v5  ;;  %v1722_v16 = vmul.f32 %v3963_v55, %v1721_v60  ;;  %v1760_v18 = vand.u32 2147483648, %v4964_v30  ;;  %v3718_v61 = vmul.f32 -1.442695, %v509_v8 }
  0xeb   : > { %3289 = vst [vmem:[%s4783_s25 + $0xc0] sm:$0xff] %v1717_v15  ;;  %v1736_v17 = vsub.f32 1.0, %v1735_v12  ;;  %vm1740_vm13 = vweird.f32 %v3965_v9  ;;  %v1750_v20 = vmul.f32 %v3967_v4, %v4964_v30  ;;  %v3719_v21 = vmul.f32 -1.442695, %v558_v38 }
  0xec   : > { %v1723_v23 = vadd.f32 %v3963_v55, %v1722_v16  ;;  %3970 = vpow2.f32 %v3718_v61  ;;  %v607_v24 = vadd.f32 %v606_v13, %v4722_v2  ;;  %v462_v27 = vadd.f32 %v461_v14, %v4706_v57  ;;  %vm1741_vm1 = vmor %vm1739_vm9, %vm1740_vm13 }
  0xed   : > { %v3969_v28 = vpop.eup %3968  ;;  %v1737_v29 = vmul.f32 %v3965_v9, %v1736_v17  ;;  %v1751_v32 = vsub.f32 1.0, %v1750_v20  ;;  %3972 = vpow2.f32 %v3719_v21  ;;  %v511_v35 = vadd.f32 %v510_v19, %v4708_v58 }
  0xee   : > { %v1727_v36 = vsel %vm1726_vm14, %v3963_v55, %v1723_v23  ;;  %v5032_v39 = vadd.f32 1.0, %v3969_v28  ;;  %v3720_v40 = vmul.f32 -1.442695, %v607_v24  ;;  %v3725_v41 = vmul.f32 -1.442695, %v462_v27 }
  0xef   : > { %v1732_v43 = vsel %vm4997_vm7, %v1731_v51, %v1727_v36  ;;  %v1738_v31 = vadd.f32 %v3965_v9, %v1737_v29  ;;  %v1752_v44 = vmul.f32 %v3967_v4, %v1751_v32  ;;  %vm1755_vm15 = vweird.f32 %v3967_v4 }
  0xf0   : > { %3290 = vst [vmem:[%s4783_s25 + $0xc8] sm:$0xff] %v1732_v43  ;;  %vm1744_vm2 = vcmp.eq.f32.partialorder %v1743_v52, 8.507059e+37  ;;  %v1746_v22 = vor.u32 1.1754944e-38, %v1745_v7  ;;  %3974 = vrcp.f32 %v5032_v39  ;;  %v3726_v26 = vmul.f32 -1.442695, %v511_v35  ;;  %vm1756_vm3 = vmor %vm1754_vm12, %vm1755_vm15  ;;  %v5109_v43 = vpop.f32.mrf.mxu1 }
  0xf1   : > { %v1742_v45 = vsel %vm1741_vm1, %v3965_v9, %v1738_v31  ;;  %v1753_v46 = vadd.f32 %v3967_v4, %v1752_v44  ;;  %3976 = vpow2.f32 %v3720_v40  ;;  %v560_v47 = vadd.f32 %v559_v42, %v4718_v1 }
  0xf2   : > { %v3971_v49 = vpop.eup %3970  ;;  %v1747_v50 = vsel %vm1744_vm2, %v1746_v22, %v1742_v45  ;;  %v1761_v33 = vor.u32 1.1754944e-38, %v1760_v18  ;;  %3978 = vpow2.f32 %v3725_v41  ;;  %3658 = vmatmul.msk.bf16.gmra.mxu0 %vm415_vm0, %v4680_v53  ;;  %vm1759_vm4 = vcmp.eq.f32.partialorder %v1758_v62, 8.507059e+37 }
  0xf3   : > { %v3973_v25 = vpop.eup %3972  ;;  %3291 = vst [vmem:[%s4783_s25 + $0xd0] sm:$0xff] %v1747_v50  ;;  %v1757_v34 = vsel %vm1756_vm3, %v3967_v4, %v1753_v46  ;;  %v5047_v37 = vadd.f32 1.0, %v3971_v49  ;;  %3666 = vmatmul.msk.bf16.gmra.mxu1 %vm415_vm0, %v4680_v53  ;;  %3980 = vpow2.f32 %v3726_v26  ;;  %v3727_v56 = vmul.f32 -1.442695, %v560_v47 }
  0xf4   : > { %3674 = vmatmul.msk.bf16.gmra.mxu2 %vm415_vm0, %v4680_v53  ;;  %v1762_v30 = vsel %vm1759_vm4, %v1761_v33, %v1757_v34  ;;  %v5053_v55 = vadd.f32 1.0, %v3973_v25  ;;  %v1833_v63 = vand.u32 2147483647, %v5032_v39  ;;  %v1835_v3 = vand.u32 2147483648, %v5032_v39 }
  0xf5   : > { %3682 = vmatmul.msk.bf16.gmra.mxu3 %vm415_vm0, %v4680_v53  ;;  %3292 = vst [vmem:[%s4783_s25 + $0xd8] sm:$0xff] %v1762_v30  ;;  %3982 = vrcp.f32 %v5047_v37  ;;  %v609_v51 = vadd.f32 %v608_v48, %v4722_v2  ;;  %vm1829_vm5 = vweird.f32 %v5032_v39  ;;  %v1848_v7 = vand.u32 2147483647, %v5047_v37  ;;  %v5146_v30 = vpop.f32.mrf.mxu2 }
  0xf6   : > { %v3975_v0 = vpop.eup %3974  ;;  %3984 = vrcp.f32 %v5053_v55  ;;  %v465_v53 = vadd.f32 %v464_v59, %v4706_v57  ;;  %v1850_v9 = vand.u32 2147483648, %v5047_v37  ;;  %v1865_v10 = vand.u32 2147483648, %v5053_v55 }
  0xf7   : > { %v3977_v52 = vpop.eup %3976  ;;  %v1825_v6 = vmul.f32 %v3975_v0, %v5032_v39  ;;  %3986 = vpow2.f32 %v3727_v56  ;;  %vm5071_vm6 = vcmp.eq.f32.partialorder %v1833_v63, 8.507059e+37  ;;  %v1863_v5 = vand.u32 2147483647, %v5053_v55 }
  0xf8   : > { %v3979_v8 = vpop.eup %3978  ;;  %v5069_v60 = vadd.f32 1.0, %v3977_v52  ;;  %v1836_v13 = vor.u32 1.1754944e-38, %v1835_v3  ;;  %vm1844_vm7 = vweird.f32 %v5047_v37  ;;  %v3728_v14 = vmul.f32 -1.442695, %v609_v51  ;;  %v4416_v3 = vld [vmem:[%s4622_s21 + $0x30] sm:$0xff] }
  0xf9   : > { %v1826_v38 = vsub.f32 1.0, %v1825_v6  ;;  %v5076_v12 = vadd.f32 1.0, %v3979_v8  ;;  %v3981_v62 = vpop.eup %3980  ;;  %vm1830_vm8 = vweird.f32 %v3975_v0  ;;  %vm1859_vm9 = vweird.f32 %v5053_v55 }
  0xfa   : > { %3988 = vrcp.f32 %v5069_v60  ;;  %v3733_v16 = vmul.f32 -1.442695, %v465_v53  ;;  %vm5088_vm10 = vcmp.eq.f32.partialorder %v1848_v7, 8.507059e+37  ;;  %v1851_v17 = vor.u32 1.1754944e-38, %v1850_v9  ;;  %vm1831_vm12 = vmor %vm1829_vm5, %vm1830_vm8  ;;  %v611_v9 = vpop.f32.mrf.mxu3 }
  0xfb   : > { %v5080_v4 = vpop.eup %3982  ;;  %v1827_v15 = vmul.f32 %v3975_v0, %v1826_v38  ;;  %3990 = vrcp.f32 %v5076_v12  ;;  %v1866_v20 = vor.u32 1.1754944e-38, %v1865_v10  ;;  %v1878_v21 = vand.u32 2147483647, %v5069_v60 }
  0xfc   : > { %v5084_v18 = vpop.eup %3984  ;;  %v1840_v61 = vmul.f32 %v5080_v4, %v5047_v37  ;;  %vm5095_vm11 = vcmp.eq.f32.partialorder %v1863_v5, 8.507059e+37  ;;  %v1880_v28 = vand.u32 2147483648, %v5069_v60  ;;  %v1953_v29 = vand.u32 2147483647, %v5076_v12 }
  0xfd   : > { %v1828_v23 = vadd.f32 %v3975_v0, %v1827_v15  ;;  %v1855_v24 = vmul.f32 %v5084_v18, %v5053_v55  ;;  %v3987_v32 = vpop.eup %3986  ;;  %vm1845_vm13 = vweird.f32 %v5080_v4  ;;  %v5105_v36 = vadd.f32 1.0, %v3981_v62 }
  0xfe   : > { %v1841_v35 = vsub.f32 1.0, %v1840_v61  ;;  %3992 = vpow2.f32 %v3728_v14  ;;  %v5107_v42 = vadd.f32 1.0, %v3987_v32  ;;  %v1955_v22 = vand.u32 2147483648, %v5076_v12  ;;  %vm5140_vm3 = vmor %vm1844_vm7, %vm1845_vm13  ;;  %v515_v61 = vpop.f32.mrf.mxu1 }
  0xff   : > { %v1832_v40 = vsel %vm1831_vm12, %v3975_v0, %v1828_v23  ;;  %v1856_v41 = vsub.f32 1.0, %v1855_v24  ;;  %3994 = vpow2.f32 %v3733_v16  ;;  %vm1860_vm14 = vweird.f32 %v5084_v18 }
 0x100   : > { %v5111_v31 = vpop.eup %3988  ;;  %v1837_v39 = vsel %vm5071_vm6, %v1836_v13, %v1832_v40  ;;  %v1842_v44 = vmul.f32 %v5080_v4, %v1841_v35  ;;  %3996 = vrcp.f32 %v5105_v36  ;;  %vm1874_vm15 = vweird.f32 %v5069_v60  ;;  %vm1861_vm4 = vmor %vm1859_vm9, %vm1860_vm14  ;;  %v564_v40 = vpop.f32.mrf.mxu2 }
 0x101   : > { %v5118_v26 = vpop.eup %3990  ;;  %3297 = vst [vmem:[%s4783_s25 + $0x100] sm:$0xff] %v1837_v39  ;;  %v1857_v45 = vmul.f32 %v5084_v18, %v1856_v41  ;;  %v1870_v46 = vmul.f32 %v5111_v31, %v5069_v60  ;;  %vm5127_vm1 = vcmp.eq.f32.partialorder %v1878_v21, 8.507059e+37  ;;  %vm1949_vm2 = vweird.f32 %v5076_v12 }
 0x102   : > { %v1843_v47 = vadd.f32 %v5080_v4, %v1842_v44  ;;  %v1945_v50 = vmul.f32 %v5118_v26, %v5076_v12  ;;  %3659 = vmatmul.msk.bf16.gmra.mxu0 %vm415_vm0, %v4691_v54  ;;  %v1881_v48 = vor.u32 1.1754944e-38, %v1880_v28  ;;  %3998 = vrcp.f32 %v5107_v42  ;;  %v613_v33 = vpop.f32.mrf.mxu3 }
 0x103   : > { %v1858_v25 = vadd.f32 %v5084_v18, %v1857_v45  ;;  %v1871_v34 = vsub.f32 1.0, %v1870_v46  ;;  %3667 = vmatmul.msk.bf16.gmra.mxu1 %vm415_vm0, %v4691_v54  ;;  %vm5159_vm5 = vcmp.eq.f32.partialorder %v1953_v29, 8.507059e+37  ;;  %v1956_v0 = vor.u32 1.1754944e-38, %v1955_v22 }
 0x104   : > { %3675 = vmatmul.msk.bf16.gmra.mxu2 %vm415_vm0, %v4691_v54  ;;  %v3993_v37 = vpop.eup %3992  ;;  %v1847_v56 = vsel %vm5140_vm3, %v5080_v4, %v1843_v47  ;;  %v1946_v59 = vsub.f32 1.0, %v1945_v50  ;;  %vm1875_vm6 = vweird.f32 %v5111_v31  ;;  %vm1950_vm7 = vweird.f32 %v5118_v26  ;;  %v466_v4 = vpop.f32.mrf.mxu0 }
 0x105   : > { %3683 = vmatmul.msk.bf16.gmra.mxu3 %vm415_vm0, %v4416_v3  ;;  %v3995_v54 = vpop.eup %3994  ;;  %v1852_v51 = vsel %vm5088_vm10, %v1851_v17, %v1847_v56  ;;  %v1862_v52 = vsel %vm1861_vm4, %v5084_v18, %v1858_v25  ;;  %v1872_v6 = vmul.f32 %v5111_v31, %v1871_v34  ;;  %v1968_v8 = vand.u32 2147483647, %v5105_v36  ;;  %vm1876_vm9 = vmor %vm1874_vm15, %vm1875_vm6 }
 0x106   : > { %v3997_v55 = vpop.eup %3996  ;;  %3298 = vst [vmem:[%s4783_s25 + $0x108] sm:$0xff] %v1852_v51  ;;  %v1867_v7 = vsel %vm5095_vm11, %v1866_v20, %v1862_v52  ;;  %v1947_v53 = vmul.f32 %v5118_v26, %v1946_v59  ;;  %vm1964_vm8 = vweird.f32 %v5105_v36  ;;  %v5180_v11 = vadd.f32 1.0, %v3993_v37  ;;  %vm1951_vm10 = vmor %vm1949_vm2, %vm1950_vm7  ;;  %v518_v52 = vpop.f32.mrf.mxu1 }
 0x107   : > { %3299 = vst [vmem:[%s4783_s25 + $0x110] sm:$0xff] %v1867_v7  ;;  %v1873_v10 = vadd.f32 %v5111_v31, %v1872_v6  ;;  %v1960_v38 = vmul.f32 %v3997_v55, %v5105_v36  ;;  %v1970_v62 = vand.u32 2147483648, %v5105_v36  ;;  %v1983_v13 = vand.u32 2147483647, %v5107_v42 }
 0x108   : > { %v1948_v5 = vadd.f32 %v5118_v26, %v1947_v53  ;;  %v5187_v14 = vadd.f32 1.0, %v3995_v54  ;;  %v3999_v15 = vpop.eup %3998  ;;  %v1985_v18 = vand.u32 2147483648, %v5107_v42  ;;  %4000 = vrcp.f32 %v5180_v11  ;;  %v4417_v54 = vld [vmem:[%s4622_s21 + $0x38] sm:$0xff] }
 0x109   : > { %v1877_v16 = vsel %vm1876_vm9, %v5111_v31, %v1873_v10  ;;  %v1961_v60 = vsub.f32 1.0, %v1960_v38  ;;  %vm5199_vm11 = vcmp.eq.f32.partialorder %v1968_v8, 8.507059e+37  ;;  %v1975_v21 = vmul.f32 %v3999_v15, %v5107_v42 }
 0x10a   : > { %v1882_v19 = vsel %vm5127_vm1, %v1881_v48, %v1877_v16  ;;  %v1952_v17 = vsel %vm1951_vm10, %v5118_v26, %v1948_v5  ;;  %vm1965_vm12 = vweird.f32 %v3997_v55  ;;  %vm1979_vm13 = vweird.f32 %v5107_v42 }
 0x10b   : > { %3300 = vst [vmem:[%s4783_s25 + $0x118] sm:$0xff] %v1882_v19  ;;  %v1957_v12 = vsel %vm5159_vm5, %v1956_v0, %v1952_v17  ;;  %v1962_v23 = vmul.f32 %v3997_v55, %v1961_v60  ;;  %v1971_v24 = vor.u32 1.1754944e-38, %v1970_v62  ;;  %v1976_v27 = vsub.f32 1.0, %v1975_v21  ;;  %vm1966_vm1 = vmor %vm1964_vm8, %vm1965_vm12  ;;  %v616_v21 = vpop.f32.mrf.mxu3 }
 0x10c   : > { %3305 = vst [vmem:[%s4783_s25 + $0x140] sm:$0xff] %v1957_v12  ;;  %v2000_v28 = vand.u32 2147483648, %v5180_v11  ;;  %4002 = vrcp.f32 %v5187_v14  ;;  %vm1980_vm14 = vweird.f32 %v3999_v15  ;;  %vm5211_vm15 = vcmp.eq.f32.partialorder %v1983_v13, 8.507059e+37  ;;  %v469_v3 = vpop.f32.mrf.mxu0 }
 0x10d   : > { %v1963_v29 = vadd.f32 %v3997_v55, %v1962_v23  ;;  %v1986_v35 = vor.u32 1.1754944e-38, %v1985_v18  ;;  %v1977_v41 = vmul.f32 %v3999_v15, %v1976_v27  ;;  %vm1994_vm2 = vweird.f32 %v5180_v11  ;;  %vm1981_vm4 = vmor %vm1979_vm13, %vm1980_vm14 }
 0x10e   : > { %v1998_v31 = vand.u32 2147483647, %v5180_v11  ;;  %v514_v39 = vadd.f32 %v5109_v43, %v4708_v58  ;;  %v563_v44 = vadd.f32 %v5146_v30, %v4718_v1  ;;  %v4001_v22 = vpop.eup %4000  ;;  %vm2069_vm3 = vweird.f32 %v5187_v14 }
 0x10f   : > { %v1967_v26 = vsel %vm1966_vm1, %v3997_v55, %v1963_v29  ;;  %v2073_v45 = vand.u32 2147483647, %v5187_v14  ;;  %v612_v36 = vadd.f32 %v611_v9, %v4722_v2  ;;  %v467_v46 = vadd.f32 %v466_v4, %v4706_v57  ;;  %v567_v4 = vpop.f32.mrf.mxu2 }
 0x110   : > { %v1972_v47 = vsel %vm5199_vm11, %v1971_v24, %v1967_v26  ;;  %v1978_v49 = vadd.f32 %v3999_v15, %v1977_v41  ;;  %v1990_v43 = vmul.f32 %v4001_v22, %v5180_v11  ;;  %v2001_v50 = vor.u32 1.1754944e-38, %v2000_v28 }
 0x111   : > { %3306 = vst [vmem:[%s4783_s25 + $0x148] sm:$0xff] %v1972_v47  ;;  %v3734_v25 = vmul.f32 -1.442695, %v514_v39  ;;  %v3735_v34 = vmul.f32 -1.442695, %v563_v44  ;;  %v516_v48 = vadd.f32 %v515_v61, %v4708_v58  ;;  %v565_v30 = vadd.f32 %v564_v40, %v4718_v1  ;;  %v520_v40 = vpop.f32.mrf.mxu1 }
 0x112   : > { %v4003_v37 = vpop.eup %4002  ;;  %v1982_v56 = vsel %vm1981_vm4, %v3999_v15, %v1978_v49  ;;  %v1991_v59 = vsub.f32 1.0, %v1990_v43  ;;  %v3736_v63 = vmul.f32 -1.442695, %v612_v36  ;;  %v3741_v0 = vmul.f32 -1.442695, %v467_v46  ;;  %3660 = vmatmul.msk.bf16.gmra.mxu0 %vm415_vm0, %v4417_v54 }
 0x113   : > { %v1987_v42 = vsel %vm5211_vm15, %v1986_v35, %v1982_v56  ;;  %vm1995_vm5 = vweird.f32 %v4001_v22  ;;  %v2065_v51 = vmul.f32 %v4003_v37, %v5187_v14  ;;  %4004 = vpow2.f32 %v3734_v25  ;;  %3668 = vmatmul.msk.bf16.gmra.mxu1 %vm415_vm0, %v4417_v54 }
 0x114   : > { %3676 = vmatmul.msk.bf16.gmra.mxu2 %vm415_vm0, %v4417_v54  ;;  %3307 = vst [vmem:[%s4783_s25 + $0x150] sm:$0xff] %v1987_v42  ;;  %v1992_v6 = vmul.f32 %v4001_v22, %v1991_v59  ;;  %4006 = vpow2.f32 %v3735_v34  ;;  %v3742_v55 = vmul.f32 -1.442695, %v516_v48  ;;  %v3743_v7 = vmul.f32 -1.442695, %v565_v30  ;;  %vm1996_vm7 = vmor %vm1994_vm2, %vm1995_vm5 }
 0x115   : > { %3684 = vmatmul.msk.bf16.gmra.mxu3 %vm415_vm0, %v4417_v54  ;;  %v2066_v53 = vsub.f32 1.0, %v2065_v51  ;;  %v2075_v8 = vand.u32 2147483648, %v5187_v14  ;;  %4008 = vpow2.f32 %v3736_v63  ;;  %v614_v9 = vadd.f32 %v613_v33, %v4722_v2  ;;  %v471_v14 = vpop.f32.mrf.mxu0 }
 0x116   : > { %v1993_v10 = vadd.f32 %v4001_v22, %v1992_v6  ;;  %vm2070_vm6 = vweird.f32 %v4003_v37  ;;  %4010 = vpow2.f32 %v3741_v0  ;;  %v470_v38 = vadd.f32 %v469_v3, %v4706_v57 }
 0x117   : > { %v2067_v5 = vmul.f32 %v4003_v37, %v2066_v53  ;;  %4012 = vpow2.f32 %v3742_v55  ;;  %v3744_v62 = vmul.f32 -1.442695, %v614_v9  ;;  %v519_v13 = vadd.f32 %v518_v52, %v4708_v58  ;;  %vm2071_vm9 = vmor %vm2069_vm3, %vm2070_vm6 }
 0x118   : > { %v1997_v15 = vsel %vm1996_vm7, %v4001_v22, %v1993_v10  ;;  %vm1999_vm0 = vcmp.eq.f32.partialorder %v1998_v31, 8.507059e+37  ;;  %4014 = vpow2.f32 %v3743_v7  ;;  %vm2074_vm8 = vcmp.eq.f32.partialorder %v2073_v45, 8.507059e+37 }
 0x119   : > { %v4005_v16 = vpop.eup %4004  ;;  %v2002_v60 = vsel %vm1999_vm0, %v2001_v50, %v1997_v15  ;;  %v2068_v18 = vadd.f32 %v4003_v37, %v2067_v5  ;;  %v2076_v11 = vor.u32 1.1754944e-38, %v2075_v8  ;;  %v3749_v17 = vmul.f32 -1.442695, %v470_v38 }
 0x11a   : > { %v4007_v61 = vpop.eup %4006  ;;  %3308 = vst [vmem:[%s4783_s25 + $0x158] sm:$0xff] %v2002_v60  ;;  %v5256_v19 = vadd.f32 1.0, %v4005_v16  ;;  %v568_v20 = vadd.f32 %v567_v4, %v4718_v1  ;;  %4016 = vpow2.f32 %v3744_v62  ;;  %v3750_v27 = vmul.f32 -1.442695, %v519_v13 }
 0x11b   : > { %v4009_v12 = vpop.eup %4008  ;;  %v2072_v23 = vsel %vm2071_vm9, %v4003_v37, %v2068_v18  ;;  %v5259_v24 = vadd.f32 1.0, %v4007_v61  ;;  %v617_v35 = vadd.f32 %v616_v21, %v4722_v2  ;;  %v5275_v45 = vadd.f32 %v471_v14, %v4706_v57 }
 0x11c   : > { %v4011_v28 = vpop.eup %4010  ;;  %v2077_v29 = vsel %vm2074_vm8, %v2076_v11, %v2072_v23  ;;  %4018 = vrcp.f32 %v5256_v19  ;;  %v5265_v31 = vadd.f32 1.0, %v4009_v12  ;;  %v5269_v44 = vmul.f32 -1.442695, %v568_v20 }
 0x11d   : > { %v4013_v32 = vpop.eup %4012  ;;  %3313 = vst [vmem:[%s4783_s25 + $0x180] sm:$0xff] %v2077_v29  ;;  %4020 = vrcp.f32 %v5259_v24  ;;  %v5267_v39 = vadd.f32 1.0, %v4011_v28  ;;  %v2088_v22 = vand.u32 2147483647, %v5256_v19  ;;  %v2090_v36 = vand.u32 2147483648, %v5256_v19 }
 0x11e   : > { %v4015_v41 = vpop.eup %4014  ;;  %4022 = vpow2.f32 %v3749_v17  ;;  %v5272_v26 = vadd.f32 1.0, %v4013_v32  ;;  %v2103_v46 = vand.u32 2147483647, %v5259_v24  ;;  %v5281_v47 = vadd.f32 %v520_v40, %v4708_v58 }
 0x11f   : > { %4024 = vpow2.f32 %v3750_v27  ;;  %v2105_v43 = vand.u32 2147483648, %v5259_v24  ;;  %v5285_v50 = vadd.f32 1.0, %v4015_v41  ;;  %v5287_v33 = vmul.f32 -1.442695, %v617_v35 }
 0x120   : > { %4026 = vrcp.f32 %v5265_v31  ;;  %v4017_v49 = vpop.eup %4016  ;;  %vm2084_vm10 = vweird.f32 %v5256_v19  ;;  %vm2099_vm11 = vweird.f32 %v5259_v24  ;;  %v2120_v34 = vand.u32 2147483648, %v5265_v31 }
 0x121   : > { %4028 = vrcp.f32 %v5267_v39  ;;  %vm5294_vm12 = vcmp.eq.f32.partialorder %v2088_v22, 8.507059e+37  ;;  %v2118_v56 = vand.u32 2147483647, %v5265_v31  ;;  %v2195_v59 = vand.u32 2147483648, %v5267_v39 }
 0x122   : > { %v4019_v25 = vpop.eup %4018  ;;  %4030 = vrcp.f32 %v5272_v26  ;;  %v2091_v0 = vor.u32 1.1754944e-38, %v2090_v36  ;;  %vm5301_vm13 = vcmp.eq.f32.partialorder %v2103_v46, 8.507059e+37  ;;  %v2193_v42 = vand.u32 2147483647, %v5267_v39 }
 0x123   : > { %v4021_v48 = vpop.eup %4020  ;;  %v2080_v30 = vmul.f32 %v4019_v25, %v5256_v19  ;;  %v2106_v6 = vor.u32 1.1754944e-38, %v2105_v43  ;;  %vm2114_vm14 = vweird.f32 %v5265_v31  ;;  %4032 = vrcp.f32 %v5285_v50 }
 0x124   : > { %v4023_v63 = vpop.eup %4022  ;;  %v2095_v3 = vmul.f32 %v4021_v48, %v5259_v24  ;;  %vm2085_vm15 = vweird.f32 %v4019_v25  ;;  %vm2100_vm1 = vweird.f32 %v4021_v48  ;;  %v2121_v53 = vor.u32 1.1754944e-38, %v2120_v34 }
 0x125   : > { %v5306_v51 = vpop.eup %4024  ;;  %v2081_v52 = vsub.f32 1.0, %v2080_v30  ;;  %vm2189_vm2 = vweird.f32 %v5267_v39  ;;  %vm5312_vm3 = vcmp.eq.f32.partialorder %v2118_v56, 8.507059e+37  ;;  %v2196_v5 = vor.u32 1.1754944e-38, %v2195_v59  ;;  %vm2086_vm7 = vmor %vm2084_vm10, %vm2085_vm15 }
 0x126   : > { %v4027_v55 = vpop.eup %4026  ;;  %v2096_v7 = vsub.f32 1.0, %v2095_v3  ;;  %vm2204_vm4 = vweird.f32 %v5272_v26  ;;  %v2208_v62 = vand.u32 2147483647, %v5272_v26  ;;  %vm5319_vm5 = vcmp.eq.f32.partialorder %v2193_v42, 8.507059e+37  ;;  %vm2101_vm8 = vmor %vm2099_vm11, %vm2100_vm1 }
 0x127   : > { %v4029_v8 = vpop.eup %4028  ;;  %v2082_v9 = vmul.f32 %v4019_v25, %v2081_v52  ;;  %v2110_v10 = vmul.f32 %v4027_v55, %v5265_v31  ;;  %v2210_v60 = vand.u32 2147483648, %v5272_v26  ;;  %v2223_v18 = vand.u32 2147483647, %v5285_v50 }
 0x128   : > { %v4031_v13 = vpop.eup %4030  ;;  %v2097_v4 = vmul.f32 %v4021_v48, %v2096_v7  ;;  %v2185_v15 = vmul.f32 %v4029_v8, %v5267_v39  ;;  %vm2115_vm6 = vweird.f32 %v4027_v55  ;;  %vm2190_vm0 = vweird.f32 %v4029_v8 }
 0x129   : > { %v2083_v61 = vadd.f32 %v4019_v25, %v2082_v9  ;;  %v2111_v11 = vsub.f32 1.0, %v2110_v10  ;;  %v2200_v17 = vmul.f32 %v4031_v13, %v5272_v26  ;;  %v5329_v12 = vadd.f32 1.0, %v4017_v49  ;;  %v4033_v23 = vpop.eup %4032  ;;  %vm2116_vm10 = vmor %vm2114_vm14, %vm2115_vm6 }
 0x12a   : > { %v2098_v20 = vadd.f32 %v4021_v48, %v2097_v4  ;;  %v2186_v21 = vsub.f32 1.0, %v2185_v15  ;;  %v5334_v14 = vadd.f32 1.0, %v4023_v63  ;;  %v2215_v40 = vmul.f32 %v4033_v23, %v5285_v50  ;;  %vm2191_vm11 = vmor %vm2189_vm2, %vm2190_vm0 }
 0x12b   : > { %v2087_v27 = vsel %vm2086_vm7, %v4019_v25, %v2083_v61  ;;  %v2112_v28 = vmul.f32 %v4027_v55, %v2111_v11  ;;  %v2201_v29 = vsub.f32 1.0, %v2200_v17  ;;  %vm2205_vm9 = vweird.f32 %v4031_v13  ;;  %v618_v61 = vpop.f32.mrf.mxu3 }
 0x12c   : > { %v2092_v19 = vsel %vm5294_vm12, %v2091_v0, %v2087_v27  ;;  %v2102_v32 = vsel %vm2101_vm8, %v4021_v48, %v2098_v20  ;;  %v2187_v35 = vmul.f32 %v4029_v8, %v2186_v21  ;;  %v2216_v46 = vsub.f32 1.0, %v2215_v40  ;;  %v474_v21 = vpop.f32.mrf.mxu0 }
 0x12d   : > { %3314 = vst [vmem:[%s4783_s25 + $0x188] sm:$0xff] %v2092_v19  ;;  %v2107_v41 = vsel %vm5301_vm13, %v2106_v6, %v2102_v32  ;;  %v2113_v22 = vadd.f32 %v4027_v55, %v2112_v28  ;;  %v2202_v36 = vmul.f32 %v4031_v13, %v2201_v29  ;;  %v2225_v49 = vand.u32 2147483648, %v5285_v50  ;;  %vm2206_vm13 = vmor %vm2204_vm4, %vm2205_vm9 }
 0x12e   : > { %3315 = vst [vmem:[%s4783_s25 + $0x190] sm:$0xff] %v2107_v41  ;;  %v2188_v24 = vadd.f32 %v4029_v8, %v2187_v35  ;;  %4034 = vrcp.f32 %v5329_v12  ;;  %v2211_v34 = vor.u32 1.1754944e-38, %v2210_v60  ;;  %vm2220_vm12 = vweird.f32 %v4033_v23 }
 0x12f   : > { %v2117_v43 = vsel %vm2116_vm10, %v4027_v55, %v2113_v22  ;;  %v2203_v25 = vadd.f32 %v4031_v13, %v2202_v36  ;;  %v2217_v30 = vmul.f32 %v4033_v23, %v2216_v46  ;;  %4036 = vrcp.f32 %v5334_v14  ;;  %v569_v55 = vpop.f32.mrf.mxu2  ;;  %v523_v22 = vpop.f32.mrf.mxu1 }
 0x130   : > { %v2122_v31 = vsel %vm5312_vm3, %v2121_v53, %v2117_v43  ;;  %v2192_v48 = vsel %vm2191_vm11, %v4029_v8, %v2188_v24  ;;  %vm2209_vm14 = vcmp.eq.f32.partialorder %v2208_v62, 8.507059e+37  ;;  %vm2219_vm15 = vweird.f32 %v5285_v50 }
 0x131   : > { %3316 = vst [vmem:[%s4783_s25 + $0x198] sm:$0xff] %v2122_v31  ;;  %v2197_v37 = vsel %vm5319_vm5, %v2196_v5, %v2192_v48  ;;  %v2207_v39 = vsel %vm2206_vm13, %v4031_v13, %v2203_v25  ;;  %v2218_v59 = vadd.f32 %v4033_v23, %v2217_v30  ;;  %v2226_v63 = vor.u32 1.1754944e-38, %v2225_v49  ;;  %vm2221_vm1 = vmor %vm2219_vm15, %vm2220_vm12 }
 0x132   : > { %3321 = vst [vmem:[%s4783_s25 + $0x1c0] sm:$0xff] %v2197_v37  ;;  %v2212_v56 = vsel %vm2209_vm14, %v2211_v34, %v2207_v39  ;;  %v2238_v26 = vand.u32 2147483647, %v5329_v12  ;;  %v5365_v0 = vadd.f32 1.0, %v5306_v51  ;;  %4038 = vpow2.f32 %v5269_v44 }
 0x133   : > { %3322 = vst [vmem:[%s4783_s25 + $0x1c8] sm:$0xff] %v2212_v56  ;;  %v3757_v3 = vmul.f32 -1.442695, %v5275_v45  ;;  %v2222_v42 = vsel %vm2221_vm1, %v4033_v23, %v2218_v59  ;;  %vm2224_vm2 = vcmp.eq.f32.partialorder %v2223_v18, 8.507059e+37  ;;  %4040 = vpow2.f32 %v5287_v33 }
 0x134   : > { %v4035_v54 = vpop.eup %4034  ;;  %v3758_v50 = vmul.f32 -1.442695, %v5281_v47  ;;  %v2227_v52 = vsel %vm2224_vm2, %v2226_v63, %v2222_v42  ;;  %vm2234_vm3 = vweird.f32 %v5329_v12  ;;  %v2240_v51 = vand.u32 2147483648, %v5329_v12 }
 0x135   : > { %v2230_v6 = vmul.f32 %v4035_v54, %v5329_v12  ;;  %v4037_v7 = vpop.eup %4036  ;;  %3323 = vst [vmem:[%s4783_s25 + $0x1d0] sm:$0xff] %v2227_v52  ;;  %4042 = vrcp.f32 %v5365_v0  ;;  %vm5376_vm4 = vcmp.eq.f32.partialorder %v2238_v26, 8.507059e+37  ;;  %vm2235_vm5 = vweird.f32 %v4035_v54 }
 0x136   : > { %v2305_v33 = vmul.f32 %v4037_v7, %v5334_v14  ;;  %4044 = vpow2.f32 %v3757_v3  ;;  %v2313_v47 = vand.u32 2147483647, %v5334_v14  ;;  %v2315_v53 = vand.u32 2147483648, %v5334_v14  ;;  %vm2236_vm0 = vmor %vm2234_vm3, %vm2235_vm5 }
 0x137   : > { %v2231_v44 = vsub.f32 1.0, %v2230_v6  ;;  %4046 = vpow2.f32 %v3758_v50  ;;  %v2328_v38 = vand.u32 2147483647, %v5365_v0  ;;  %v570_v5 = vadd.f32 %v569_v55, %v4718_v1  ;;  %v572_v43 = vpop.f32.mrf.mxu2 }
 0x138   : > { %v4039_v8 = vpop.eup %4038  ;;  %v2306_v10 = vsub.f32 1.0, %v2305_v33  ;;  %v2241_v13 = vor.u32 1.1754944e-38, %v2240_v51  ;;  %vm2309_vm6 = vweird.f32 %v5334_v14  ;;  %v2330_v4 = vand.u32 2147483648, %v5365_v0 }
 0x139   : > { %v2232_v9 = vmul.f32 %v4035_v54, %v2231_v44  ;;  %v4041_v62 = vpop.eup %4040  ;;  %v5387_v15 = vadd.f32 1.0, %v4039_v8  ;;  %vm2310_vm7 = vweird.f32 %v4037_v7  ;;  %vm5394_vm8 = vcmp.eq.f32.partialorder %v2313_v47, 8.507059e+37 }
 0x13a   : > { %v2307_v60 = vmul.f32 %v4037_v7, %v2306_v10  ;;  %v5389_v18 = vadd.f32 1.0, %v4041_v62  ;;  %v2316_v20 = vor.u32 1.1754944e-38, %v2315_v53  ;;  %vm2324_vm9 = vweird.f32 %v5365_v0  ;;  %vm2311_vm11 = vmor %vm2309_vm6, %vm2310_vm7 }
 0x13b   : > { %v2233_v16 = vadd.f32 %v4035_v54, %v2232_v9  ;;  %v4043_v11 = vpop.eup %4042  ;;  %4048 = vrcp.f32 %v5387_v15  ;;  %vm5401_vm10 = vcmp.eq.f32.partialorder %v2328_v38, 8.507059e+37  ;;  %v3759_v12 = vmul.f32 -1.442695, %v570_v5 }
 0x13c   : > { %v4045_v23 = vpop.eup %4044  ;;  %v2308_v28 = vadd.f32 %v4037_v7, %v2307_v60  ;;  %v2320_v29 = vmul.f32 %v4043_v11, %v5365_v0  ;;  %v2331_v40 = vor.u32 1.1754944e-38, %v2330_v4  ;;  %4050 = vrcp.f32 %v5389_v18 }
 0x13d   : > { %v2237_v27 = vsel %vm2236_vm0, %v4035_v54, %v2233_v16  ;;  %v4047_v32 = vpop.eup %4046  ;;  %v619_v41 = vadd.f32 %v618_v61, %v4722_v2  ;;  %v2343_v46 = vand.u32 2147483647, %v5387_v15  ;;  %v475_v49 = vadd.f32 %v474_v21, %v4706_v57 }
 0x13e   : > { %v2242_v35 = vsel %vm5376_vm4, %v2241_v13, %v2237_v27  ;;  %v2312_v36 = vsel %vm2311_vm11, %v4037_v7, %v2308_v28  ;;  %v2321_v24 = vsub.f32 1.0, %v2320_v29  ;;  %v2345_v14 = vand.u32 2147483648, %v5387_v15 }
 0x13f   : > { %3324 = vst [vmem:[%s4783_s25 + $0x1d8] sm:$0xff] %v2242_v35  ;;  %v2317_v25 = vsel %vm5394_vm8, %v2316_v20, %v2312_v36  ;;  %v5418_v34 = vadd.f32 1.0, %v4045_v23  ;;  %v5420_v31 = vadd.f32 1.0, %v4047_v32  ;;  %vm2325_vm12 = vweird.f32 %v4043_v11  ;;  %v621_v36 = vpop.f32.mrf.mxu3 }
 0x140   : > { %3329 = vst [vmem:[%s4783_s25 + $0x200] sm:$0xff] %v2317_v25  ;;  %v2322_v48 = vmul.f32 %v4043_v11, %v2321_v24  ;;  %4052 = vpow2.f32 %v3759_v12  ;;  %v524_v30 = vadd.f32 %v523_v22, %v4708_v58  ;;  %v2358_v39 = vand.u32 2147483647, %v5389_v18  ;;  %vm2326_vm14 = vmor %vm2324_vm9, %vm2325_vm12 }
 0x141   : > { %v4049_v37 = vpop.eup %4048  ;;  %v2360_v56 = vand.u32 2147483648, %v5389_v18  ;;  %4054 = vrcp.f32 %v5418_v34  ;;  %v573_v59 = vadd.f32 %v572_v43, %v4718_v1  ;;  %vm2339_vm13 = vweird.f32 %v5387_v15 }
 0x142   : > { %v2323_v63 = vadd.f32 %v4043_v11, %v2322_v48  ;;  %v2335_v26 = vmul.f32 %v4049_v37, %v5387_v15  ;;  %v3760_v3 = vmul.f32 -1.442695, %v619_v41  ;;  %v4051_v54 = vpop.eup %4050  ;;  %vm5432_vm15 = vcmp.eq.f32.partialorder %v2343_v46, 8.507059e+37 }
 0x143   : > { %v2346_v50 = vor.u32 1.1754944e-38, %v2345_v14  ;;  %4056 = vrcp.f32 %v5420_v31  ;;  %v3765_v52 = vmul.f32 -1.442695, %v475_v49  ;;  %v2350_v7 = vmul.f32 %v4051_v54, %v5389_v18 }
 0x144   : > { %v2327_v6 = vsel %vm2326_vm14, %v4043_v11, %v2323_v63  ;;  %v2336_v55 = vsub.f32 1.0, %v2335_v26  ;;  %vm2354_vm1 = vweird.f32 %v5389_v18  ;;  %vm5441_vm2 = vcmp.eq.f32.partialorder %v2358_v39, 8.507059e+37 }
 0x145   : > { %v2332_v51 = vsel %vm5401_vm10, %v2331_v40, %v2327_v6  ;;  %v2361_v44 = vor.u32 1.1754944e-38, %v2360_v56  ;;  %v2433_v45 = vand.u32 2147483647, %v5418_v34  ;;  %vm2340_vm3 = vweird.f32 %v4049_v37 }
 0x146   : > { %v4053_v33 = vpop.eup %4052  ;;  %3330 = vst [vmem:[%s4783_s25 + $0x208] sm:$0xff] %v2332_v51  ;;  %v2337_v47 = vmul.f32 %v4049_v37, %v2336_v55  ;;  %v2351_v53 = vsub.f32 1.0, %v2350_v7  ;;  %vm2429_vm4 = vweird.f32 %v5418_v34  ;;  %4058 = vpow2.f32 %v3760_v3  ;;  %vm2341_vm6 = vmor %vm2339_vm13, %vm2340_vm3 }
 0x147   : > { %v4055_v8 = vpop.eup %4054  ;;  %vm2355_vm5 = vweird.f32 %v4051_v54  ;;  %v2435_v9 = vand.u32 2147483648, %v5418_v34  ;;  %v5449_v10 = vadd.f32 1.0, %v4053_v33  ;;  %4060 = vpow2.f32 %v3765_v52 }
 0x148   : > { %v2338_v38 = vadd.f32 %v4049_v37, %v2337_v47  ;;  %v2352_v5 = vmul.f32 %v4051_v54, %v2351_v53  ;;  %v2425_v62 = vmul.f32 %v4055_v8, %v5418_v34  ;;  %v3766_v13 = vmul.f32 -1.442695, %v524_v30  ;;  %vm2356_vm8 = vmor %vm2354_vm1, %vm2355_vm5  ;;  %v476_v30 = vpop.f32.mrf.mxu0 }
 0x149   : > { %v4057_v4 = vpop.eup %4056  ;;  %vm5454_vm7 = vcmp.eq.f32.partialorder %v2433_v45, 8.507059e+37  ;;  %vm2444_vm0 = vweird.f32 %v5420_v31  ;;  %4062 = vrcp.f32 %v5449_v10  ;;  %v3767_v60 = vmul.f32 -1.442695, %v573_v59 }
 0x14a   : > { %v2342_v61 = vsel %vm2341_vm6, %v4049_v37, %v2338_v38  ;;  %v2353_v11 = vadd.f32 %v4051_v54, %v2352_v5  ;;  %v2426_v17 = vsub.f32 1.0, %v2425_v62  ;;  %v2440_v20 = vmul.f32 %v4057_v4, %v5420_v31  ;;  %v525_v62 = vpop.f32.mrf.mxu1 }
 0x14b   : > { %v2347_v21 = vsel %vm5432_vm15, %v2346_v50, %v2342_v61  ;;  %vm2430_vm9 = vweird.f32 %v4055_v8  ;;  %v2448_v15 = vand.u32 2147483647, %v5420_v31  ;;  %v2450_v23 = vand.u32 2147483648, %v5420_v31  ;;  %v574_v61 = vpop.f32.mrf.mxu2 }
 0x14c   : > { %v4059_v27 = vpop.eup %4058  ;;  %3331 = vst [vmem:[%s4783_s25 + $0x210] sm:$0xff] %v2347_v21  ;;  %v2357_v28 = vsel %vm2356_vm8, %v4051_v54, %v2353_v11  ;;  %v2427_v29 = vmul.f32 %v4055_v8, %v2426_v17  ;;  %v2441_v19 = vsub.f32 1.0, %v2440_v20  ;;  %4064 = vpow2.f32 %v3766_v13  ;;  %vm2431_vm11 = vmor %vm2429_vm4, %vm2430_vm9  ;;  %v623_v11 = vpop.f32.mrf.mxu3 }
 0x14d   : > { %v4061_v12 = vpop.eup %4060  ;;  %v2362_v32 = vsel %vm5441_vm2, %v2361_v44, %v2357_v28  ;;  %v2436_v35 = vor.u32 1.1754944e-38, %v2435_v9  ;;  %v5471_v40 = vadd.f32 1.0, %v4059_v27  ;;  %4066 = vpow2.f32 %v3767_v60 }
 0x14e   : > { %3332 = vst [vmem:[%s4783_s25 + $0x218] sm:$0xff] %v2362_v32  ;;  %v2428_v18 = vadd.f32 %v4055_v8, %v2427_v29  ;;  %v2442_v41 = vmul.f32 %v4057_v4, %v2441_v19  ;;  %vm2445_vm10 = vweird.f32 %v4057_v4  ;;  %v5474_v22 = vadd.f32 1.0, %v4061_v12 }
 0x14f   : > { %v4063_v24 = vpop.eup %4062  ;;  %vm5479_vm12 = vcmp.eq.f32.partialorder %v2448_v15, 8.507059e+37  ;;  %v2451_v49 = vor.u32 1.1754944e-38, %v2450_v23  ;;  %vm2459_vm13 = vweird.f32 %v5449_v10  ;;  %4068 = vrcp.f32 %v5471_v40  ;;  %vm2446_vm14 = vmor %vm2444_vm0, %vm2445_vm10 }
 0x150   : > { %v2432_v43 = vsel %vm2431_vm11, %v4055_v8, %v2428_v18  ;;  %v2443_v25 = vadd.f32 %v4057_v4, %v2442_v41  ;;  %v2455_v14 = vmul.f32 %v4063_v24, %v5449_v10  ;;  %v2463_v48 = vand.u32 2147483647, %v5449_v10  ;;  %v479_v28 = vpop.f32.mrf.mxu0 }
 0x151   : > { %v2437_v34 = vsel %vm5454_vm7, %v2436_v35, %v2432_v43  ;;  %v2465_v37 = vand.u32 2147483648, %v5449_v10  ;;  %4070 = vrcp.f32 %v5474_v22  ;;  %v622_v39 = vadd.f32 %v621_v36, %v4722_v2 }
 0x152   : > { %v4065_v56 = vpop.eup %4064  ;;  %3337 = vst [vmem:[%s4783_s25 + $0x240] sm:$0xff] %v2437_v34  ;;  %v2447_v59 = vsel %vm2446_vm14, %v4057_v4, %v2443_v25  ;;  %v2456_v63 = vsub.f32 1.0, %v2455_v14  ;;  %v2478_v26 = vand.u32 2147483647, %v5471_v40  ;;  %v2480_v3 = vand.u32 2147483648, %v5471_v40 }
 0x153   : > { %v4067_v54 = vpop.eup %4066  ;;  %v2452_v31 = vsel %vm5479_vm12, %v2451_v49, %v2447_v59  ;;  %v2555_v42 = vand.u32 2147483648, %v5474_v22  ;;  %v5501_v50 = vadd.f32 1.0, %v4065_v56  ;;  %v477_v52 = vadd.f32 %v476_v30, %v4706_v57 }
 0x154   : > { %3338 = vst [vmem:[%s4783_s25 + $0x248] sm:$0xff] %v2452_v31  ;;  %v2457_v6 = vmul.f32 %v4063_v24, %v2456_v63  ;;  %vm2460_vm15 = vweird.f32 %v4063_v24  ;;  %v2553_v55 = vand.u32 2147483647, %v5474_v22  ;;  %v5506_v7 = vadd.f32 1.0, %v4067_v54 }
 0x155   : > { %v4069_v51 = vpop.eup %4068  ;;  %vm5508_vm1 = vcmp.eq.f32.partialorder %v2463_v48, 8.507059e+37  ;;  %v2466_v44 = vor.u32 1.1754944e-38, %v2465_v37  ;;  %vm2474_vm2 = vweird.f32 %v5471_v40  ;;  %4072 = vrcp.f32 %v5501_v50  ;;  %vm2461_vm4 = vmor %vm2459_vm13, %vm2460_vm15 }
 0x156   : > { %v2458_v45 = vadd.f32 %v4063_v24, %v2457_v6  ;;  %v2470_v33 = vmul.f32 %v4069_v51, %v5471_v40  ;;  %vm5515_vm3 = vcmp.eq.f32.partialorder %v2478_v26, 8.507059e+37  ;;  %v2481_v53 = vor.u32 1.1754944e-38, %v2480_v3 }
 0x157   : > { %v3768_v8 = vmul.f32 -1.442695, %v622_v39  ;;  %v4071_v9 = vpop.eup %4070  ;;  %vm2549_vm5 = vweird.f32 %v5474_v22  ;;  %v2556_v38 = vor.u32 1.1754944e-38, %v2555_v42  ;;  %4074 = vrcp.f32 %v5506_v7  ;;  %v528_v42 = vpop.f32.mrf.mxu1 }
 0x158   : > { %v3773_v5 = vmul.f32 -1.442695, %v477_v52  ;;  %v2462_v13 = vsel %vm2461_vm4, %v4063_v24, %v2458_v45  ;;  %v2471_v4 = vsub.f32 1.0, %v2470_v33  ;;  %v2545_v16 = vmul.f32 %v4071_v9, %v5474_v22 }
 0x159   : > { %vm5524_vm6 = vcmp.eq.f32.partialorder %v2553_v55, 8.507059e+37  ;;  %vm2564_vm7 = vweird.f32 %v5501_v50  ;;  %v2568_v10 = vand.u32 2147483647, %v5501_v50  ;;  %v2467_v17 = vsel %vm5508_vm1, %v2466_v44, %v2462_v13 }
 0x15a   : > { %vm2475_vm0 = vweird.f32 %v4069_v51  ;;  %v2570_v20 = vand.u32 2147483648, %v5501_v50  ;;  %v2583_v21 = vand.u32 2147483647, %v5506_v7  ;;  %3339 = vst [vmem:[%s4783_s25 + $0x250] sm:$0xff] %v2467_v17  ;;  %v2472_v15 = vmul.f32 %v4069_v51, %v2471_v4 }
 0x15b   : > { %v2546_v23 = vsub.f32 1.0, %v2545_v16  ;;  %4076 = vpow2.f32 %v3768_v8  ;;  %v526_v27 = vadd.f32 %v525_v62, %v4708_v58  ;;  %v4073_v29 = vpop.eup %4072  ;;  %vm2550_vm8 = vweird.f32 %v4071_v9  ;;  %vm2476_vm9 = vmor %vm2474_vm2, %vm2475_vm0  ;;  %v577_v62 = vpop.f32.mrf.mxu2 }
 0x15c   : > { %4078 = vpow2.f32 %v3773_v5  ;;  %v575_v19 = vadd.f32 %v574_v61, %v4718_v1  ;;  %v624_v12 = vadd.f32 %v623_v11, %v4722_v2  ;;  %v2473_v32 = vadd.f32 %v4069_v51, %v2472_v15  ;;  %vm2551_vm10 = vmor %vm2549_vm5, %vm2550_vm8 }
 0x15d   : > { %v2547_v35 = vmul.f32 %v4071_v9, %v2546_v23  ;;  %v2560_v18 = vmul.f32 %v4073_v29, %v5501_v50  ;;  %v2585_v41 = vand.u32 2147483648, %v5506_v7  ;;  %v4075_v36 = vpop.eup %4074  ;;  %v3774_v24 = vmul.f32 -1.442695, %v526_v27 }
 0x15e   : > { %v3775_v46 = vmul.f32 -1.442695, %v575_v19  ;;  %v3776_v49 = vmul.f32 -1.442695, %v624_v12  ;;  %v480_v43 = vadd.f32 %v479_v28, %v4706_v57  ;;  %v2477_v25 = vsel %vm2476_vm9, %v4069_v51, %v2473_v32 }
 0x15f   : > { %v2548_v14 = vadd.f32 %v4071_v9, %v2547_v35  ;;  %v2561_v48 = vsub.f32 1.0, %v2560_v18  ;;  %v2575_v30 = vmul.f32 %v4075_v36, %v5506_v7  ;;  %v2482_v34 = vsel %vm5515_vm3, %v2481_v53, %v2477_v25 }
 0x160   : > { %vm2565_vm11 = vweird.f32 %v4073_v29  ;;  %4080 = vpow2.f32 %v3774_v24  ;;  %v3781_v40 = vmul.f32 -1.442695, %v480_v43  ;;  %3340 = vst [vmem:[%s4783_s25 + $0x258] sm:$0xff] %v2482_v34  ;;  %vm2580_vm12 = vweird.f32 %v4075_v36 }
 0x161   : > { %v4077_v37 = vpop.eup %4076  ;;  %v2552_v39 = vsel %vm2551_vm10, %v4071_v9, %v2548_v14  ;;  %v2562_v56 = vmul.f32 %v4073_v29, %v2561_v48  ;;  %v2576_v59 = vsub.f32 1.0, %v2575_v30  ;;  %4082 = vpow2.f32 %v3775_v46  ;;  %vm2566_vm13 = vmor %vm2564_vm7, %vm2565_vm11  ;;  %v5602_v46 = vpop.f32.mrf.mxu0 }
 0x162   : > { %v4079_v63 = vpop.eup %4078  ;;  %v2557_v26 = vsel %vm5524_vm6, %v2556_v38, %v2552_v39  ;;  %v5553_v3 = vadd.f32 1.0, %v4077_v37  ;;  %4084 = vpow2.f32 %v3776_v49  ;;  %vm2569_vm14 = vcmp.eq.f32.partialorder %v2568_v10, 8.507059e+37 }
 0x163   : > { %3345 = vst [vmem:[%s4783_s25 + $0x280] sm:$0xff] %v2557_v26  ;;  %v2563_v22 = vadd.f32 %v4073_v29, %v2562_v56  ;;  %v2577_v54 = vmul.f32 %v4075_v36, %v2576_v59  ;;  %v5556_v31 = vadd.f32 1.0, %v4079_v63  ;;  %4086 = vpow2.f32 %v3781_v40 }
 0x164   : > { %v2571_v52 = vor.u32 1.1754944e-38, %v2570_v20  ;;  %4088 = vrcp.f32 %v5553_v3  ;;  %vm2579_vm15 = vweird.f32 %v5506_v7  ;;  %vm2584_vm2 = vcmp.eq.f32.partialorder %v2583_v21, 8.507059e+37 }
 0x165   : > { %v2567_v6 = vsel %vm2566_vm13, %v4073_v29, %v2563_v22  ;;  %v2578_v55 = vadd.f32 %v4075_v36, %v2577_v54  ;;  %4090 = vrcp.f32 %v5556_v31  ;;  %vm2581_vm1 = vmor %vm2579_vm15, %vm2580_vm12  ;;  %v2586_v44 = vor.u32 1.1754944e-38, %v2585_v41  ;;  %v626_v41 = vpop.f32.mrf.mxu3 }
 0x166   : > { %v4081_v51 = vpop.eup %4080  ;;  %v2572_v0 = vsel %vm2569_vm14, %v2571_v52, %v2567_v6  ;;  %v529_v50 = vadd.f32 %v528_v42, %v4708_v58  ;;  %v2598_v47 = vand.u32 2147483647, %v5553_v3  ;;  %v2600_v53 = vand.u32 2147483648, %v5553_v3 }
 0x167   : > { %v4083_v45 = vpop.eup %4082  ;;  %3346 = vst [vmem:[%s4783_s25 + $0x288] sm:$0xff] %v2572_v0  ;;  %v2582_v33 = vsel %vm2581_vm1, %v4075_v36, %v2578_v55  ;;  %v5569_v8 = vadd.f32 1.0, %v4081_v51  ;;  %v2673_v38 = vand.u32 2147483647, %v5556_v31  ;;  %v2675_v4 = vand.u32 2147483648, %v5556_v31 }
 0x168   : > { %v4085_v7 = vpop.eup %4084  ;;  %v2587_v9 = vsel %vm2584_vm2, %v2586_v44, %v2582_v33  ;;  %v5572_v5 = vadd.f32 1.0, %v4083_v45  ;;  %vm2594_vm3 = vweird.f32 %v5553_v3  ;;  %vm2669_vm4 = vweird.f32 %v5556_v31 }
 0x169   : > { %v4087_v13 = vpop.eup %4086  ;;  %3347 = vst [vmem:[%s4783_s25 + $0x290] sm:$0xff] %v2587_v9  ;;  %4092 = vrcp.f32 %v5569_v8  ;;  %v3782_v60 = vmul.f32 -1.442695, %v529_v50  ;;  %vm5581_vm5 = vcmp.eq.f32.partialorder %v2598_v47, 8.507059e+37  ;;  %v2601_v17 = vor.u32 1.1754944e-38, %v2600_v53  ;;  %v484_v11 = vpop.f32.mrf.mxu0 }
 0x16a   : > { %v4089_v16 = vpop.eup %4088  ;;  %4094 = vrcp.f32 %v5572_v5  ;;  %v578_v20 = vadd.f32 %v577_v62, %v4718_v1  ;;  %vm5587_vm6 = vcmp.eq.f32.partialorder %v2673_v38, 8.507059e+37  ;;  %v2688_v23 = vand.u32 2147483647, %v5569_v8 }
 0x16b   : > { %v4091_v10 = vpop.eup %4090  ;;  %v2590_v61 = vmul.f32 %v4089_v16, %v5553_v3  ;;  %v2690_v27 = vand.u32 2147483648, %v5569_v8  ;;  %v2705_v28 = vand.u32 2147483648, %v5572_v5  ;;  %v2676_v19 = vor.u32 1.1754944e-38, %v2675_v4  ;;  %v579_v4 = vpop.f32.mrf.mxu2 }
 0x16c   : > { %v2665_v21 = vmul.f32 %v4091_v10, %v5556_v31  ;;  %v2703_v12 = vand.u32 2147483647, %v5572_v5  ;;  %v5595_v32 = vadd.f32 1.0, %v4085_v7  ;;  %vm2684_vm7 = vweird.f32 %v5569_v8 }
 0x16d   : > { %v2591_v29 = vsub.f32 1.0, %v2590_v61  ;;  %v5598_v18 = vadd.f32 1.0, %v4087_v13  ;;  %4096 = vpow2.f32 %v3782_v60  ;;  %vm2595_vm0 = vweird.f32 %v4089_v16 }
 0x16e   : > { %v2666_v35 = vsub.f32 1.0, %v2665_v21  ;;  %vm2670_vm8 = vweird.f32 %v4091_v10  ;;  %vm2699_vm9 = vweird.f32 %v5572_v5  ;;  %4098 = vrcp.f32 %v5595_v32  ;;  %vm2596_vm12 = vmor %vm2594_vm3, %vm2595_vm0 }
 0x16f   : > { %v4093_v36 = vpop.eup %4092  ;;  %v2592_v24 = vmul.f32 %v4089_v16, %v2591_v29  ;;  %vm5605_vm10 = vcmp.eq.f32.partialorder %v2688_v23, 8.507059e+37  ;;  %v2691_v48 = vor.u32 1.1754944e-38, %v2690_v27  ;;  %v2706_v30 = vor.u32 1.1754944e-38, %v2705_v28  ;;  %vm2671_vm13 = vmor %vm2669_vm4, %vm2670_vm8 }
 0x170   : > { %v4095_v49 = vpop.eup %4094  ;;  %v2667_v43 = vmul.f32 %v4091_v10, %v2666_v35  ;;  %v2680_v25 = vmul.f32 %v4093_v36, %v5569_v8  ;;  %vm5610_vm11 = vcmp.eq.f32.partialorder %v2703_v12, 8.507059e+37  ;;  %v3783_v39 = vmul.f32 -1.442695, %v578_v20  ;;  %v530_v8 = vpop.f32.mrf.mxu1 }
 0x171   : > { %v2593_v34 = vadd.f32 %v4089_v16, %v2592_v24  ;;  %v2695_v40 = vmul.f32 %v4095_v49, %v5572_v5  ;;  %v627_v56 = vadd.f32 %v626_v41, %v4722_v2  ;;  %v2718_v26 = vand.u32 2147483647, %v5595_v32  ;;  %v628_v5 = vpop.f32.mrf.mxu3 }
 0x172   : > { %v2668_v59 = vadd.f32 %v4091_v10, %v2667_v43  ;;  %v2681_v63 = vsub.f32 1.0, %v2680_v25  ;;  %4100 = vrcp.f32 %v5598_v18  ;;  %vm2685_vm14 = vweird.f32 %v4093_v36 }
 0x173   : > { %v2597_v22 = vsel %vm2596_vm12, %v4089_v16, %v2593_v34  ;;  %v2696_v54 = vsub.f32 1.0, %v2695_v40  ;;  %v2720_v42 = vand.u32 2147483648, %v5595_v32  ;;  %v4097_v52 = vpop.eup %4096  ;;  %vm2700_vm15 = vweird.f32 %v4095_v49  ;;  %vm2686_vm2 = vmor %vm2684_vm7, %vm2685_vm14 }
 0x174   : > { %v2602_v3 = vsel %vm5581_vm5, %v2601_v17, %v2597_v22  ;;  %v2672_v6 = vsel %vm2671_vm13, %v4091_v10, %v2668_v59  ;;  %v2682_v55 = vmul.f32 %v4093_v36, %v2681_v63  ;;  %v4099_v51 = vpop.eup %4098  ;;  %v2793_v31 = vand.u32 2147483647, %v5598_v18  ;;  %vm2701_vm4 = vmor %vm2699_vm9, %vm2700_vm15 }
 0x175   : > { %3348 = vst [vmem:[%s4783_s25 + $0x298] sm:$0xff] %v2602_v3  ;;  %v2677_v0 = vsel %vm5587_vm6, %v2676_v19, %v2672_v6  ;;  %v2697_v44 = vmul.f32 %v4095_v49, %v2696_v54  ;;  %v5630_v50 = vadd.f32 1.0, %v4097_v52  ;;  %v2710_v33 = vmul.f32 %v4099_v51, %v5595_v32  ;;  %v582_v54 = vpop.f32.mrf.mxu2 }
 0x176   : > { %3353 = vst [vmem:[%s4783_s25 + $0x2c0] sm:$0xff] %v2677_v0  ;;  %v2683_v45 = vadd.f32 %v4093_v36, %v2682_v55  ;;  %vm2714_vm1 = vweird.f32 %v5595_v32  ;;  %v2795_v47 = vand.u32 2147483648, %v5598_v18  ;;  %vm5639_vm3 = vcmp.eq.f32.partialorder %v2718_v26, 8.507059e+37 }
 0x177   : > { %v2698_v53 = vadd.f32 %v4095_v49, %v2697_v44  ;;  %v2721_v9 = vor.u32 1.1754944e-38, %v2720_v42  ;;  %4102 = vrcp.f32 %v5630_v50  ;;  %v2711_v13 = vsub.f32 1.0, %v2710_v33 }
 0x178   : > { %v4101_v38 = vpop.eup %4100  ;;  %v2687_v62 = vsel %vm2686_vm2, %v4093_v36, %v2683_v45  ;;  %vm2789_vm5 = vweird.f32 %v5598_v18  ;;  %4104 = vpow2.f32 %v3783_v39  ;;  %vm2715_vm6 = vweird.f32 %v4099_v51 }
 0x179   : > { %v2692_v16 = vsel %vm5605_vm10, %v2691_v48, %v2687_v62  ;;  %v2702_v60 = vsel %vm2701_vm4, %v4095_v49, %v2698_v53  ;;  %v2785_v10 = vmul.f32 %v4101_v38, %v5598_v18  ;;  %vm5651_vm7 = vcmp.eq.f32.partialorder %v2793_v31, 8.507059e+37  ;;  %vm2716_vm8 = vmor %vm2714_vm1, %vm2715_vm6  ;;  %v533_v18 = vpop.f32.mrf.mxu1  ;;  %v631_v62 = vpop.f32.mrf.mxu3 }
 0x17a   : > { %3354 = vst [vmem:[%s4783_s25 + $0x2c8] sm:$0xff] %v2692_v16  ;;  %v2707_v17 = vsel %vm5610_vm11, %v2706_v30, %v2702_v60  ;;  %v2712_v20 = vmul.f32 %v4099_v51, %v2711_v13  ;;  %vm2790_vm0 = vweird.f32 %v4101_v38  ;;  %v2796_v21 = vor.u32 1.1754944e-38, %v2795_v47  ;;  %v486_v13 = vpop.f32.mrf.mxu0 }
 0x17b   : > { %3355 = vst [vmem:[%s4783_s25 + $0x2d0] sm:$0xff] %v2707_v17  ;;  %v2786_v15 = vsub.f32 1.0, %v2785_v10  ;;  %v3784_v23 = vmul.f32 -1.442695, %v627_v56  ;;  %v482_v27 = vadd.f32 %v5602_v46, %v4706_v57  ;;  %v531_v28 = vadd.f32 %v530_v8, %v4708_v58  ;;  %vm2791_vm10 = vmor %vm2789_vm5, %vm2790_vm0 }
 0x17c   : > { %v2713_v29 = vadd.f32 %v4099_v51, %v2712_v20  ;;  %v580_v19 = vadd.f32 %v579_v4, %v4718_v1  ;;  %v629_v12 = vadd.f32 %v628_v5, %v4722_v2  ;;  %v485_v35 = vadd.f32 %v484_v11, %v4706_v57 }
 0x17d   : > { %v4103_v41 = vpop.eup %4102  ;;  %v2787_v36 = vmul.f32 %v4101_v38, %v2786_v15  ;;  %4106 = vpow2.f32 %v3784_v23  ;;  %v3789_v24 = vmul.f32 -1.442695, %v482_v27  ;;  %v3790_v49 = vmul.f32 -1.442695, %v531_v28 }
 0x17e   : > { %v4105_v46 = vpop.eup %4104  ;;  %v2717_v43 = vsel %vm2716_vm8, %v4099_v51, %v2713_v29  ;;  %v2800_v25 = vmul.f32 %v4103_v41, %v5630_v50  ;;  %vm2804_vm9 = vweird.f32 %v5630_v50  ;;  %v3791_v14 = vmul.f32 -1.442695, %v580_v19 }
 0x17f   : > { %v2722_v48 = vsel %vm5639_vm3, %v2721_v9, %v2717_v43  ;;  %v2788_v30 = vadd.f32 %v4101_v38, %v2787_v36  ;;  %v5672_v34 = vadd.f32 1.0, %v4105_v46  ;;  %4108 = vpow2.f32 %v3789_v24 }
 0x180   : > { %3356 = vst [vmem:[%s4783_s25 + $0x2d8] sm:$0xff] %v2722_v48  ;;  %v2801_v32 = vsub.f32 1.0, %v2800_v25  ;;  %v2808_v40 = vand.u32 2147483647, %v5630_v50  ;;  %4110 = vpow2.f32 %v3790_v49  ;;  %v3792_v37 = vmul.f32 -1.442695, %v629_v12 }
 0x181   : > { %v2792_v39 = vsel %vm2791_vm10, %v4101_v38, %v2788_v30  ;;  %v2810_v56 = vand.u32 2147483648, %v5630_v50  ;;  %4112 = vrcp.f32 %v5672_v34  ;;  %v3797_v59 = vmul.f32 -1.442695, %v485_v35 }
 0x182   : > { %v2797_v63 = vsel %vm5651_vm7, %v2796_v21, %v2792_v39  ;;  %v2802_v26 = vmul.f32 %v4103_v41, %v2801_v32  ;;  %vm2805_vm11 = vweird.f32 %v4103_v41  ;;  %4114 = vpow2.f32 %v3791_v14 }
 0x183   : > { %v4107_v22 = vpop.eup %4106  ;;  %3361 = vst [vmem:[%s4783_s25 + $0x300] sm:$0xff] %v2797_v63  ;;  %4116 = vpow2.f32 %v3792_v37  ;;  %v2823_v52 = vand.u32 2147483647, %v5672_v34  ;;  %vm2806_vm12 = vmor %vm2804_vm9, %vm2805_vm11  ;;  %vm2809_vm13 = vcmp.eq.f32.partialorder %v2808_v40, 8.507059e+37  ;;  %v2811_v55 = vor.u32 1.1754944e-38, %v2810_v56 }
 0x184   : > { %v2803_v42 = vadd.f32 %v4103_v41, %v2802_v26  ;;  %v5685_v3 = vadd.f32 1.0, %v4107_v22  ;;  %4118 = vpow2.f32 %v3797_v59  ;;  %v534_v51 = vadd.f32 %v533_v18, %v4708_v58 }
 0x185   : > { %v4109_v6 = vpop.eup %4108  ;;  %v2825_v31 = vand.u32 2147483648, %v5672_v34  ;;  %v583_v45 = vadd.f32 %v582_v54, %v4718_v1  ;;  %vm2819_vm14 = vweird.f32 %v5672_v34  ;;  %vm5700_vm15 = vcmp.eq.f32.partialorder %v2823_v52, 8.507059e+37 }
 0x186   : > { %v4111_v0 = vpop.eup %4110  ;;  %v2807_v44 = vsel %vm2806_vm12, %v4103_v41, %v2803_v42  ;;  %4120 = vrcp.f32 %v5685_v3  ;;  %v5693_v53 = vadd.f32 1.0, %v4109_v6  ;;  %v2838_v4 = vand.u32 2147483647, %v5685_v3 }
 0x187   : > { %v4113_v33 = vpop.eup %4112  ;;  %v2812_v47 = vsel %vm2809_vm13, %v2811_v55, %v2807_v44  ;;  %v5695_v50 = vadd.f32 1.0, %v4111_v0  ;;  %v2840_v16 = vand.u32 2147483648, %v5685_v3  ;;  %v3798_v60 = vmul.f32 -1.442695, %v534_v51 }
 0x188   : > { %v4115_v7 = vpop.eup %4114  ;;  %3362 = vst [vmem:[%s4783_s25 + $0x308] sm:$0xff] %v2812_v47  ;;  %v2815_v9 = vmul.f32 %v4113_v33, %v5672_v34  ;;  %4122 = vrcp.f32 %v5693_v53  ;;  %v2826_v61 = vor.u32 1.1754944e-38, %v2825_v31  ;;  %v5708_v5 = vmul.f32 -1.442695, %v583_v45 }
 0x189   : > { %v4117_v8 = vpop.eup %4116  ;;  %4124 = vrcp.f32 %v5695_v50  ;;  %vm2834_vm1 = vweird.f32 %v5685_v3  ;;  %v5711_v17 = vadd.f32 1.0, %v4115_v7  ;;  %v5714_v20 = vadd.f32 %v631_v62, %v4722_v2 }
 0x18a   : > { %v2816_v10 = vsub.f32 1.0, %v2815_v9  ;;  %v4119_v11 = vpop.eup %4118  ;;  %v5717_v21 = vadd.f32 %v486_v13, %v4706_v57  ;;  %vm2820_vm2 = vweird.f32 %v4113_v33  ;;  %v2913_v27 = vand.u32 2147483647, %v5693_v53 }
 0x18b   : > { %v5720_v28 = vadd.f32 1.0, %v4117_v8  ;;  %vm5723_vm3 = vcmp.eq.f32.partialorder %v2838_v4, 8.507059e+37  ;;  %v2841_v12 = vor.u32 1.1754944e-38, %v2840_v16  ;;  %v2915_v35 = vand.u32 2147483648, %v5693_v53  ;;  %vm2821_vm5 = vmor %vm2819_vm14, %vm2820_vm2 }
 0x18c   : > { %v4121_v15 = vpop.eup %4120  ;;  %v2817_v23 = vmul.f32 %v4113_v33, %v2816_v10  ;;  %4126 = vpow2.f32 %v3798_v60  ;;  %vm2909_vm4 = vweird.f32 %v5693_v53  ;;  %v2928_v57 = vand.u32 2147483647, %v5695_v50 }
 0x18d   : > { %v2830_v29 = vmul.f32 %v4121_v15, %v5685_v3  ;;  %v2930_v36 = vand.u32 2147483648, %v5695_v50  ;;  %4128 = vrcp.f32 %v5711_v17  ;;  %vm2924_vm6 = vweird.f32 %v5695_v50 }
 0x18e   : > { %v2818_v41 = vadd.f32 %v4113_v33, %v2817_v23  ;;  %v4123_v24 = vpop.eup %4122  ;;  %4130 = vrcp.f32 %v5720_v28  ;;  %v5736_v46 = vadd.f32 1.0, %v4119_v11  ;;  %vm2835_vm7 = vweird.f32 %v4121_v15 }
 0x18f   : > { %v2831_v49 = vsub.f32 1.0, %v2830_v29  ;;  %v4125_v43 = vpop.eup %4124  ;;  %v2905_v14 = vmul.f32 %v4123_v24, %v5693_v53  ;;  %vm5739_vm0 = vcmp.eq.f32.partialorder %v2913_v27, 8.507059e+37  ;;  %v2943_v30 = vand.u32 2147483647, %v5711_v17  ;;  %vm2836_vm10 = vmor %vm2834_vm1, %vm2835_vm7 }
 0x190   : > { %v2822_v25 = vsel %vm2821_vm5, %v4113_v33, %v2818_v41  ;;  %v2920_v40 = vmul.f32 %v4125_v43, %v5695_v50  ;;  %v2945_v37 = vand.u32 2147483648, %v5711_v17  ;;  %v2916_v56 = vor.u32 1.1754944e-38, %v2915_v35 }
 0x191   : > { %v2827_v34 = vsel %vm5700_vm15, %v2826_v61, %v2822_v25  ;;  %v2832_v32 = vmul.f32 %v4121_v15, %v2831_v49  ;;  %v2906_v39 = vsub.f32 1.0, %v2905_v14  ;;  %vm5749_vm8 = vcmp.eq.f32.partialorder %v2928_v57, 8.507059e+37  ;;  %v535_v61 = vpop.f32.mrf.mxu1 }
 0x192   : > { %3363 = vst [vmem:[%s4783_s25 + $0x310] sm:$0xff] %v2827_v34  ;;  %v2931_v63 = vor.u32 1.1754944e-38, %v2930_v36  ;;  %v4127_v26 = vpop.eup %4126  ;;  %v2921_v22 = vsub.f32 1.0, %v2920_v40  ;;  %vm2939_vm9 = vweird.f32 %v5711_v17  ;;  %4132 = vrcp.f32 %v5736_v46  ;;  %v633_v36 = vpop.f32.mrf.mxu3 }
 0x193   : > { %v2833_v18 = vadd.f32 %v4121_v15, %v2832_v32  ;;  %v4129_v54 = vpop.eup %4128  ;;  %v2907_v42 = vmul.f32 %v4123_v24, %v2906_v39  ;;  %vm2910_vm11 = vweird.f32 %v4123_v24  ;;  %vm2925_vm12 = vweird.f32 %v4125_v43 }
 0x194   : > { %vm2954_vm13 = vweird.f32 %v5720_v28  ;;  %v4131_v52 = vpop.eup %4130  ;;  %v2922_v55 = vmul.f32 %v4125_v43, %v2921_v22  ;;  %v2935_v51 = vmul.f32 %v4129_v54, %v5711_v17  ;;  %vm5760_vm14 = vcmp.eq.f32.partialorder %v2943_v30, 8.507059e+37  ;;  %vm2911_vm15 = vmor %vm2909_vm4, %vm2910_vm11  ;;  %v584_v17 = vpop.f32.mrf.mxu2 }
 0x195   : > { %v2837_v6 = vsel %vm2836_vm10, %v4121_v15, %v2833_v18  ;;  %v2946_v44 = vor.u32 1.1754944e-38, %v2945_v37  ;;  %v2908_v31 = vadd.f32 %v4123_v24, %v2907_v42  ;;  %v2950_v45 = vmul.f32 %v4131_v52, %v5720_v28  ;;  %vm2926_vm2 = vmor %vm2924_vm6, %vm2925_vm12  ;;  %v4418_v42 = vld [vmem:[#allocation4] sm:$0xff] }
 0x196   : > { %v2842_v3 = vsel %vm5723_vm3, %v2841_v12, %v2837_v6  ;;  %v2958_v33 = vand.u32 2147483647, %v5720_v28  ;;  %v2923_v47 = vadd.f32 %v4125_v43, %v2922_v55  ;;  %v2936_v7 = vsub.f32 1.0, %v2935_v51 }
 0x197   : > { %3364 = vst [vmem:[%s4783_s25 + $0x318] sm:$0xff] %v2842_v3  ;;  %v2960_v9 = vand.u32 2147483648, %v5720_v28  ;;  %vm3029_vm1 = vweird.f32 %v5736_v46  ;;  %v2912_v38 = vsel %vm2911_vm15, %v4123_v24, %v2908_v31  ;;  %v2951_v62 = vsub.f32 1.0, %v2950_v45 }
 0x198   : > { %v5776_v13 = vadd.f32 1.0, %v4127_v26  ;;  %4134 = vpow2.f32 %v5708_v5  ;;  %v4133_v53 = vpop.eup %4132  ;;  %v2917_v8 = vsel %vm5739_vm0, %v2916_v56, %v2912_v38  ;;  %v2927_v4 = vsel %vm2926_vm2, %v4125_v43, %v2923_v47 }
 0x199   : > { %v2937_v16 = vmul.f32 %v4129_v54, %v2936_v7  ;;  %vm2940_vm3 = vweird.f32 %v4129_v54  ;;  %3369 = vst [vmem:[%s4783_s25 + $0x340] sm:$0xff] %v2917_v8  ;;  %v2932_v60 = vsel %vm5749_vm8, %v2931_v63, %v2927_v4  ;;  %v2952_v10 = vmul.f32 %v4131_v52, %v2951_v62 }
 0x19a   : > { %vm2955_vm4 = vweird.f32 %v4131_v52  ;;  %v3025_v50 = vmul.f32 %v4133_v53, %v5736_v46  ;;  %3370 = vst [vmem:[%s4783_s25 + $0x348] sm:$0xff] %v2932_v60  ;;  %vm5786_vm5 = vcmp.eq.f32.partialorder %v2958_v33, 8.507059e+37  ;;  %v2961_v15 = vor.u32 1.1754944e-38, %v2960_v9  ;;  %vm2941_vm6 = vmor %vm2939_vm9, %vm2940_vm3  ;;  %v694_v33 = vpop.f32.mrf.mxu1  ;;  %v792_v60 = vpop.f32.mrf.mxu3 }
 0x19b   : > { %v2938_v11 = vadd.f32 %v4129_v54, %v2937_v16  ;;  %4136 = vrcp.f32 %v5776_v13  ;;  %v2953_v23 = vadd.f32 %v4131_v52, %v2952_v10  ;;  %v3033_v29 = vand.u32 2147483647, %v5736_v46  ;;  %vm2956_vm7 = vmor %vm2954_vm13, %vm2955_vm4 }
 0x19c   : > { %v3026_v27 = vsub.f32 1.0, %v3025_v50  ;;  %v3800_v19 = vmul.f32 -1.442695, %v5714_v20  ;;  %v3035_v35 = vand.u32 2147483648, %v5736_v46  ;;  %v3805_v41 = vmul.f32 -1.442695, %v5717_v21  ;;  %v743_v16 = vpop.f32.mrf.mxu2 }
 0x19d   : > { %v2942_v12 = vsel %vm2941_vm6, %v4129_v54, %v2938_v11  ;;  %v536_v57 = vadd.f32 %v535_v61, %v4708_v58  ;;  %v2957_v43 = vsel %vm2956_vm7, %v4131_v52, %v2953_v23  ;;  %vm3030_vm0 = vweird.f32 %v4133_v53 }
 0x19e   : > { %v4135_v24 = vpop.eup %4134  ;;  %v2947_v49 = vsel %vm5760_vm14, %v2946_v44, %v2942_v12  ;;  %v3027_v25 = vmul.f32 %v4133_v53, %v3026_v27  ;;  %v2962_v20 = vsel %vm5786_vm5, %v2961_v15, %v2957_v43  ;;  %4138 = vpow2.f32 %v3800_v19  ;;  %vm3031_vm8 = vmor %vm3029_vm1, %vm3030_vm0  ;;  %v645_v44 = vpop.f32.mrf.mxu0 }
 0x19f   : > { %3371 = vst [vmem:[%s4783_s25 + $0x350] sm:$0xff] %v2947_v49  ;;  %v5805_v28 = vadd.f32 1.0, %v4135_v24  ;;  %v3806_v14 = vmul.f32 -1.442695, %v536_v57  ;;  %4140 = vpow2.f32 %v3805_v41  ;;  %v585_v58 = vadd.f32 %v584_v17, %v4718_v1 }
 0x1a0   : > { %3372 = vst [vmem:[%s4783_s25 + $0x358] sm:$0xff] %v2962_v20  ;;  %v3028_v21 = vadd.f32 %v4133_v53, %v3027_v25  ;;  %v634_v48 = vadd.f32 %v633_v36, %v4722_v2  ;;  %v3036_v34 = vor.u32 1.1754944e-38, %v3035_v35  ;;  %vm3034_vm9 = vcmp.eq.f32.partialorder %v3033_v29, 8.507059e+37 }
 0x1a1   : > { %v4137_v30 = vpop.eup %4136  ;;  %4142 = vrcp.f32 %v5805_v28  ;;  %v3048_v37 = vand.u32 2147483647, %v5776_v13  ;;  %v3050_v56 = vand.u32 2147483648, %v5776_v13  ;;  %v3807_v1 = vmul.f32 -1.442695, %v585_v58 }
 0x1a2   : > { %v3032_v32 = vsel %vm3031_vm8, %v4133_v53, %v3028_v21  ;;  %v3040_v40 = vmul.f32 %v4137_v30, %v5776_v13  ;;  %4144 = vpow2.f32 %v3806_v14  ;;  %vm3044_vm10 = vweird.f32 %v5776_v13 }
 0x1a3   : > { %v3037_v39 = vsel %vm3034_vm9, %v3036_v34, %v3032_v32  ;;  %v3808_v46 = vmul.f32 -1.442695, %v634_v48  ;;  %vm3045_vm11 = vweird.f32 %v4137_v30  ;;  %v3063_v63 = vand.u32 2147483647, %v5805_v28 }
 0x1a4   : > { %3377 = vst [vmem:[%s4783_s25 + $0x380] sm:$0xff] %v3037_v39  ;;  %v3041_v2 = vsub.f32 1.0, %v3040_v40  ;;  %v4139_v59 = vpop.eup %4138  ;;  %v3065_v26 = vand.u32 2147483648, %v5805_v28  ;;  %4146 = vpow2.f32 %v3807_v1  ;;  %v5822_v52 = vperm.slane %v4418_v42, 4  ;;  %vm3046_vm14 = vmor %vm3044_vm10, %vm3045_vm11 }
 0x1a5   : > { %v4141_v18 = vpop.eup %4140  ;;  %v5820_v54 = vadd.f32 1.0, %v4139_v59  ;;  %4148 = vpow2.f32 %v3808_v46  ;;  %vm5824_vm12 = vcmp.eq.f32.partialorder %v3048_v37, 8.507059e+37  ;;  %v3051_v51 = vor.u32 1.1754944e-38, %v3050_v56 }
 0x1a6   : > { %v3042_v22 = vmul.f32 %v4137_v30, %v3041_v2  ;;  %v5828_v0 = vadd.f32 1.0, %v4141_v18  ;;  %v5830_v3 = vperm.slane %v4418_v42, 5  ;;  %vm3059_vm13 = vweird.f32 %v5805_v28 }
 0x1a7   : > { %v4143_v6 = vpop.eup %4142  ;;  %4150 = vrcp.f32 %v5820_v54  ;;  %vm5838_vm15 = vcmp.eq.f32.partialorder %v3063_v63, 8.507059e+37  ;;  %v5843_v9 = vperm.slane %v4418_v42, 6  ;;  %v5845_v38 = vperm.slane %v4418_v42, 7 }
 0x1a8   : > { %v3043_v31 = vadd.f32 %v4137_v30, %v3042_v22  ;;  %v3055_v45 = vmul.f32 %v4143_v6, %v5805_v28  ;;  %v4145_v47 = vpop.eup %4144  ;;  %4152 = vrcp.f32 %v5828_v0  ;;  %v3066_v8 = vor.u32 1.1754944e-38, %v3065_v26 }
 0x1a9   : > { %v646_v4 = vadd.f32 %v645_v44, %v5822_v52  ;;  %v3078_v50 = vand.u32 2147483647, %v5820_v54  ;;  %v3080_v61 = vand.u32 2147483648, %v5820_v54  ;;  %v695_v11 = vadd.f32 %v694_v33, %v5830_v3 }
 0x1aa   : > { %v3047_v62 = vsel %vm3046_vm14, %v4137_v30, %v3043_v31  ;;  %v3056_v53 = vsub.f32 1.0, %v3055_v45  ;;  %v4147_v13 = vpop.eup %4146  ;;  %vm3060_vm1 = vweird.f32 %v4143_v6  ;;  %v5854_v23 = vadd.f32 1.0, %v4145_v47  ;;  %v647_v31 = vpop.f32.mrf.mxu0 }
 0x1ab   : > { %v3052_v10 = vsel %vm5824_vm12, %v3051_v51, %v3047_v62  ;;  %v4149_v5 = vpop.eup %4148  ;;  %v5856_v27 = vadd.f32 1.0, %v4147_v13  ;;  %vm3074_vm2 = vweird.f32 %v5820_v54  ;;  %v3153_v29 = vand.u32 2147483647, %v5828_v0  ;;  %vm3061_vm4 = vmor %vm3059_vm13, %vm3060_vm1 }
 0x1ac   : > { %3378 = vst [vmem:[%s4783_s25 + $0x388] sm:$0xff] %v3052_v10  ;;  %v3057_v15 = vmul.f32 %v4143_v6, %v3056_v53  ;;  %v744_v19 = vadd.f32 %v743_v16, %v5843_v9  ;;  %v793_v12 = vadd.f32 %v792_v60, %v5845_v38  ;;  %vm3149_vm3 = vweird.f32 %v5828_v0 }
 0x1ad   : > { %v4151_v35 = vpop.eup %4150  ;;  %v3155_v57 = vand.u32 2147483648, %v5828_v0  ;;  %4154 = vrcp.f32 %v5854_v23  ;;  %v5865_v17 = vadd.f32 1.0, %v4149_v5  ;;  %vm5870_vm5 = vcmp.eq.f32.partialorder %v3078_v50, 8.507059e+37 }
 0x1ae   : > { %v3058_v41 = vadd.f32 %v4143_v6, %v3057_v15  ;;  %v4153_v36 = vpop.eup %4152  ;;  %v3070_v24 = vmul.f32 %v4151_v35, %v5820_v54  ;;  %v3081_v43 = vor.u32 1.1754944e-38, %v3080_v61  ;;  %4156 = vrcp.f32 %v5856_v27 }
 0x1af   : > { %v3145_v20 = vmul.f32 %v4153_v36, %v5828_v0  ;;  %v3170_v14 = vand.u32 2147483648, %v5854_v23  ;;  %v3689_v21 = vmul.f32 -1.442695, %v646_v4  ;;  %vm5879_vm6 = vcmp.eq.f32.partialorder %v3153_v29, 8.507059e+37  ;;  %v696_v4 = vpop.f32.mrf.mxu1 }
 0x1b0   : > { %v3062_v25 = vsel %vm3061_vm4, %v4143_v6, %v3058_v41  ;;  %v3071_v28 = vsub.f32 1.0, %v3070_v24  ;;  %v3168_v30 = vand.u32 2147483647, %v5854_v23  ;;  %v3156_v32 = vor.u32 1.1754944e-38, %v3155_v57 }
 0x1b1   : > { %v3067_v58 = vsel %vm5838_vm15, %v3066_v8, %v3062_v25  ;;  %v3146_v34 = vsub.f32 1.0, %v3145_v20  ;;  %4158 = vrcp.f32 %v5865_v17  ;;  %v3690_v40 = vmul.f32 -1.442695, %v695_v11  ;;  %v745_v11 = vpop.f32.mrf.mxu2 }
 0x1b2   : > { %3379 = vst [vmem:[%s4783_s25 + $0x390] sm:$0xff] %v3067_v58  ;;  %v3072_v37 = vmul.f32 %v4151_v35, %v3071_v28  ;;  %vm3075_vm7 = vweird.f32 %v4151_v35  ;;  %vm3150_vm0 = vweird.f32 %v4153_v36  ;;  %vm3164_vm8 = vweird.f32 %v5854_v23 }
 0x1b3   : > { %v4155_v39 = vpop.eup %4154  ;;  %v3147_v56 = vmul.f32 %v4153_v36, %v3146_v34  ;;  %v3171_v1 = vor.u32 1.1754944e-38, %v3170_v14  ;;  %vm3179_vm9 = vweird.f32 %v5856_v27  ;;  %4160 = vpow2.f32 %v3689_v21  ;;  %vm3076_vm11 = vmor %vm3074_vm2, %vm3075_vm7 }
 0x1b4   : > { %v4157_v2 = vpop.eup %4156  ;;  %v3073_v46 = vadd.f32 %v4151_v35, %v3072_v37  ;;  %v3160_v59 = vmul.f32 %v4155_v39, %v5854_v23  ;;  %vm5889_vm10 = vcmp.eq.f32.partialorder %v3168_v30, 8.507059e+37  ;;  %v3183_v26 = vand.u32 2147483647, %v5856_v27  ;;  %vm3151_vm12 = vmor %vm3149_vm3, %vm3150_vm0 }
 0x1b5   : > { %v3185_v18 = vand.u32 2147483648, %v5856_v27  ;;  %v3148_v22 = vadd.f32 %v4153_v36, %v3147_v56  ;;  %v3175_v42 = vmul.f32 %v4157_v2, %v5856_v27  ;;  %v3198_v6 = vand.u32 2147483647, %v5865_v17  ;;  %v794_v27 = vpop.f32.mrf.mxu3 }
 0x1b6   : > { %v3200_v55 = vand.u32 2147483648, %v5865_v17  ;;  %v3077_v51 = vsel %vm3076_vm11, %v4151_v35, %v3073_v46  ;;  %v3161_v44 = vsub.f32 1.0, %v3160_v59  ;;  %vm3194_vm13 = vweird.f32 %v5865_v17 }
 0x1b7   : > { %4162 = vpow2.f32 %v3690_v40  ;;  %v3691_v54 = vmul.f32 -1.442695, %v744_v19  ;;  %v4159_v45 = vpop.eup %4158  ;;  %v3082_v33 = vsel %vm5870_vm5, %v3081_v43, %v3077_v51  ;;  %v3152_v47 = vsel %vm3151_vm12, %v4153_v36, %v3148_v22 }
 0x1b8   : > { %v3176_v7 = vsub.f32 1.0, %v3175_v42  ;;  %v3692_v62 = vmul.f32 -1.442695, %v793_v12  ;;  %3380 = vst [vmem:[%s4783_s25 + $0x398] sm:$0xff] %v3082_v33  ;;  %v3157_v53 = vsel %vm5879_vm6, %v3156_v32, %v3152_v47  ;;  %v3162_v0 = vmul.f32 %v4155_v39, %v3161_v44 }
 0x1b9   : > { %vm3165_vm14 = vweird.f32 %v4155_v39  ;;  %v3190_v8 = vmul.f32 %v4159_v45, %v5865_v17  ;;  %v4161_v16 = vpop.eup %4160  ;;  %3385 = vst [vmem:[%s4783_s25 + $0x3c0] sm:$0xff] %v3157_v53  ;;  %vm3180_vm15 = vweird.f32 %v4157_v2  ;;  %4164 = vpow2.f32 %v3691_v54 }
 0x1ba   : > { %v3177_v60 = vmul.f32 %v4157_v2, %v3176_v7  ;;  %v648_v13 = vadd.f32 %v647_v31, %v5822_v52  ;;  %v3163_v10 = vadd.f32 %v4155_v39, %v3162_v0  ;;  %v5912_v61 = vadd.f32 1.0, %v4161_v16  ;;  %vm3166_vm1 = vmor %vm3164_vm8, %vm3165_vm14  ;;  %v650_v0 = vpop.f32.mrf.mxu0 }
 0x1bb   : > { %v3191_v50 = vsub.f32 1.0, %v3190_v8  ;;  %4166 = vpow2.f32 %v3692_v62  ;;  %v3186_v15 = vor.u32 1.1754944e-38, %v3185_v18  ;;  %v697_v19 = vadd.f32 %v696_v4, %v5830_v3  ;;  %vm3181_vm2 = vmor %vm3179_vm9, %vm3180_vm15 }
 0x1bc   : > { %v3178_v5 = vadd.f32 %v4157_v2, %v3177_v60  ;;  %v3697_v29 = vmul.f32 -1.442695, %v648_v13  ;;  %v3167_v35 = vsel %vm3166_vm1, %v4155_v39, %v3163_v10  ;;  %vm3195_vm3 = vweird.f32 %v4159_v45 }
 0x1bd   : > { %v4163_v12 = vpop.eup %4162  ;;  %v3192_v41 = vmul.f32 %v4159_v45, %v3191_v50  ;;  %4168 = vrcp.f32 %v5912_v61  ;;  %v3172_v23 = vsel %vm5889_vm10, %v3171_v1, %v3167_v35  ;;  %vm3184_vm4 = vcmp.eq.f32.partialorder %v3183_v26, 8.507059e+37  ;;  %vm3196_vm5 = vmor %vm3194_vm13, %vm3195_vm3 }
 0x1be   : > { %v3182_v57 = vsel %vm3181_vm2, %v4157_v2, %v3178_v5  ;;  %v746_v36 = vadd.f32 %v745_v11, %v5843_v9  ;;  %3386 = vst [vmem:[%s4783_s25 + $0x3c8] sm:$0xff] %v3172_v23  ;;  %v5925_v43 = vadd.f32 1.0, %v4163_v12  ;;  %4170 = vpow2.f32 %v3697_v29 }
 0x1bf   : > { %v3187_v24 = vsel %vm3184_vm4, %v3186_v15, %v3182_v57  ;;  %v3193_v49 = vadd.f32 %v4159_v45, %v3192_v41  ;;  %v4165_v25 = vpop.eup %4164  ;;  %vm3199_vm6 = vcmp.eq.f32.partialorder %v3198_v6, 8.507059e+37  ;;  %v3201_v20 = vor.u32 1.1754944e-38, %v3200_v55 }
 0x1c0   : > { %3387 = vst [vmem:[%s4783_s25 + $0x3d0] sm:$0xff] %v3187_v24  ;;  %v3698_v14 = vmul.f32 -1.442695, %v697_v19  ;;  %v1413_v28 = vand.u32 2147483647, %v5912_v61  ;;  %v1415_v48 = vand.u32 2147483648, %v5912_v61  ;;  %4172 = vrcp.f32 %v5925_v43  ;;  %v699_v19 = vpop.f32.mrf.mxu1 }
 0x1c1   : > { %v4167_v21 = vpop.eup %4166  ;;  %v3197_v58 = vsel %vm3196_vm5, %v4159_v45, %v3193_v49  ;;  %v5933_v34 = vadd.f32 1.0, %v4165_v25  ;;  %v795_v40 = vadd.f32 %v794_v27, %v5845_v38  ;;  %v3699_v37 = vmul.f32 -1.442695, %v746_v36  ;;  %v748_v49 = vpop.f32.mrf.mxu2 }
 0x1c2   : > { %v3202_v30 = vsel %vm3199_vm6, %v3201_v20, %v3197_v58  ;;  %v5935_v32 = vadd.f32 1.0, %v4167_v21  ;;  %4174 = vpow2.f32 %v3698_v14  ;;  %v1428_v56 = vand.u32 2147483647, %v5925_v43 }
 0x1c3   : > { %v4169_v17 = vpop.eup %4168  ;;  %3388 = vst [vmem:[%s4783_s25 + $0x3d8] sm:$0xff] %v3202_v30  ;;  %4176 = vrcp.f32 %v5933_v34  ;;  %vm1409_vm7 = vweird.f32 %v5912_v61  ;;  %vm5943_vm0 = vcmp.eq.f32.partialorder %v1413_v28, 8.507059e+37  ;;  %v1430_v46 = vand.u32 2147483648, %v5925_v43 }
 0x1c4   : > { %v1405_v39 = vmul.f32 %v4169_v17, %v5912_v61  ;;  %v4171_v1 = vpop.eup %4170  ;;  %4178 = vrcp.f32 %v5935_v32  ;;  %v1416_v63 = vor.u32 1.1754944e-38, %v1415_v48  ;;  %vm1424_vm8 = vweird.f32 %v5925_v43 }
 0x1c5   : > { %v3700_v26 = vmul.f32 -1.442695, %v795_v40  ;;  %v1443_v22 = vand.u32 2147483647, %v5933_v34  ;;  %v1445_v42 = vand.u32 2147483648, %v5933_v34  ;;  %v5952_v6 = vadd.f32 1.0, %v4171_v1  ;;  %v797_v1 = vpop.f32.mrf.mxu3 }
 0x1c6   : > { %v1406_v59 = vsub.f32 1.0, %v1405_v39  ;;  %v4173_v18 = vpop.eup %4172  ;;  %4180 = vpow2.f32 %v3699_v37  ;;  %vm1410_vm9 = vweird.f32 %v4169_v17  ;;  %vm5955_vm10 = vcmp.eq.f32.partialorder %v1428_v56, 8.507059e+37 }
 0x1c7   : > { %v1420_v51 = vmul.f32 %v4173_v18, %v5925_v43  ;;  %v1431_v31 = vor.u32 1.1754944e-38, %v1430_v46  ;;  %vm1439_vm11 = vweird.f32 %v5933_v34  ;;  %v1458_v45 = vand.u32 2147483647, %v5935_v32  ;;  %vm1411_vm13 = vmor %vm1409_vm7, %vm1410_vm9 }
 0x1c8   : > { %v1407_v55 = vmul.f32 %v4169_v17, %v1406_v59  ;;  %v4175_v54 = vpop.eup %4174  ;;  %4182 = vrcp.f32 %v5952_v6  ;;  %vm1454_vm12 = vweird.f32 %v5935_v32  ;;  %v1460_v62 = vand.u32 2147483648, %v5935_v32 }
 0x1c9   : > { %v4177_v33 = vpop.eup %4176  ;;  %v1421_v7 = vsub.f32 1.0, %v1420_v51  ;;  %v5964_v53 = vadd.f32 1.0, %v4175_v54  ;;  %vm1425_vm14 = vweird.f32 %v4173_v18  ;;  %vm5970_vm15 = vcmp.eq.f32.partialorder %v1443_v22, 8.507059e+37  ;;  %v750_v16 = vpop.f32.mrf.mxu2 }
 0x1ca   : > { %v1408_v47 = vadd.f32 %v4169_v17, %v1407_v55  ;;  %v4179_v8 = vpop.eup %4178  ;;  %v1435_v4 = vmul.f32 %v4177_v33, %v5933_v34  ;;  %v1446_v60 = vor.u32 1.1754944e-38, %v1445_v42  ;;  %vm3271_vm1 = vcmask 523264   ;;  %vm1426_vm3 = vmor %vm1424_vm8, %vm1425_vm14 }
 0x1cb   : > { %4184 = vpow2.f32 %v3700_v26  ;;  %v1422_v10 = vmul.f32 %v4173_v18, %v1421_v7  ;;  %v1450_v50 = vmul.f32 %v4179_v8, %v5935_v32  ;;  %v1533_v11 = vand.u32 2147483647, %v5952_v6  ;;  %v652_v26 = vpop.f32.mrf.mxu0 }
 0x1cc   : > { %v1412_v13 = vsel %vm1411_vm13, %v4169_v17, %v1408_v47  ;;  %v4181_v5 = vpop.eup %4180  ;;  %v1436_v15 = vsub.f32 1.0, %v1435_v4  ;;  %v1535_v29 = vand.u32 2147483648, %v5952_v6  ;;  %4186 = vrcp.f32 %v5964_v53 }
 0x1cd   : > { %v1417_v61 = vsel %vm5943_vm0, %v1416_v63, %v1412_v13  ;;  %v1423_v12 = vadd.f32 %v4173_v18, %v1422_v10  ;;  %v1451_v35 = vsub.f32 1.0, %v1450_v50  ;;  %vm5981_vm2 = vcmp.eq.f32.partialorder %v1458_v45, 8.507059e+37 }
 0x1ce   : > { %3268 = vst [vmem:[%s4783_s25 + $0x20] sm:$0xff] %v1417_v61  ;;  %v1461_v23 = vor.u32 1.1754944e-38, %v1460_v62  ;;  %v4183_v57 = vpop.eup %4182  ;;  %v1437_v36 = vmul.f32 %v4177_v33, %v1436_v15  ;;  %vm1440_vm4 = vweird.f32 %v4177_v33  ;;  %vm1529_vm5 = vweird.f32 %v5952_v6 }
 0x1cf   : > { %v5989_v24 = vadd.f32 1.0, %v4181_v5  ;;  %v1427_v27 = vsel %vm1426_vm3, %v4173_v18, %v1423_v12  ;;  %v1452_v25 = vmul.f32 %v4179_v8, %v1451_v35  ;;  %vm1455_vm6 = vweird.f32 %v4179_v8  ;;  %vm1441_vm0 = vmor %vm1439_vm11, %vm1440_vm4 }
 0x1d0   : > { %v1525_v20 = vmul.f32 %v4183_v57, %v5952_v6  ;;  %vm5992_vm7 = vcmp.eq.f32.partialorder %v1533_v11, 8.507059e+37  ;;  %v1432_v43 = vsel %vm5955_vm10, %v1431_v31, %v1427_v27  ;;  %v1438_v58 = vadd.f32 %v4177_v33, %v1437_v36  ;;  %vm1456_vm8 = vmor %vm1454_vm12, %vm1455_vm6  ;;  %v701_v31 = vpop.f32.mrf.mxu1 }
 0x1d1   : > { %v4185_v21 = vpop.eup %4184  ;;  %v1536_v28 = vor.u32 1.1754944e-38, %v1535_v29  ;;  %v1548_v48 = vand.u32 2147483647, %v5964_v53  ;;  %3269 = vst [vmem:[%s4783_s25 + $0x28] sm:$0xff] %v1432_v43  ;;  %v1453_v30 = vadd.f32 %v4179_v8, %v1452_v25  ;;  %v1550_v17 = vand.u32 2147483648, %v5964_v53 }
 0x1d2   : > { %v1526_v40 = vsub.f32 1.0, %v1525_v20  ;;  %4188 = vrcp.f32 %v5989_v24  ;;  %v4187_v37 = vpop.eup %4186  ;;  %v1442_v39 = vsel %vm1441_vm0, %v4177_v33, %v1438_v58  ;;  %vm1530_vm9 = vweird.f32 %v4183_v57 }
 0x1d3   : > { %v6008_v56 = vadd.f32 1.0, %v4185_v21  ;;  %v651_v34 = vadd.f32 %v650_v0, %v5822_v52  ;;  %v1447_v2 = vsel %vm5970_vm15, %v1446_v60, %v1442_v39  ;;  %v1457_v46 = vsel %vm1456_vm8, %v4179_v8, %v1453_v30  ;;  %vm1531_vm12 = vmor %vm1529_vm5, %vm1530_vm9  ;;  %v655_v27 = vpop.f32.mrf.mxu0 }
 0x1d4   : > { %v1527_v59 = vmul.f32 %v4183_v57, %v1526_v40  ;;  %v1540_v63 = vmul.f32 %v4187_v37, %v5964_v53  ;;  %3270 = vst [vmem:[%s4783_s25 + $0x30] sm:$0xff] %v1447_v2  ;;  %v1462_v32 = vsel %vm5981_vm2, %v1461_v23, %v1457_v46  ;;  %vm1544_vm10 = vweird.f32 %v5964_v53  ;;  %v799_v23 = vpop.f32.mrf.mxu3 }
 0x1d5   : > { %vm6018_vm11 = vcmp.eq.f32.partialorder %v1548_v48, 8.507059e+37  ;;  %v1563_v22 = vand.u32 2147483647, %v5989_v24  ;;  %3272 = vst.msk [vmem:[%s4783_s25 + $0x38] sm:$0xff] %vm3271_vm1, %v1462_v32  ;;  %v1551_v51 = vor.u32 1.1754944e-38, %v1550_v17  ;;  %4190 = vrcp.f32 %v6008_v56 }
 0x1d6   : > { %v1528_v42 = vadd.f32 %v4183_v57, %v1527_v59  ;;  %v1541_v55 = vsub.f32 1.0, %v1540_v63  ;;  %vm1545_vm13 = vweird.f32 %v4187_v37  ;;  %vm1559_vm14 = vweird.f32 %v5989_v24 }
 0x1d7   : > { %v3705_v44 = vmul.f32 -1.442695, %v651_v34  ;;  %v700_v54 = vadd.f32 %v699_v19, %v5830_v3  ;;  %v749_v7 = vadd.f32 %v748_v49, %v5843_v9  ;;  %v798_v62 = vadd.f32 %v797_v1, %v5845_v38  ;;  %vm1546_vm2 = vmor %vm1544_vm10, %vm1545_vm13 }
 0x1d8   : > { %v4189_v45 = vpop.eup %4188  ;;  %v1532_v33 = vsel %vm1531_vm12, %v4183_v57, %v1528_v42  ;;  %v1542_v47 = vmul.f32 %v4187_v37, %v1541_v55  ;;  %vm6036_vm15 = vcmp.eq.f32.partialorder %v1563_v22, 8.507059e+37  ;;  %v1565_v4 = vand.u32 2147483648, %v5989_v24  ;;  %v704_v17 = vpop.f32.mrf.mxu1 }
 0x1d9   : > { %v1537_v0 = vsel %vm5992_vm7, %v1536_v28, %v1532_v33  ;;  %v1555_v6 = vmul.f32 %v4189_v45, %v5989_v24  ;;  %v1578_v13 = vand.u32 2147483647, %v6008_v56  ;;  %4192 = vpow2.f32 %v3705_v44 }
 0x1da   : > { %3277 = vst [vmem:[%s4783_s25 + $0x60] sm:$0xff] %v1537_v0  ;;  %v1543_v60 = vadd.f32 %v4187_v37, %v1542_v47  ;;  %v3706_v10 = vmul.f32 -1.442695, %v700_v54  ;;  %v3707_v11 = vmul.f32 -1.442695, %v749_v7  ;;  %v653_v61 = vadd.f32 %v652_v26, %v5822_v52 }
 0x1db   : > { %v1556_v50 = vsub.f32 1.0, %v1555_v6  ;;  %v3708_v5 = vmul.f32 -1.442695, %v798_v62  ;;  %v4191_v15 = vpop.eup %4190  ;;  %v702_v19 = vadd.f32 %v701_v31, %v5830_v3  ;;  %v751_v12 = vadd.f32 %v750_v16, %v5843_v9 }
 0x1dc   : > { %v1547_v29 = vsel %vm1546_vm2, %v4187_v37, %v1543_v60  ;;  %4194 = vpow2.f32 %v3706_v10  ;;  %vm1560_vm3 = vweird.f32 %v4189_v45  ;;  %v1570_v53 = vmul.f32 %v4191_v15, %v6008_v56 }
 0x1dd   : > { %v1552_v35 = vsel %vm6018_vm11, %v1551_v51, %v1547_v29  ;;  %v1557_v41 = vmul.f32 %v4189_v45, %v1556_v50  ;;  %v1566_v57 = vor.u32 1.1754944e-38, %v1565_v4  ;;  %4196 = vpow2.f32 %v3707_v11  ;;  %vm1561_vm4 = vmor %vm1559_vm14, %vm1560_vm3  ;;  %v753_v51 = vpop.f32.mrf.mxu2 }
 0x1de   : > { %3278 = vst [vmem:[%s4783_s25 + $0x68] sm:$0xff] %v1552_v35  ;;  %v3713_v36 = vmul.f32 -1.442695, %v653_v61  ;;  %v3714_v49 = vmul.f32 -1.442695, %v702_v19  ;;  %v1571_v20 = vsub.f32 1.0, %v1570_v53  ;;  %4198 = vpow2.f32 %v3708_v5 }
 0x1df   : > { %v1558_v25 = vadd.f32 %v4189_v45, %v1557_v41  ;;  %v1580_v14 = vand.u32 2147483648, %v6008_v56  ;;  %v4193_v21 = vpop.eup %4192  ;;  %vm1575_vm5 = vweird.f32 %v4191_v15  ;;  %v3715_v43 = vmul.f32 -1.442695, %v751_v12 }
 0x1e0   : > { %4200 = vpow2.f32 %v3713_v36  ;;  %v800_v58 = vadd.f32 %v799_v23, %v5845_v38  ;;  %v1572_v48 = vmul.f32 %v4191_v15, %v1571_v20  ;;  %v6057_v30 = vadd.f32 1.0, %v4193_v21 }
 0x1e1   : > { %v1562_v28 = vsel %vm1561_vm4, %v4189_v45, %v1558_v25  ;;  %v656_v40 = vadd.f32 %v655_v27, %v5822_v52  ;;  %4202 = vpow2.f32 %v3714_v49  ;;  %vm1574_vm6 = vweird.f32 %v6008_v56 }
 0x1e2   : > { %v4195_v37 = vpop.eup %4194  ;;  %v1567_v39 = vsel %vm6036_vm15, %v1566_v57, %v1562_v28  ;;  %v1573_v24 = vadd.f32 %v4191_v15, %v1572_v48  ;;  %vm1579_vm7 = vcmp.eq.f32.partialorder %v1578_v13, 8.507059e+37  ;;  %4204 = vrcp.f32 %v6057_v30  ;;  %vm1576_vm0 = vmor %vm1574_vm6, %vm1575_vm5 }
 0x1e3   : > { %3279 = vst [vmem:[%s4783_s25 + $0x70] sm:$0xff] %v1567_v39  ;;  %v4197_v34 = vpop.eup %4196  ;;  %v1581_v1 = vor.u32 1.1754944e-38, %v1580_v14  ;;  %v6066_v2 = vadd.f32 1.0, %v4195_v37  ;;  %4206 = vpow2.f32 %v3715_v43  ;;  %v705_v46 = vadd.f32 %v704_v17, %v5830_v3 }
 0x1e4   : > { %v4199_v59 = vpop.eup %4198  ;;  %v1577_v63 = vsel %vm1576_vm0, %v4191_v15, %v1573_v24  ;;  %v6069_v26 = vadd.f32 1.0, %v4197_v34  ;;  %v3716_v32 = vmul.f32 -1.442695, %v800_v58  ;;  %v3721_v18 = vmul.f32 -1.442695, %v656_v40 }
 0x1e5   : > { %v1582_v22 = vsel %vm1579_vm7, %v1581_v1, %v1577_v63  ;;  %v1653_v42 = vand.u32 2147483647, %v6057_v30  ;;  %v1655_v55 = vand.u32 2147483648, %v6057_v30  ;;  %4208 = vrcp.f32 %v6066_v2 }
 0x1e6   : > { %v4201_v56 = vpop.eup %4200  ;;  %3280 = vst.msk [vmem:[%s4783_s25 + $0x78] sm:$0xff] %vm3271_vm1, %v1582_v22  ;;  %4210 = vrcp.f32 %v6069_v26  ;;  %vm1649_vm8 = vweird.f32 %v6057_v30  ;;  %v6078_v54 = vadd.f32 1.0, %v4199_v59  ;;  %v6082_v45 = vmul.f32 -1.442695, %v705_v46 }
 0x1e7   : > { %v4203_v44 = vpop.eup %4202  ;;  %v6080_v31 = vadd.f32 1.0, %v4201_v56  ;;  %v1668_v47 = vand.u32 2147483647, %v6066_v2  ;;  %v1670_v7 = vand.u32 2147483648, %v6066_v2  ;;  %4212 = vpow2.f32 %v3716_v32 }
 0x1e8   : > { %v4205_v33 = vpop.eup %4204  ;;  %v6087_v62 = vadd.f32 %v753_v51, %v5843_v9  ;;  %vm6090_vm9 = vcmp.eq.f32.partialorder %v1653_v42, 8.507059e+37  ;;  %v1656_v4 = vor.u32 1.1754944e-38, %v1655_v55  ;;  %4214 = vpow2.f32 %v3721_v18 }
 0x1e9   : > { %v4207_v0 = vpop.eup %4206  ;;  %v1645_v6 = vmul.f32 %v4205_v33, %v6057_v30  ;;  %vm1664_vm10 = vweird.f32 %v6066_v2  ;;  %v1683_v16 = vand.u32 2147483647, %v6069_v26  ;;  %4216 = vrcp.f32 %v6078_v54 }
 0x1ea   : > { %v6097_v60 = vadd.f32 1.0, %v4203_v44  ;;  %vm1679_vm11 = vweird.f32 %v6069_v26  ;;  %v1685_v50 = vand.u32 2147483648, %v6069_v26  ;;  %4218 = vrcp.f32 %v6080_v31 }
 0x1eb   : > { %v4209_v13 = vpop.eup %4208  ;;  %v1646_v10 = vsub.f32 1.0, %v1645_v6  ;;  %vm6103_vm12 = vcmp.eq.f32.partialorder %v1668_v47, 8.507059e+37  ;;  %v1671_v15 = vor.u32 1.1754944e-38, %v1670_v7  ;;  %v1700_v29 = vand.u32 2147483648, %v6078_v54 }
 0x1ec   : > { %v4211_v11 = vpop.eup %4210  ;;  %v1660_v5 = vmul.f32 %v4209_v13, %v6066_v2  ;;  %v6108_v19 = vadd.f32 1.0, %v4207_v0  ;;  %vm1650_vm13 = vweird.f32 %v4205_v33  ;;  %v1698_v41 = vand.u32 2147483647, %v6078_v54 }
 0x1ed   : > { %v1647_v12 = vmul.f32 %v4205_v33, %v1646_v10  ;;  %v1675_v35 = vmul.f32 %v4211_v11, %v6069_v26  ;;  %v4213_v53 = vpop.eup %4212  ;;  %vm6112_vm14 = vcmp.eq.f32.partialorder %v1683_v16, 8.507059e+37  ;;  %v1773_v36 = vand.u32 2147483647, %v6080_v31  ;;  %vm1651_vm2 = vmor %vm1649_vm8, %vm1650_vm13 }
 0x1ee   : > { %v1661_v23 = vsub.f32 1.0, %v1660_v5  ;;  %4220 = vrcp.f32 %v6097_v60  ;;  %v4215_v49 = vpop.eup %4214  ;;  %v1686_v20 = vor.u32 1.1754944e-38, %v1685_v50  ;;  %vm1694_vm15 = vweird.f32 %v6078_v54 }
 0x1ef   : > { %v1648_v27 = vadd.f32 %v4205_v33, %v1647_v12  ;;  %v1676_v25 = vsub.f32 1.0, %v1675_v35  ;;  %v4217_v14 = vpop.eup %4216  ;;  %vm1665_vm3 = vweird.f32 %v4209_v13  ;;  %v1701_v43 = vor.u32 1.1754944e-38, %v1700_v29  ;;  %v657_v12 = vpop.f32.mrf.mxu0 }
 0x1f0   : > { %v1662_v21 = vmul.f32 %v4209_v13, %v1661_v23  ;;  %vm1769_vm4 = vweird.f32 %v6080_v31  ;;  %4222 = vrcp.f32 %v6108_v19  ;;  %v4219_v58 = vpop.eup %4218  ;;  %vm1680_vm5 = vweird.f32 %v4211_v11  ;;  %vm1666_vm0 = vmor %vm1664_vm10, %vm1665_vm3 }
 0x1f1   : > { %v1652_v28 = vsel %vm1651_vm2, %v4205_v33, %v1648_v27  ;;  %v1677_v48 = vmul.f32 %v4211_v11, %v1676_v25  ;;  %v1690_v40 = vmul.f32 %v4217_v14, %v6078_v54  ;;  %vm6124_vm6 = vcmp.eq.f32.partialorder %v1698_v41, 8.507059e+37 }
 0x1f2   : > { %v1657_v30 = vsel %vm6090_vm9, %v1656_v4, %v1652_v28  ;;  %v1663_v37 = vadd.f32 %v4209_v13, %v1662_v21  ;;  %v1765_v39 = vmul.f32 %v4219_v58, %v6080_v31  ;;  %vm6131_vm7 = vcmp.eq.f32.partialorder %v1773_v36, 8.507059e+37  ;;  %vm1681_vm9 = vmor %vm1679_vm11, %vm1680_vm5 }
 0x1f3   : > { %v1775_v34 = vand.u32 2147483648, %v6080_v31  ;;  %3285 = vst [vmem:[%s4783_s25 + $0xa0] sm:$0xff] %v1657_v30  ;;  %v1678_v1 = vadd.f32 %v4211_v11, %v1677_v48  ;;  %v1691_v46 = vsub.f32 1.0, %v1690_v40  ;;  %vm1784_vm8 = vweird.f32 %v6097_v60  ;;  %v755_v48 = vpop.f32.mrf.mxu2 }
 0x1f4   : > { %v1788_v59 = vand.u32 2147483647, %v6097_v60  ;;  %v4221_v63 = vpop.eup %4220  ;;  %v1667_v32 = vsel %vm1666_vm0, %v4209_v13, %v1663_v37  ;;  %vm1695_vm13 = vweird.f32 %v4217_v14  ;;  %v1766_v18 = vsub.f32 1.0, %v1765_v39  ;;  %v802_v13 = vpop.f32.mrf.mxu3 }
 0x1f5   : > { %v1790_v56 = vand.u32 2147483648, %v6097_v60  ;;  %v1672_v2 = vsel %vm6103_vm12, %v1671_v15, %v1667_v32  ;;  %v1682_v22 = vsel %vm1681_vm9, %v4211_v11, %v1678_v1  ;;  %v1692_v42 = vmul.f32 %v4217_v14, %v1691_v46  ;;  %vm1696_vm11 = vmor %vm1694_vm15, %vm1695_vm13 }
 0x1f6   : > { %v1780_v55 = vmul.f32 %v4221_v63, %v6097_v60  ;;  %v4223_v51 = vpop.eup %4222  ;;  %3286 = vst [vmem:[%s4783_s25 + $0xa8] sm:$0xff] %v1672_v2  ;;  %v1687_v44 = vsel %vm6112_vm14, %v1686_v20, %v1682_v22  ;;  %v1767_v33 = vmul.f32 %v4219_v58, %v1766_v18  ;;  %vm1770_vm10 = vweird.f32 %v4219_v58 }
 0x1f7   : > { %v1776_v26 = vor.u32 1.1754944e-38, %v1775_v34  ;;  %3287 = vst [vmem:[%s4783_s25 + $0xb0] sm:$0xff] %v1687_v44  ;;  %v1693_v47 = vadd.f32 %v4217_v14, %v1692_v42  ;;  %v1795_v0 = vmul.f32 %v4223_v51, %v6108_v19  ;;  %v1803_v6 = vand.u32 2147483647, %v6108_v19  ;;  %vm1771_vm14 = vmor %vm1769_vm4, %vm1770_vm10 }
 0x1f8   : > { %v1781_v7 = vsub.f32 1.0, %v1780_v55  ;;  %v1768_v8 = vadd.f32 %v4219_v58, %v1767_v33  ;;  %vm1785_vm12 = vweird.f32 %v4221_v63  ;;  %v6158_v4 = vadd.f32 1.0, %v4213_v53  ;;  %v706_v53 = vpop.f32.mrf.mxu1  ;;  %v660_v33 = vpop.f32.mrf.mxu0 }
 0x1f9   : > { %v6160_v16 = vadd.f32 1.0, %v4215_v49  ;;  %v1697_v10 = vsel %vm1696_vm11, %v4217_v14, %v1693_v47  ;;  %v1796_v11 = vsub.f32 1.0, %v1795_v0  ;;  %4224 = vpow2.f32 %v6082_v45  ;;  %vm1786_vm2 = vmor %vm1784_vm8, %vm1785_vm12 }
 0x1fa   : > { %v1782_v50 = vmul.f32 %v4221_v63, %v1781_v7  ;;  %v1702_v54 = vsel %vm6124_vm6, %v1701_v43, %v1697_v10  ;;  %v1772_v5 = vsel %vm1771_vm14, %v4219_v58, %v1768_v8  ;;  %v1805_v61 = vand.u32 2147483648, %v6108_v19 }
 0x1fb   : > { %4226 = vrcp.f32 %v6158_v4  ;;  %3288 = vst.msk [vmem:[%s4783_s25 + $0xb8] sm:$0xff] %vm3271_vm1, %v1702_v54  ;;  %v1777_v15 = vsel %vm6131_vm7, %v1776_v26, %v1772_v5  ;;  %v1797_v31 = vmul.f32 %v4223_v51, %v1796_v11  ;;  %vm1800_vm15 = vweird.f32 %v4223_v51 }
 0x1fc   : > { %v1783_v29 = vadd.f32 %v4221_v63, %v1782_v50  ;;  %3293 = vst [vmem:[%s4783_s25 + $0xe0] sm:$0xff] %v1777_v15  ;;  %v1791_v45 = vor.u32 1.1754944e-38, %v1790_v56  ;;  %4228 = vrcp.f32 %v6160_v16  ;;  %vm1789_vm3 = vcmp.eq.f32.partialorder %v1788_v59, 8.507059e+37  ;;  %v804_v37 = vpop.f32.mrf.mxu3 }
 0x1fd   : > { %v1798_v41 = vadd.f32 %v4223_v51, %v1797_v31  ;;  %vm1799_vm4 = vweird.f32 %v6108_v19  ;;  %vm1804_vm6 = vcmp.eq.f32.partialorder %v1803_v6, 8.507059e+37  ;;  %v1806_v57 = vor.u32 1.1754944e-38, %v1805_v61 }
 0x1fe   : > { %v1787_v35 = vsel %vm1786_vm2, %v4221_v63, %v1783_v29  ;;  %vm1801_vm5 = vmor %vm1799_vm4, %vm1800_vm15  ;;  %v3723_v36 = vmul.f32 -1.442695, %v6087_v62  ;;  %v1818_v27 = vand.u32 2147483647, %v6158_v4  ;;  %v803_v25 = vadd.f32 %v802_v13, %v5845_v38 }
 0x1ff   : > { %v1792_v23 = vsel %vm1789_vm3, %v1791_v45, %v1787_v35  ;;  %v4225_v60 = vpop.eup %4224  ;;  %v1802_v49 = vsel %vm1801_vm5, %v4223_v51, %v1798_v41  ;;  %v658_v20 = vadd.f32 %v657_v12, %v5822_v52  ;;  %v707_v43 = vadd.f32 %v706_v53, %v5830_v3  ;;  %v758_v12 = vpop.f32.mrf.mxu2 }
 0x200   : > { %3294 = vst [vmem:[%s4783_s25 + $0xe8] sm:$0xff] %v1792_v23  ;;  %v1807_v21 = vsel %vm1804_vm6, %v1806_v57, %v1802_v49  ;;  %v6184_v19 = vadd.f32 1.0, %v4225_v60  ;;  %4230 = vpow2.f32 %v3723_v36  ;;  %vm1814_vm7 = vweird.f32 %v6158_v4  ;;  %v709_v6 = vpop.f32.mrf.mxu1  ;;  %v662_v11 = vpop.f32.mrf.mxu0 }
 0x201   : > { %v4227_v14 = vpop.eup %4226  ;;  %3295 = vst [vmem:[%s4783_s25 + $0xf0] sm:$0xff] %v1807_v21  ;;  %v3724_v62 = vmul.f32 -1.442695, %v803_v25  ;;  %v3729_v28 = vmul.f32 -1.442695, %v658_v20  ;;  %v1820_v17 = vand.u32 2147483648, %v6158_v4  ;;  %vm1889_vm0 = vweird.f32 %v6160_v16 }
 0x202   : > { %v1810_v58 = vmul.f32 %v4227_v14, %v6158_v4  ;;  %v4229_v40 = vpop.eup %4228  ;;  %v1893_v30 = vand.u32 2147483647, %v6160_v16  ;;  %4232 = vrcp.f32 %v6184_v19  ;;  %vm6194_vm8 = vcmp.eq.f32.partialorder %v1818_v27, 8.507059e+37 }
 0x203   : > { %v1885_v34 = vmul.f32 %v4229_v40, %v6160_v16  ;;  %4234 = vpow2.f32 %v3724_v62  ;;  %vm1815_vm9 = vweird.f32 %v4227_v14  ;;  %v1895_v1 = vand.u32 2147483648, %v6160_v16 }
 0x204   : > { %v1811_v39 = vsub.f32 1.0, %v1810_v58  ;;  %4236 = vpow2.f32 %v3729_v28  ;;  %v3730_v46 = vmul.f32 -1.442695, %v707_v43  ;;  %v1908_v32 = vand.u32 2147483647, %v6184_v19  ;;  %vm1816_vm11 = vmor %vm1814_vm7, %vm1815_vm9  ;;  %v807_v23 = vpop.f32.mrf.mxu3 }
 0x205   : > { %v1886_v63 = vsub.f32 1.0, %v1885_v34  ;;  %v756_v18 = vadd.f32 %v755_v48, %v5843_v9  ;;  %v1821_v2 = vor.u32 1.1754944e-38, %v1820_v17  ;;  %vm6202_vm13 = vcmp.eq.f32.partialorder %v1893_v30, 8.507059e+37 }
 0x206   : > { %v1812_v59 = vmul.f32 %v4227_v14, %v1811_v39  ;;  %v4231_v56 = vpop.eup %4230  ;;  %v1910_v42 = vand.u32 2147483648, %v6184_v19  ;;  %4238 = vpow2.f32 %v3730_v46  ;;  %vm1890_vm10 = vweird.f32 %v4229_v40 }
 0x207   : > { %v1887_v51 = vmul.f32 %v4229_v40, %v1886_v63  ;;  %v6207_v44 = vadd.f32 1.0, %v4231_v56  ;;  %v1896_v47 = vor.u32 1.1754944e-38, %v1895_v1  ;;  %vm1904_vm12 = vweird.f32 %v6184_v19  ;;  %vm1891_vm15 = vmor %vm1889_vm0, %vm1890_vm10 }
 0x208   : > { %v1813_v55 = vadd.f32 %v4227_v14, %v1812_v59  ;;  %v4233_v26 = vpop.eup %4232  ;;  %v3731_v7 = vmul.f32 -1.442695, %v756_v18  ;;  %v805_v0 = vadd.f32 %v804_v37, %v5845_v38  ;;  %vm6215_vm14 = vcmp.eq.f32.partialorder %v1908_v32, 8.507059e+37 }
 0x209   : > { %v4235_v8 = vpop.eup %4234  ;;  %v1888_v10 = vadd.f32 %v4229_v40, %v1887_v51  ;;  %v1900_v50 = vmul.f32 %v4233_v26, %v6184_v19  ;;  %v1911_v5 = vor.u32 1.1754944e-38, %v1910_v42  ;;  %4240 = vrcp.f32 %v6207_v44 }
 0x20a   : > { %v1817_v13 = vsel %vm1816_vm11, %v4227_v14, %v1813_v55  ;;  %v4237_v54 = vpop.eup %4236  ;;  %v661_v61 = vadd.f32 %v660_v33, %v5822_v52  ;;  %v6228_v31 = vadd.f32 1.0, %v4235_v8  ;;  %v710_v45 = vadd.f32 %v709_v6, %v5830_v3 }
 0x20b   : > { %v1822_v4 = vsel %vm6194_vm8, %v1821_v2, %v1817_v13  ;;  %v1892_v15 = vsel %vm1891_vm15, %v4229_v40, %v1888_v10  ;;  %v1901_v29 = vsub.f32 1.0, %v1900_v50  ;;  %v6233_v41 = vadd.f32 1.0, %v4237_v54 }
 0x20c   : > { %3296 = vst.msk [vmem:[%s4783_s25 + $0xf8] sm:$0xff] %vm3271_vm1, %v1822_v4  ;;  %v4239_v35 = vpop.eup %4238  ;;  %v1897_v16 = vsel %vm6202_vm13, %v1896_v47, %v1892_v15  ;;  %4242 = vpow2.f32 %v3731_v7  ;;  %v3732_v53 = vmul.f32 -1.442695, %v805_v0  ;;  %vm1905_vm2 = vweird.f32 %v4233_v26 }
 0x20d   : > { %3301 = vst [vmem:[%s4783_s25 + $0x120] sm:$0xff] %v1897_v16  ;;  %v1902_v57 = vmul.f32 %v4233_v26, %v1901_v29  ;;  %v1923_v36 = vand.u32 2147483647, %v6207_v44  ;;  %4244 = vrcp.f32 %v6228_v31  ;;  %v1925_v60 = vand.u32 2147483648, %v6207_v44  ;;  %vm1906_vm3 = vmor %vm1904_vm12, %vm1905_vm2 }
 0x20e   : > { %4246 = vrcp.f32 %v6233_v41  ;;  %v3737_v49 = vmul.f32 -1.442695, %v661_v61  ;;  %v759_v27 = vadd.f32 %v758_v12, %v5843_v9  ;;  %v6241_v20 = vadd.f32 1.0, %v4239_v35 }
 0x20f   : > { %v1903_v25 = vadd.f32 %v4233_v26, %v1902_v57  ;;  %v3738_v14 = vmul.f32 -1.442695, %v710_v45  ;;  %v808_v21 = vadd.f32 %v807_v23, %v5845_v38  ;;  %v4241_v43 = vpop.eup %4240  ;;  %vm1919_vm4 = vweird.f32 %v6207_v44 }
 0x210   : > { %v1938_v58 = vand.u32 2147483647, %v6228_v31  ;;  %v1940_v62 = vand.u32 2147483648, %v6228_v31  ;;  %4248 = vpow2.f32 %v3732_v53  ;;  %v1915_v48 = vmul.f32 %v4241_v43, %v6207_v44 }
 0x211   : > { %v1907_v28 = vsel %vm1906_vm3, %v4233_v26, %v1903_v25  ;;  %vm6250_vm5 = vcmp.eq.f32.partialorder %v1923_v36, 8.507059e+37  ;;  %v2013_v17 = vand.u32 2147483647, %v6233_v41  ;;  %v1926_v37 = vor.u32 1.1754944e-38, %v1925_v60 }
 0x212   : > { %v4243_v30 = vpop.eup %4242  ;;  %v1912_v19 = vsel %vm6215_vm14, %v1911_v5, %v1907_v28  ;;  %v2015_v39 = vand.u32 2147483648, %v6233_v41  ;;  %4250 = vrcp.f32 %v6241_v20  ;;  %v1916_v34 = vsub.f32 1.0, %v1915_v48 }
 0x213   : > { %v4245_v24 = vpop.eup %4244  ;;  %3302 = vst [vmem:[%s4783_s25 + $0x128] sm:$0xff] %v1912_v19  ;;  %vm1934_vm6 = vweird.f32 %v6228_v31  ;;  %vm2009_vm7 = vweird.f32 %v6233_v41  ;;  %v6262_v1 = vadd.f32 1.0, %v4243_v30  ;;  %vm6265_vm0 = vcmp.eq.f32.partialorder %v1938_v58, 8.507059e+37 }
 0x214   : > { %v4247_v46 = vpop.eup %4246  ;;  %v1930_v59 = vmul.f32 %v4245_v24, %v6228_v31  ;;  %v1941_v32 = vor.u32 1.1754944e-38, %v1940_v62  ;;  %4252 = vpow2.f32 %v3737_v49  ;;  %v3739_v18 = vmul.f32 -1.442695, %v759_v27 }
 0x215   : > { %v1917_v56 = vmul.f32 %v4241_v43, %v1916_v34  ;;  %vm1920_vm8 = vweird.f32 %v4241_v43  ;;  %v2005_v2 = vmul.f32 %v4247_v46, %v6233_v41  ;;  %vm6270_vm9 = vcmp.eq.f32.partialorder %v2013_v17, 8.507059e+37 }
 0x216   : > { %v4249_v42 = vpop.eup %4248  ;;  %v1931_v55 = vsub.f32 1.0, %v1930_v59  ;;  %v2016_v51 = vor.u32 1.1754944e-38, %v2015_v39  ;;  %v2028_v33 = vand.u32 2147483647, %v6241_v20  ;;  %4254 = vrcp.f32 %v6262_v1  ;;  %vm1921_vm10 = vmor %vm1919_vm4, %vm1920_vm8 }
 0x217   : > { %v1918_v26 = vadd.f32 %v4241_v43, %v1917_v56  ;;  %v2006_v47 = vsub.f32 1.0, %v2005_v2  ;;  %vm2024_vm13 = vweird.f32 %v6241_v20  ;;  %v2030_v7 = vand.u32 2147483648, %v6241_v20 }
 0x218   : > { %v4251_v0 = vpop.eup %4250  ;;  %v1932_v6 = vmul.f32 %v4245_v24, %v1931_v55  ;;  %vm1935_vm11 = vweird.f32 %v4245_v24  ;;  %v6280_v8 = vadd.f32 1.0, %v4249_v42  ;;  %4256 = vpow2.f32 %v3738_v14 }
 0x219   : > { %v1922_v13 = vsel %vm1921_vm10, %v4241_v43, %v1918_v26  ;;  %v2007_v10 = vmul.f32 %v4247_v46, %v2006_v47  ;;  %vm2010_vm12 = vweird.f32 %v4247_v46  ;;  %v2020_v50 = vmul.f32 %v4251_v0, %v6241_v20  ;;  %vm1936_vm15 = vmor %vm1934_vm6, %vm1935_vm11 }
 0x21a   : > { %v4253_v54 = vpop.eup %4252  ;;  %v1927_v4 = vsel %vm6250_vm5, %v1926_v37, %v1922_v13  ;;  %v1933_v5 = vadd.f32 %v4245_v24, %v1932_v6  ;;  %vm6285_vm14 = vcmp.eq.f32.partialorder %v2028_v33, 8.507059e+37  ;;  %v3740_v61 = vmul.f32 -1.442695, %v808_v21  ;;  %vm2011_vm2 = vmor %vm2009_vm7, %vm2010_vm12  ;;  %v711_v37 = vpop.f32.mrf.mxu1 }
 0x21b   : > { %3303 = vst [vmem:[%s4783_s25 + $0x130] sm:$0xff] %v1927_v4  ;;  %v2008_v15 = vadd.f32 %v4247_v46, %v2007_v10  ;;  %v2021_v29 = vsub.f32 1.0, %v2020_v50  ;;  %v2031_v45 = vor.u32 1.1754944e-38, %v2030_v7  ;;  %4258 = vrcp.f32 %v6280_v8  ;;  %v809_v33 = vpop.f32.mrf.mxu3 }
 0x21c   : > { %v4255_v12 = vpop.eup %4254  ;;  %v1937_v35 = vsel %vm1936_vm15, %v4245_v24, %v1933_v5  ;;  %vm2025_vm3 = vweird.f32 %v4251_v0  ;;  %v6296_v16 = vadd.f32 1.0, %v4253_v54  ;;  %v663_v53 = vadd.f32 %v662_v11, %v5822_v52 }
 0x21d   : > { %v1942_v31 = vsel %vm6265_vm0, %v1941_v32, %v1937_v35  ;;  %v2012_v23 = vsel %vm2011_vm2, %v4247_v46, %v2008_v15  ;;  %v2022_v57 = vmul.f32 %v4251_v0, %v2021_v29  ;;  %v2035_v36 = vmul.f32 %v4255_v12, %v6262_v1  ;;  %vm2026_vm5 = vmor %vm2024_vm13, %vm2025_vm3  ;;  %v760_v46 = vpop.f32.mrf.mxu2 }
 0x21e   : > { %v4257_v60 = vpop.eup %4256  ;;  %3304 = vst.msk [vmem:[%s4783_s25 + $0x138] sm:$0xff] %vm3271_vm1, %v1942_v31  ;;  %v2017_v49 = vsel %vm6270_vm9, %v2016_v51, %v2012_v23  ;;  %vm2039_vm4 = vweird.f32 %v6262_v1  ;;  %v2043_v41 = vand.u32 2147483647, %v6262_v1  ;;  %v2045_v27 = vand.u32 2147483648, %v6262_v1 }
 0x21f   : > { %3309 = vst [vmem:[%s4783_s25 + $0x160] sm:$0xff] %v2017_v49  ;;  %v2023_v25 = vadd.f32 %v4251_v0, %v2022_v57  ;;  %v2036_v14 = vsub.f32 1.0, %v2035_v36  ;;  %v2058_v21 = vand.u32 2147483647, %v6280_v8  ;;  %4260 = vrcp.f32 %v6296_v16 }
 0x220   : > { %vm2040_vm6 = vweird.f32 %v4255_v12  ;;  %v2060_v43 = vand.u32 2147483648, %v6280_v8  ;;  %v6316_v58 = vadd.f32 1.0, %v4257_v60  ;;  %4262 = vpow2.f32 %v3739_v18 }
 0x221   : > { %v4259_v62 = vpop.eup %4258  ;;  %v2027_v28 = vsel %vm2026_vm5, %v4251_v0, %v2023_v25  ;;  %v2037_v48 = vmul.f32 %v4255_v12, %v2036_v14  ;;  %4264 = vpow2.f32 %v3740_v61  ;;  %v3745_v40 = vmul.f32 -1.442695, %v663_v53  ;;  %vm2041_vm0 = vmor %vm2039_vm4, %vm2040_vm6 }
 0x222   : > { %v2032_v17 = vsel %vm6285_vm14, %v2031_v45, %v2027_v28  ;;  %vm6320_vm7 = vcmp.eq.f32.partialorder %v2043_v41, 8.507059e+37  ;;  %v2046_v20 = vor.u32 1.1754944e-38, %v2045_v27  ;;  %v2050_v19 = vmul.f32 %v4259_v62, %v6280_v8  ;;  %v665_v41 = vpop.f32.mrf.mxu0  ;;  %v714_v28 = vpop.f32.mrf.mxu1 }
 0x223   : > { %3310 = vst [vmem:[%s4783_s25 + $0x168] sm:$0xff] %v2032_v17  ;;  %v2038_v39 = vadd.f32 %v4255_v12, %v2037_v48  ;;  %v2133_v24 = vand.u32 2147483647, %v6296_v16  ;;  %v2135_v34 = vand.u32 2147483648, %v6296_v16  ;;  %4266 = vrcp.f32 %v6316_v58 }
 0x224   : > { %v2051_v59 = vsub.f32 1.0, %v2050_v19  ;;  %vm2054_vm8 = vweird.f32 %v6280_v8  ;;  %vm6333_vm9 = vcmp.eq.f32.partialorder %v2058_v21, 8.507059e+37  ;;  %4268 = vpow2.f32 %v3745_v40 }
 0x225   : > { %v4261_v32 = vpop.eup %4260  ;;  %v2042_v18 = vsel %vm2041_vm0, %v4255_v12, %v2038_v39  ;;  %vm2055_vm13 = vweird.f32 %v4259_v62  ;;  %v2061_v56 = vor.u32 1.1754944e-38, %v2060_v43  ;;  %v712_v2 = vadd.f32 %v711_v37, %v5830_v3 }
 0x226   : > { %v4263_v22 = vpop.eup %4262  ;;  %v2047_v1 = vsel %vm6320_vm7, %v2046_v20, %v2042_v18  ;;  %v2052_v42 = vmul.f32 %v4259_v62, %v2051_v59  ;;  %v2125_v55 = vmul.f32 %v4261_v32, %v6296_v16  ;;  %v761_v51 = vadd.f32 %v760_v46, %v5843_v9  ;;  %vm2056_vm12 = vmor %vm2054_vm8, %vm2055_vm13 }
 0x227   : > { %v4265_v26 = vpop.eup %4264  ;;  %3311 = vst [vmem:[%s4783_s25 + $0x170] sm:$0xff] %v2047_v1  ;;  %vm2129_vm10 = vweird.f32 %v6296_v16  ;;  %vm6344_vm11 = vcmp.eq.f32.partialorder %v2133_v24, 8.507059e+37  ;;  %v2136_v7 = vor.u32 1.1754944e-38, %v2135_v34  ;;  %v6348_v0 = vadd.f32 1.0, %v4263_v22 }
 0x228   : > { %v2053_v6 = vadd.f32 %v4259_v62, %v2052_v42  ;;  %v2126_v13 = vsub.f32 1.0, %v2125_v55  ;;  %v2148_v10 = vand.u32 2147483647, %v6316_v58  ;;  %v6351_v50 = vadd.f32 1.0, %v4265_v26 }
 0x229   : > { %v4267_v11 = vpop.eup %4266  ;;  %vm2130_vm14 = vweird.f32 %v4261_v32  ;;  %4270 = vrcp.f32 %v6348_v0  ;;  %v3746_v54 = vmul.f32 -1.442695, %v712_v2  ;;  %v810_v4 = vadd.f32 %v809_v33, %v5845_v38  ;;  %v763_v33 = vpop.f32.mrf.mxu2 }
 0x22a   : > { %v4269_v5 = vpop.eup %4268  ;;  %v2057_v44 = vsel %vm2056_vm12, %v4259_v62, %v2053_v6  ;;  %v2127_v61 = vmul.f32 %v4261_v32, %v2126_v13  ;;  %v2140_v15 = vmul.f32 %v4267_v11, %v6316_v58  ;;  %v3747_v29 = vmul.f32 -1.442695, %v761_v51  ;;  %vm2131_vm3 = vmor %vm2129_vm10, %vm2130_vm14 }
 0x22b   : > { %v2062_v45 = vsel %vm6333_vm9, %v2061_v56, %v2057_v44  ;;  %vm2144_vm15 = vweird.f32 %v6316_v58  ;;  %v2150_v8 = vand.u32 2147483648, %v6316_v58  ;;  %4272 = vrcp.f32 %v6351_v50 }
 0x22c   : > { %3312 = vst.msk [vmem:[%s4783_s25 + $0x178] sm:$0xff] %vm3271_vm1, %v2062_v45  ;;  %v2128_v12 = vadd.f32 %v4261_v32, %v2127_v61  ;;  %v2141_v35 = vsub.f32 1.0, %v2140_v15  ;;  %vm6366_vm2 = vcmp.eq.f32.partialorder %v2148_v10, 8.507059e+37  ;;  %v2163_v31 = vand.u32 2147483647, %v6348_v0  ;;  %v812_v15 = vpop.f32.mrf.mxu3 }
 0x22d   : > { %vm2145_vm4 = vweird.f32 %v4267_v11  ;;  %v2165_v23 = vand.u32 2147483648, %v6348_v0  ;;  %v6375_v57 = vadd.f32 1.0, %v4269_v5  ;;  %4274 = vpow2.f32 %v3746_v54 }
 0x22e   : > { %v2132_v36 = vsel %vm2131_vm3, %v4261_v32, %v2128_v12  ;;  %v2142_v60 = vmul.f32 %v4267_v11, %v2141_v35  ;;  %4276 = vpow2.f32 %v3747_v29  ;;  %v3748_v49 = vmul.f32 -1.442695, %v810_v4  ;;  %vm2146_vm7 = vmor %vm2144_vm15, %vm2145_vm4 }
 0x22f   : > { %v4271_v27 = vpop.eup %4270  ;;  %v2137_v25 = vsel %vm6344_vm11, %v2136_v7, %v2132_v36  ;;  %v2151_v14 = vor.u32 1.1754944e-38, %v2150_v8  ;;  %v2178_v16 = vand.u32 2147483647, %v6351_v50  ;;  %4278 = vrcp.f32 %v6375_v57 }
 0x230   : > { %3317 = vst [vmem:[%s4783_s25 + $0x1a0] sm:$0xff] %v2137_v25  ;;  %v2143_v21 = vadd.f32 %v4267_v11, %v2142_v60  ;;  %v2155_v43 = vmul.f32 %v4271_v27, %v6348_v0  ;;  %vm2159_vm5 = vweird.f32 %v6348_v0  ;;  %vm6384_vm6 = vcmp.eq.f32.partialorder %v2163_v31, 8.507059e+37 }
 0x231   : > { %v4273_v48 = vpop.eup %4272  ;;  %v2166_v40 = vor.u32 1.1754944e-38, %v2165_v23  ;;  %vm2174_vm0 = vweird.f32 %v6351_v50  ;;  %v2180_v17 = vand.u32 2147483648, %v6351_v50  ;;  %v666_v30 = vadd.f32 %v665_v41, %v5822_v52 }
 0x232   : > { %v2147_v20 = vsel %vm2146_vm7, %v4267_v11, %v2143_v21  ;;  %v2156_v19 = vsub.f32 1.0, %v2155_v43  ;;  %v2170_v37 = vmul.f32 %v4273_v48, %v6351_v50  ;;  %4280 = vpow2.f32 %v3748_v49 }
 0x233   : > { %v4275_v39 = vpop.eup %4274  ;;  %v2152_v24 = vsel %vm6366_vm2, %v2151_v14, %v2147_v20  ;;  %vm6397_vm8 = vcmp.eq.f32.partialorder %v2178_v16, 8.507059e+37  ;;  %v3753_v34 = vmul.f32 -1.442695, %v666_v30  ;;  %v715_v46 = vadd.f32 %v714_v28, %v5830_v3 }
 0x234   : > { %v4277_v59 = vpop.eup %4276  ;;  %3318 = vst [vmem:[%s4783_s25 + $0x1a8] sm:$0xff] %v2152_v24  ;;  %v2157_v63 = vmul.f32 %v4271_v27, %v2156_v19  ;;  %vm2160_vm9 = vweird.f32 %v4271_v27  ;;  %v2171_v32 = vsub.f32 1.0, %v2170_v37  ;;  %v6403_v18 = vadd.f32 1.0, %v4275_v39 }
 0x235   : > { %v4279_v56 = vpop.eup %4278  ;;  %v2253_v2 = vand.u32 2147483647, %v6375_v57  ;;  %v2255_v22 = vand.u32 2147483648, %v6375_v57  ;;  %v6407_v1 = vadd.f32 1.0, %v4277_v59  ;;  %4282 = vpow2.f32 %v3753_v34  ;;  %vm2161_vm10 = vmor %vm2159_vm5, %vm2160_vm9  ;;  %v716_v34 = vpop.f32.mrf.mxu1 }
 0x236   : > { %v2158_v42 = vadd.f32 %v4271_v27, %v2157_v63  ;;  %v2172_v55 = vmul.f32 %v4273_v48, %v2171_v32  ;;  %vm2175_vm13 = vweird.f32 %v4273_v48  ;;  %v2245_v51 = vmul.f32 %v4279_v56, %v6375_v57 }
 0x237   : > { %v2181_v26 = vor.u32 1.1754944e-38, %v2180_v17  ;;  %vm2249_vm11 = vweird.f32 %v6375_v57  ;;  %4284 = vrcp.f32 %v6403_v18  ;;  %v3754_v47 = vmul.f32 -1.442695, %v715_v46  ;;  %vm2176_vm12 = vmor %vm2174_vm0, %vm2175_vm13 }
 0x238   : > { %v4281_v7 = vpop.eup %4280  ;;  %v2162_v6 = vsel %vm2161_vm10, %v4271_v27, %v2158_v42  ;;  %v2173_v13 = vadd.f32 %v4273_v48, %v2172_v55  ;;  %v2246_v10 = vsub.f32 1.0, %v2245_v51  ;;  %4286 = vrcp.f32 %v6407_v1 }
 0x239   : > { %v2167_v11 = vsel %vm6384_vm6, %v2166_v40, %v2162_v6  ;;  %vm6419_vm14 = vcmp.eq.f32.partialorder %v2253_v2, 8.507059e+37  ;;  %v2256_v54 = vor.u32 1.1754944e-38, %v2255_v22  ;;  %v764_v4 = vadd.f32 %v763_v33, %v5843_v9 }
 0x23a   : > { %3319 = vst [vmem:[%s4783_s25 + $0x1b0] sm:$0xff] %v2167_v11  ;;  %v2177_v5 = vsel %vm2176_vm12, %v4273_v48, %v2173_v13  ;;  %v2247_v44 = vmul.f32 %v4279_v56, %v2246_v10  ;;  %vm2250_vm15 = vweird.f32 %v4279_v56  ;;  %v2268_v61 = vand.u32 2147483647, %v6403_v18  ;;  %v667_v48 = vpop.f32.mrf.mxu0 }
 0x23b   : > { %v4283_v29 = vpop.eup %4282  ;;  %v2182_v50 = vsel %vm6397_vm8, %v2181_v26, %v2177_v5  ;;  %v2270_v45 = vand.u32 2147483648, %v6403_v18  ;;  %v6429_v8 = vadd.f32 1.0, %v4281_v7  ;;  %4288 = vpow2.f32 %v3754_v47  ;;  %vm2251_vm2 = vmor %vm2249_vm11, %vm2250_vm15  ;;  %v765_v5 = vpop.f32.mrf.mxu2 }
 0x23c   : > { %3320 = vst.msk [vmem:[%s4783_s25 + $0x1b8] sm:$0xff] %vm3271_vm1, %v2182_v50  ;;  %v2248_v12 = vadd.f32 %v4279_v56, %v2247_v44  ;;  %v2283_v35 = vand.u32 2147483647, %v6407_v1  ;;  %v2285_v53 = vand.u32 2147483648, %v6407_v1  ;;  %v6435_v31 = vadd.f32 1.0, %v4283_v29  ;;  %v814_v44 = vpop.f32.mrf.mxu3 }
 0x23d   : > { %v4285_v23 = vpop.eup %4284  ;;  %vm2264_vm3 = vweird.f32 %v6403_v18  ;;  %4290 = vrcp.f32 %v6429_v8  ;;  %v3755_v36 = vmul.f32 -1.442695, %v764_v4  ;;  %v813_v60 = vadd.f32 %v812_v15, %v5845_v38 }
 0x23e   : > { %v4287_v49 = vpop.eup %4286  ;;  %v2252_v41 = vsel %vm2251_vm2, %v4279_v56, %v2248_v12  ;;  %v2260_v27 = vmul.f32 %v4285_v23, %v6403_v18  ;;  %vm6443_vm4 = vcmp.eq.f32.partialorder %v2268_v61, 8.507059e+37  ;;  %4292 = vrcp.f32 %v6435_v31 }
 0x23f   : > { %v2257_v57 = vsel %vm6419_vm14, %v2256_v54, %v2252_v41  ;;  %v2271_v14 = vor.u32 1.1754944e-38, %v2270_v45  ;;  %v2275_v16 = vmul.f32 %v4287_v49, %v6407_v1  ;;  %vm2279_vm5 = vweird.f32 %v6407_v1 }
 0x240   : > { %3325 = vst [vmem:[%s4783_s25 + $0x1e0] sm:$0xff] %v2257_v57  ;;  %v2261_v21 = vsub.f32 1.0, %v2260_v27  ;;  %vm6453_vm6 = vcmp.eq.f32.partialorder %v2283_v35, 8.507059e+37  ;;  %v2286_v62 = vor.u32 1.1754944e-38, %v2285_v53  ;;  %v2298_v28 = vand.u32 2147483647, %v6429_v8 }
 0x241   : > { %v4289_v40 = vpop.eup %4288  ;;  %v2276_v17 = vsub.f32 1.0, %v2275_v16  ;;  %v2300_v30 = vand.u32 2147483648, %v6429_v8  ;;  %4294 = vpow2.f32 %v3755_v36  ;;  %v3756_v20 = vmul.f32 -1.442695, %v813_v60 }
 0x242   : > { %v2262_v19 = vmul.f32 %v4285_v23, %v2261_v21  ;;  %vm2265_vm7 = vweird.f32 %v4285_v23  ;;  %vm2294_vm0 = vweird.f32 %v6429_v8  ;;  %v6460_v37 = vadd.f32 1.0, %v4289_v40  ;;  %v719_v40 = vpop.f32.mrf.mxu1 }
 0x243   : > { %v4291_v39 = vpop.eup %4290  ;;  %v2277_v24 = vmul.f32 %v4287_v49, %v2276_v17  ;;  %vm2280_vm8 = vweird.f32 %v4287_v49  ;;  %4296 = vpow2.f32 %v3756_v20  ;;  %v668_v58 = vadd.f32 %v667_v48, %v5822_v52  ;;  %vm2266_vm13 = vmor %vm2264_vm3, %vm2265_vm7 }
 0x244   : > { %v4293_v46 = vpop.eup %4292  ;;  %v2263_v59 = vadd.f32 %v4285_v23, %v2262_v19  ;;  %v2290_v63 = vmul.f32 %v4291_v39, %v6429_v8  ;;  %vm6464_vm9 = vcmp.eq.f32.partialorder %v2298_v28, 8.507059e+37  ;;  %v2373_v56 = vand.u32 2147483647, %v6435_v31  ;;  %vm2281_vm11 = vmor %vm2279_vm5, %vm2280_vm8 }
 0x245   : > { %4298 = vrcp.f32 %v6460_v37  ;;  %v2278_v2 = vadd.f32 %v4287_v49, %v2277_v24  ;;  %v2301_v22 = vor.u32 1.1754944e-38, %v2300_v30  ;;  %v2365_v42 = vmul.f32 %v4293_v46, %v6435_v31 }
 0x246   : > { %vm2369_vm10 = vweird.f32 %v6435_v31  ;;  %v2267_v55 = vsel %vm2266_vm13, %v4285_v23, %v2263_v59  ;;  %v2291_v51 = vsub.f32 1.0, %v2290_v63  ;;  %v2375_v33 = vand.u32 2147483648, %v6435_v31 }
 0x247   : > { %v717_v26 = vadd.f32 %v716_v34, %v5830_v3  ;;  %v4295_v18 = vpop.eup %4294  ;;  %v2272_v47 = vsel %vm6443_vm4, %v2271_v14, %v2267_v55  ;;  %v2282_v7 = vsel %vm2281_vm11, %v4287_v49, %v2278_v2  ;;  %v2366_v6 = vsub.f32 1.0, %v2365_v42  ;;  %v670_v14 = vpop.f32.mrf.mxu0 }
 0x248   : > { %v3761_v13 = vmul.f32 -1.442695, %v668_v58  ;;  %3326 = vst [vmem:[%s4783_s25 + $0x1e8] sm:$0xff] %v2272_v47  ;;  %v2287_v10 = vsel %vm6453_vm6, %v2286_v62, %v2282_v7  ;;  %v2292_v11 = vmul.f32 %v4291_v39, %v2291_v51  ;;  %vm2295_vm12 = vweird.f32 %v4291_v39 }
 0x249   : > { %vm6485_vm14 = vcmp.eq.f32.partialorder %v2373_v56, 8.507059e+37  ;;  %v4297_v0 = vpop.eup %4296  ;;  %3327 = vst [vmem:[%s4783_s25 + $0x1f0] sm:$0xff] %v2287_v10  ;;  %v2367_v54 = vmul.f32 %v4293_v46, %v2366_v6  ;;  %vm2370_vm15 = vweird.f32 %v4293_v46  ;;  %v6490_v4 = vadd.f32 1.0, %v4295_v18  ;;  %vm2296_vm2 = vmor %vm2294_vm0, %vm2295_vm12 }
 0x24a   : > { %4300 = vpow2.f32 %v3761_v13  ;;  %v2293_v15 = vadd.f32 %v4291_v39, %v2292_v11  ;;  %v2376_v29 = vor.u32 1.1754944e-38, %v2375_v33  ;;  %v2388_v50 = vand.u32 2147483647, %v6460_v37  ;;  %vm2371_vm3 = vmor %vm2369_vm10, %vm2370_vm15  ;;  %v768_v11 = vpop.f32.mrf.mxu2 }
 0x24b   : > { %v4299_v61 = vpop.eup %4298  ;;  %v6493_v45 = vadd.f32 1.0, %v4297_v0  ;;  %v2368_v12 = vadd.f32 %v4293_v46, %v2367_v54  ;;  %4302 = vrcp.f32 %v6490_v4  ;;  %v3762_v53 = vmul.f32 -1.442695, %v717_v26 }
 0x24c   : > { %v2380_v35 = vmul.f32 %v4299_v61, %v6460_v37  ;;  %v2297_v23 = vsel %vm2296_vm2, %v4291_v39, %v2293_v15  ;;  %v2390_v36 = vand.u32 2147483648, %v6460_v37  ;;  %v766_v60 = vadd.f32 %v765_v5, %v5843_v9 }
 0x24d   : > { %v815_v49 = vadd.f32 %v814_v44, %v5845_v38  ;;  %v2302_v8 = vsel %vm6464_vm9, %v2301_v22, %v2297_v23  ;;  %v2372_v41 = vsel %vm2371_vm3, %v4293_v46, %v2368_v12  ;;  %4304 = vrcp.f32 %v6493_v45 }
 0x24e   : > { %v2381_v27 = vsub.f32 1.0, %v2380_v35  ;;  %3328 = vst.msk [vmem:[%s4783_s25 + $0x1f8] sm:$0xff] %vm3271_vm1, %v2302_v8  ;;  %v2377_v25 = vsel %vm6485_vm14, %v2376_v29, %v2372_v41  ;;  %v2403_v31 = vand.u32 2147483647, %v6490_v4  ;;  %v2405_v57 = vand.u32 2147483648, %v6490_v4 }
 0x24f   : > { %3333 = vst [vmem:[%s4783_s25 + $0x220] sm:$0xff] %v2377_v25  ;;  %vm2384_vm4 = vweird.f32 %v6460_v37  ;;  %vm2385_vm5 = vweird.f32 %v4299_v61  ;;  %4306 = vpow2.f32 %v3762_v53  ;;  %vm6517_vm6 = vcmp.eq.f32.partialorder %v2388_v50, 8.507059e+37  ;;  %v817_v53 = vpop.f32.mrf.mxu3  ;;  %v672_v23 = vpop.f32.mrf.mxu0 }
 0x250   : > { %v4301_v16 = vpop.eup %4300  ;;  %v2382_v21 = vmul.f32 %v4299_v61, %v2381_v27  ;;  %v2391_v62 = vor.u32 1.1754944e-38, %v2390_v36  ;;  %v3763_v48 = vmul.f32 -1.442695, %v766_v60  ;;  %vm2399_vm7 = vweird.f32 %v6490_v4  ;;  %vm2386_vm0 = vmor %vm2384_vm4, %vm2385_vm5 }
 0x251   : > { %v6521_v28 = vadd.f32 1.0, %v4301_v16  ;;  %v4303_v17 = vpop.eup %4302  ;;  %v3764_v20 = vmul.f32 -1.442695, %v815_v49  ;;  %v671_v19 = vadd.f32 %v670_v14, %v5822_v52  ;;  %vm6526_vm8 = vcmp.eq.f32.partialorder %v2403_v31, 8.507059e+37 }
 0x252   : > { %v2383_v30 = vadd.f32 %v4299_v61, %v2382_v21  ;;  %v2395_v37 = vmul.f32 %v4303_v17, %v6490_v4  ;;  %v2406_v24 = vor.u32 1.1754944e-38, %v2405_v57  ;;  %v2418_v46 = vand.u32 2147483647, %v6493_v45 }
 0x253   : > { %4308 = vrcp.f32 %v6521_v28  ;;  %v4305_v58 = vpop.eup %4304  ;;  %v720_v59 = vadd.f32 %v719_v40, %v5830_v3  ;;  %v2420_v2 = vand.u32 2147483648, %v6493_v45  ;;  %vm2400_vm9 = vweird.f32 %v4303_v17 }
 0x254   : > { %v2387_v34 = vsel %vm2386_vm0, %v4299_v61, %v2383_v30  ;;  %4310 = vpow2.f32 %v3763_v48  ;;  %v2396_v32 = vsub.f32 1.0, %v2395_v37  ;;  %v2410_v56 = vmul.f32 %v4305_v58, %v6493_v45  ;;  %vm2401_vm12 = vmor %vm2399_vm7, %vm2400_vm9  ;;  %v721_v48 = vpop.f32.mrf.mxu1 }
 0x255   : > { %v2392_v63 = vsel %vm6517_vm6, %v2391_v62, %v2387_v34  ;;  %v4307_v22 = vpop.eup %4306  ;;  %v2493_v42 = vand.u32 2147483647, %v6521_v28  ;;  %4312 = vpow2.f32 %v3764_v20  ;;  %v3769_v55 = vmul.f32 -1.442695, %v671_v19 }
 0x256   : > { %3334 = vst [vmem:[%s4783_s25 + $0x228] sm:$0xff] %v2392_v63  ;;  %v2397_v51 = vmul.f32 %v4303_v17, %v2396_v32  ;;  %v2411_v33 = vsub.f32 1.0, %v2410_v56  ;;  %v2495_v26 = vand.u32 2147483648, %v6521_v28  ;;  %v6540_v18 = vadd.f32 1.0, %v4307_v22 }
 0x257   : > { %vm2414_vm13 = vweird.f32 %v6493_v45  ;;  %vm6543_vm10 = vcmp.eq.f32.partialorder %v2418_v46, 8.507059e+37  ;;  %4314 = vpow2.f32 %v3769_v55  ;;  %v3770_v7 = vmul.f32 -1.442695, %v720_v59 }
 0x258   : > { %v2398_v13 = vadd.f32 %v4303_v17, %v2397_v51  ;;  %v2412_v10 = vmul.f32 %v4305_v58, %v2411_v33  ;;  %vm2415_vm11 = vweird.f32 %v4305_v58  ;;  %4316 = vrcp.f32 %v6540_v18 }
 0x259   : > { %v4309_v6 = vpop.eup %4308  ;;  %v2421_v0 = vor.u32 1.1754944e-38, %v2420_v2  ;;  %vm2489_vm14 = vweird.f32 %v6521_v28  ;;  %vm6553_vm15 = vcmp.eq.f32.partialorder %v2493_v42, 8.507059e+37  ;;  %v2496_v15 = vor.u32 1.1754944e-38, %v2495_v26  ;;  %vm2416_vm2 = vmor %vm2414_vm13, %vm2415_vm11 }
 0x25a   : > { %v4311_v1 = vpop.eup %4310  ;;  %v2485_v54 = vmul.f32 %v4309_v6, %v6521_v28  ;;  %v2402_v44 = vsel %vm2401_vm12, %v4303_v17, %v2398_v13  ;;  %v2413_v61 = vadd.f32 %v4305_v58, %v2412_v10  ;;  %4318 = vpow2.f32 %v3770_v7 }
 0x25b   : > { %v6557_v29 = vadd.f32 1.0, %v4311_v1  ;;  %v4313_v50 = vpop.eup %4312  ;;  %v2407_v4 = vsel %vm6526_vm8, %v2406_v24, %v2402_v44  ;;  %v769_v35 = vadd.f32 %v768_v11, %v5843_v9  ;;  %v2508_v60 = vand.u32 2147483647, %v6540_v18  ;;  %v770_v1 = vpop.f32.mrf.mxu2 }
 0x25c   : > { %v2486_v12 = vsub.f32 1.0, %v2485_v54  ;;  %3335 = vst [vmem:[%s4783_s25 + $0x230] sm:$0xff] %v2407_v4  ;;  %v2417_v36 = vsel %vm2416_vm2, %v4305_v58, %v2413_v61  ;;  %v2510_v49 = vand.u32 2147483648, %v6540_v18  ;;  %vm2490_vm3 = vweird.f32 %v4309_v6  ;;  %v819_v44 = vpop.f32.mrf.mxu3 }
 0x25d   : > { %4320 = vrcp.f32 %v6557_v29  ;;  %v4315_v8 = vpop.eup %4314  ;;  %v2422_v45 = vsel %vm6543_vm10, %v2421_v0, %v2417_v36  ;;  %v6571_v27 = vadd.f32 1.0, %v4313_v50  ;;  %vm2504_vm4 = vweird.f32 %v6540_v18  ;;  %vm2491_vm5 = vmor %vm2489_vm14, %vm2490_vm3 }
 0x25e   : > { %v2487_v41 = vmul.f32 %v4309_v6, %v2486_v12  ;;  %v4317_v25 = vpop.eup %4316  ;;  %3336 = vst.msk [vmem:[%s4783_s25 + $0x238] sm:$0xff] %vm3271_vm1, %v2422_v45  ;;  %v6576_v31 = vadd.f32 1.0, %v4315_v8  ;;  %v818_v57 = vadd.f32 %v817_v53, %v5845_v38  ;;  %v673_v14 = vadd.f32 %v672_v23, %v5822_v52 }
 0x25f   : > { %v2500_v21 = vmul.f32 %v4317_v25, %v6540_v18  ;;  %v2523_v43 = vand.u32 2147483647, %v6557_v29  ;;  %v2525_v62 = vand.u32 2147483648, %v6557_v29  ;;  %vm6585_vm6 = vcmp.eq.f32.partialorder %v2508_v60, 8.507059e+37 }
 0x260   : > { %v2488_v16 = vadd.f32 %v4309_v6, %v2487_v41  ;;  %v2511_v17 = vor.u32 1.1754944e-38, %v2510_v49  ;;  %4322 = vrcp.f32 %v6571_v27  ;;  %v3771_v30 = vmul.f32 -1.442695, %v769_v35  ;;  %v4319_v20 = vpop.eup %4318 }
 0x261   : > { %v2501_v37 = vsub.f32 1.0, %v2500_v21  ;;  %vm2519_vm7 = vweird.f32 %v6557_v29  ;;  %4324 = vrcp.f32 %v6576_v31  ;;  %vm2505_vm0 = vweird.f32 %v4317_v25 }
 0x262   : > { %v2492_v19 = vsel %vm2491_vm5, %v4309_v6, %v2488_v16  ;;  %v2540_v24 = vand.u32 2147483648, %v6571_v27  ;;  %v722_v58 = vadd.f32 %v721_v48, %v5830_v3  ;;  %vm6598_vm8 = vcmp.eq.f32.partialorder %v2523_v43, 8.507059e+37  ;;  %vm2506_vm13 = vmor %vm2504_vm4, %vm2505_vm0 }
 0x263   : > { %v4321_v39 = vpop.eup %4320  ;;  %v2497_v28 = vsel %vm6553_vm15, %v2496_v15, %v2492_v19  ;;  %v2502_v34 = vmul.f32 %v4317_v25, %v2501_v37  ;;  %v2526_v63 = vor.u32 1.1754944e-38, %v2525_v62  ;;  %v2538_v32 = vand.u32 2147483647, %v6571_v27 }
 0x264   : > { %3341 = vst [vmem:[%s4783_s25 + $0x260] sm:$0xff] %v2497_v28  ;;  %v2515_v46 = vmul.f32 %v4321_v39, %v6557_v29  ;;  %v2613_v56 = vand.u32 2147483647, %v6576_v31  ;;  %v2615_v2 = vand.u32 2147483648, %v6576_v31  ;;  %v6605_v22 = vadd.f32 1.0, %v4319_v20 }
 0x265   : > { %4326 = vpow2.f32 %v3771_v30  ;;  %v2503_v42 = vadd.f32 %v4317_v25, %v2502_v34  ;;  %vm2534_vm9 = vweird.f32 %v6571_v27  ;;  %v3772_v51 = vmul.f32 -1.442695, %v818_v57 }
 0x266   : > { %v2516_v55 = vsub.f32 1.0, %v2515_v46  ;;  %v4323_v33 = vpop.eup %4322  ;;  %v2541_v26 = vor.u32 1.1754944e-38, %v2540_v24  ;;  %vm2609_vm10 = vweird.f32 %v6576_v31  ;;  %4328 = vrcp.f32 %v6605_v22  ;;  %v724_v46 = vpop.f32.mrf.mxu1 }
 0x267   : > { %v3777_v47 = vmul.f32 -1.442695, %v673_v14  ;;  %v4325_v7 = vpop.eup %4324  ;;  %v2507_v6 = vsel %vm2506_vm13, %v4317_v25, %v2503_v42  ;;  %vm2520_vm11 = vweird.f32 %v4321_v39  ;;  %v2530_v10 = vmul.f32 %v4323_v33, %v6571_v27 }
 0x268   : > { %v2517_v13 = vmul.f32 %v4321_v39, %v2516_v55  ;;  %vm6614_vm12 = vcmp.eq.f32.partialorder %v2538_v32, 8.507059e+37  ;;  %v2512_v18 = vsel %vm6585_vm6, %v2511_v17, %v2507_v6  ;;  %v2605_v0 = vmul.f32 %v4325_v7, %v6576_v31  ;;  %vm2521_vm2 = vmor %vm2519_vm7, %vm2520_vm11 }
 0x269   : > { %vm6621_vm14 = vcmp.eq.f32.partialorder %v2613_v56, 8.507059e+37  ;;  %v2616_v5 = vor.u32 1.1754944e-38, %v2615_v2  ;;  %3342 = vst [vmem:[%s4783_s25 + $0x268] sm:$0xff] %v2512_v18  ;;  %v2531_v15 = vsub.f32 1.0, %v2530_v10  ;;  %vm2535_vm15 = vweird.f32 %v4323_v33 }
 0x26a   : > { %v2518_v61 = vadd.f32 %v4321_v39, %v2517_v13  ;;  %4330 = vpow2.f32 %v3772_v51  ;;  %v2606_v4 = vsub.f32 1.0, %v2605_v0  ;;  %v3778_v12 = vmul.f32 -1.442695, %v722_v58  ;;  %vm2536_vm5 = vmor %vm2534_vm9, %vm2535_vm15  ;;  %v773_v51 = vpop.f32.mrf.mxu2 }
 0x26b   : > { %v4327_v50 = vpop.eup %4326  ;;  %4332 = vpow2.f32 %v3777_v47  ;;  %v771_v35 = vadd.f32 %v770_v1, %v5843_v9  ;;  %v2532_v23 = vmul.f32 %v4323_v33, %v2531_v15  ;;  %v820_v60 = vadd.f32 %v819_v44, %v5845_v38 }
 0x26c   : > { %v2522_v53 = vsel %vm2521_vm2, %v4321_v39, %v2518_v61  ;;  %v6630_v36 = vadd.f32 1.0, %v4327_v50  ;;  %v4329_v49 = vpop.eup %4328  ;;  %v2607_v45 = vmul.f32 %v4325_v7, %v2606_v4  ;;  %vm2610_vm3 = vweird.f32 %v4325_v7  ;;  %v675_v39 = vpop.f32.mrf.mxu0 }
 0x26d   : > { %v2527_v8 = vsel %vm6598_vm8, %v2526_v63, %v2522_v53  ;;  %v3779_v41 = vmul.f32 -1.442695, %v771_v35  ;;  %v2533_v29 = vadd.f32 %v4323_v33, %v2532_v23  ;;  %v2620_v25 = vmul.f32 %v4329_v49, %v6605_v22  ;;  %vm2611_vm6 = vmor %vm2609_vm10, %vm2610_vm3 }
 0x26e   : > { %3343 = vst [vmem:[%s4783_s25 + $0x270] sm:$0xff] %v2527_v8  ;;  %vm2624_vm4 = vweird.f32 %v6605_v22  ;;  %4334 = vrcp.f32 %v6630_v36  ;;  %v2608_v57 = vadd.f32 %v4325_v7, %v2607_v45  ;;  %v2628_v14 = vand.u32 2147483647, %v6605_v22 }
 0x26f   : > { %v2630_v16 = vand.u32 2147483648, %v6605_v22  ;;  %4336 = vpow2.f32 %v3778_v12  ;;  %v2537_v43 = vsel %vm2536_vm5, %v4323_v33, %v2533_v29  ;;  %v2621_v62 = vsub.f32 1.0, %v2620_v25 }
 0x270   : > { %v4331_v21 = vpop.eup %4330  ;;  %4338 = vpow2.f32 %v3779_v41  ;;  %v3780_v48 = vmul.f32 -1.442695, %v820_v60  ;;  %v2542_v27 = vsel %vm6614_vm12, %v2541_v26, %v2537_v43  ;;  %v2612_v17 = vsel %vm2611_vm6, %v4325_v7, %v2608_v57 }
 0x271   : > { %v4333_v40 = vpop.eup %4332  ;;  %vm2625_vm7 = vweird.f32 %v4329_v49  ;;  %v2643_v30 = vand.u32 2147483647, %v6630_v36  ;;  %3344 = vst.msk [vmem:[%s4783_s25 + $0x278] sm:$0xff] %vm3271_vm1, %v2542_v27  ;;  %v2617_v20 = vsel %vm6621_vm14, %v2616_v5, %v2612_v17  ;;  %v2622_v19 = vmul.f32 %v4329_v49, %v2621_v62 }
 0x272   : > { %v6653_v37 = vadd.f32 1.0, %v4331_v21  ;;  %v6655_v31 = vadd.f32 1.0, %v4333_v40  ;;  %3349 = vst [vmem:[%s4783_s25 + $0x2a0] sm:$0xff] %v2617_v20  ;;  %4340 = vpow2.f32 %v3780_v48  ;;  %vm6658_vm0 = vcmp.eq.f32.partialorder %v2628_v14, 8.507059e+37  ;;  %vm2626_vm8 = vmor %vm2624_vm4, %vm2625_vm7  ;;  %v822_v14 = vpop.f32.mrf.mxu3 }
 0x273   : > { %v2623_v24 = vadd.f32 %v4329_v49, %v2622_v19  ;;  %v2631_v34 = vor.u32 1.1754944e-38, %v2630_v16  ;;  %vm2639_vm9 = vweird.f32 %v6630_v36  ;;  %v2645_v32 = vand.u32 2147483648, %v6630_v36 }
 0x274   : > { %v4335_v28 = vpop.eup %4334  ;;  %4342 = vrcp.f32 %v6653_v37  ;;  %vm6670_vm13 = vcmp.eq.f32.partialorder %v2643_v30, 8.507059e+37  ;;  %v2660_v55 = vand.u32 2147483648, %v6653_v37  ;;  %v676_v22 = vadd.f32 %v675_v39, %v5822_v52 }
 0x275   : > { %v4337_v59 = vpop.eup %4336  ;;  %v2635_v63 = vmul.f32 %v4335_v28, %v6630_v36  ;;  %4344 = vrcp.f32 %v6655_v31  ;;  %v2627_v2 = vsel %vm2626_vm8, %v4329_v49, %v2623_v24  ;;  %v2658_v47 = vand.u32 2147483647, %v6653_v37 }
 0x276   : > { %v4339_v56 = vpop.eup %4338  ;;  %v2632_v33 = vsel %vm6658_vm0, %v2631_v34, %v2627_v2  ;;  %v725_v7 = vadd.f32 %v724_v46, %v5830_v3  ;;  %v2733_v6 = vand.u32 2147483647, %v6655_v31  ;;  %v2735_v13 = vand.u32 2147483648, %v6655_v31 }
 0x277   : > { %v2636_v26 = vsub.f32 1.0, %v2635_v63  ;;  %3350 = vst [vmem:[%s4783_s25 + $0x2a8] sm:$0xff] %v2632_v33  ;;  %v6683_v10 = vadd.f32 1.0, %v4337_v59  ;;  %v6685_v11 = vadd.f32 1.0, %v4339_v56  ;;  %vm2640_vm10 = vweird.f32 %v4335_v28 }
 0x278   : > { %v4341_v1 = vpop.eup %4340  ;;  %v2646_v0 = vor.u32 1.1754944e-38, %v2645_v32  ;;  %v774_v54 = vadd.f32 %v773_v51, %v5843_v9  ;;  %vm2654_vm11 = vweird.f32 %v6653_v37  ;;  %v2661_v44 = vor.u32 1.1754944e-38, %v2660_v55  ;;  %vm2641_vm15 = vmor %vm2639_vm9, %vm2640_vm10 }
 0x279   : > { %v2637_v18 = vmul.f32 %v4335_v28, %v2636_v26  ;;  %vm2729_vm12 = vweird.f32 %v6655_v31  ;;  %4346 = vrcp.f32 %v6683_v10  ;;  %vm6692_vm14 = vcmp.eq.f32.partialorder %v2658_v47, 8.507059e+37 }
 0x27a   : > { %v4343_v5 = vpop.eup %4342  ;;  %4348 = vrcp.f32 %v6685_v11  ;;  %v3785_v12 = vmul.f32 -1.442695, %v676_v22  ;;  %vm6700_vm2 = vcmp.eq.f32.partialorder %v2733_v6, 8.507059e+37  ;;  %v2736_v23 = vor.u32 1.1754944e-38, %v2735_v13 }
 0x27b   : > { %v4345_v61 = vpop.eup %4344  ;;  %v2638_v15 = vadd.f32 %v4335_v28, %v2637_v18  ;;  %v2650_v50 = vmul.f32 %v4343_v5, %v6653_v37  ;;  %v3786_v60 = vmul.f32 -1.442695, %v725_v7  ;;  %v2748_v45 = vand.u32 2147483647, %v6683_v10  ;;  %v677_v37 = vpop.f32.mrf.mxu0 }
 0x27c   : > { %v2725_v35 = vmul.f32 %v4345_v61, %v6655_v31  ;;  %v2750_v41 = vand.u32 2147483648, %v6683_v10  ;;  %v6708_v36 = vadd.f32 1.0, %v4341_v1  ;;  %v3787_v57 = vmul.f32 -1.442695, %v774_v54 }
 0x27d   : > { %v2642_v49 = vsel %vm2641_vm15, %v4335_v28, %v2638_v15  ;;  %v2651_v8 = vsub.f32 1.0, %v2650_v50  ;;  %vm2655_vm3 = vweird.f32 %v4343_v5  ;;  %v2763_v21 = vand.u32 2147483647, %v6685_v11  ;;  %v726_v15 = vpop.f32.mrf.mxu1 }
 0x27e   : > { %v2647_v29 = vsel %vm6670_vm13, %v2646_v0, %v2642_v49  ;;  %v2726_v25 = vsub.f32 1.0, %v2725_v35  ;;  %4350 = vpow2.f32 %v3785_v12  ;;  %vm2730_vm4 = vweird.f32 %v4345_v61  ;;  %vm2656_vm7 = vmor %vm2654_vm11, %vm2655_vm3 }
 0x27f   : > { %3351 = vst [vmem:[%s4783_s25 + $0x2b0] sm:$0xff] %v2647_v29  ;;  %v2652_v16 = vmul.f32 %v4343_v5, %v2651_v8  ;;  %v4347_v43 = vpop.eup %4346  ;;  %vm2744_vm5 = vweird.f32 %v6683_v10  ;;  %4352 = vrcp.f32 %v6708_v36  ;;  %vm6715_vm6 = vcmp.eq.f32.partialorder %v2748_v45, 8.507059e+37  ;;  %vm2731_vm8 = vmor %vm2729_vm12, %vm2730_vm4 }
 0x280   : > { %v2727_v62 = vmul.f32 %v4345_v61, %v2726_v25  ;;  %v4349_v48 = vpop.eup %4348  ;;  %v2740_v27 = vmul.f32 %v4347_v43, %v6683_v10  ;;  %v2751_v30 = vor.u32 1.1754944e-38, %v2750_v41  ;;  %v823_v20 = vadd.f32 %v822_v14, %v5845_v38  ;;  %v775_v41 = vpop.f32.mrf.mxu2 }
 0x281   : > { %v2653_v40 = vadd.f32 %v4343_v5, %v2652_v16  ;;  %v2755_v39 = vmul.f32 %v4349_v48, %v6685_v11  ;;  %vm2759_vm0 = vweird.f32 %v6685_v11  ;;  %v2765_v28 = vand.u32 2147483648, %v6685_v11  ;;  %v824_v14 = vpop.f32.mrf.mxu3 }
 0x282   : > { %v2728_v19 = vadd.f32 %v4345_v61, %v2727_v62  ;;  %v2741_v58 = vsub.f32 1.0, %v2740_v27  ;;  %vm6728_vm9 = vcmp.eq.f32.partialorder %v2763_v21, 8.507059e+37  ;;  %4354 = vpow2.f32 %v3786_v60 }
 0x283   : > { %v2657_v24 = vsel %vm2656_vm7, %v4343_v5, %v2653_v40  ;;  %vm2745_vm13 = vweird.f32 %v4347_v43  ;;  %v2756_v63 = vsub.f32 1.0, %v2755_v39  ;;  %4356 = vpow2.f32 %v3787_v57 }
 0x284   : > { %v2662_v46 = vsel %vm6692_vm14, %v2661_v44, %v2657_v24  ;;  %v2732_v59 = vsel %vm2731_vm8, %v4345_v61, %v2728_v19  ;;  %v4351_v32 = vpop.eup %4350  ;;  %v2742_v56 = vmul.f32 %v4347_v43, %v2741_v58  ;;  %v3788_v2 = vmul.f32 -1.442695, %v823_v20  ;;  %vm2746_vm11 = vmor %vm2744_vm5, %vm2745_vm13 }
 0x285   : > { %3352 = vst.msk [vmem:[%s4783_s25 + $0x2b8] sm:$0xff] %vm3271_vm1, %v2662_v46  ;;  %v2737_v31 = vsel %vm6700_vm2, %v2736_v23, %v2732_v59  ;;  %v4353_v42 = vpop.eup %4352  ;;  %v2757_v55 = vmul.f32 %v4349_v48, %v2756_v63  ;;  %vm2760_vm10 = vweird.f32 %v4349_v48  ;;  %v6739_v22 = vadd.f32 1.0, %v4351_v32 }
 0x286   : > { %3357 = vst [vmem:[%s4783_s25 + $0x2e0] sm:$0xff] %v2737_v31  ;;  %v678_v51 = vadd.f32 %v677_v37, %v5822_v52  ;;  %v2743_v33 = vadd.f32 %v4347_v43, %v2742_v56  ;;  %v2766_v26 = vor.u32 1.1754944e-38, %v2765_v28  ;;  %v2770_v47 = vmul.f32 %v4353_v42, %v6708_v36  ;;  %vm2761_vm12 = vmor %vm2759_vm0, %vm2760_vm10 }
 0x287   : > { %4358 = vpow2.f32 %v3788_v2  ;;  %v2758_v7 = vadd.f32 %v4349_v48, %v2757_v55  ;;  %v2778_v6 = vand.u32 2147483647, %v6708_v36  ;;  %v2780_v13 = vand.u32 2147483648, %v6708_v36  ;;  %v680_v55 = vpop.f32.mrf.mxu0 }
 0x288   : > { %4360 = vrcp.f32 %v6739_v22  ;;  %v4355_v1 = vpop.eup %4354  ;;  %v2747_v18 = vsel %vm2746_vm11, %v4347_v43, %v2743_v33  ;;  %v2771_v0 = vsub.f32 1.0, %v2770_v47  ;;  %vm2775_vm14 = vweird.f32 %v4353_v42 }
 0x289   : > { %v3793_v54 = vmul.f32 -1.442695, %v678_v51  ;;  %v2752_v10 = vsel %vm6715_vm6, %v2751_v30, %v2747_v18  ;;  %v2762_v5 = vsel %vm2761_vm12, %v4349_v48, %v2758_v7  ;;  %v2853_v44 = vand.u32 2147483647, %v6739_v22  ;;  %v4357_v50 = vpop.eup %4356  ;;  %v729_v51 = vpop.f32.mrf.mxu1 }
 0x28a   : > { %v6754_v61 = vadd.f32 1.0, %v4355_v1  ;;  %3358 = vst [vmem:[%s4783_s25 + $0x2e8] sm:$0xff] %v2752_v10  ;;  %v2767_v4 = vsel %vm6728_vm9, %v2766_v26, %v2762_v5  ;;  %v2772_v11 = vmul.f32 %v4353_v42, %v2771_v0  ;;  %v2855_v12 = vand.u32 2147483648, %v6739_v22  ;;  %v778_v0 = vpop.f32.mrf.mxu2 }
 0x28b   : > { %4362 = vpow2.f32 %v3793_v54  ;;  %3359 = vst [vmem:[%s4783_s25 + $0x2f0] sm:$0xff] %v2767_v4  ;;  %vm2774_vm15 = vweird.f32 %v6708_v36  ;;  %v6763_v23 = vadd.f32 1.0, %v4357_v50  ;;  %v727_v60 = vadd.f32 %v726_v15, %v5830_v3  ;;  %v827_v36 = vpop.f32.mrf.mxu3 }
 0x28c   : > { %4364 = vrcp.f32 %v6754_v61  ;;  %v2773_v53 = vadd.f32 %v4353_v42, %v2772_v11  ;;  %vm2776_vm2 = vmor %vm2774_vm15, %vm2775_vm14  ;;  %vm2779_vm3 = vcmp.eq.f32.partialorder %v2778_v6, 8.507059e+37  ;;  %v2781_v8 = vor.u32 1.1754944e-38, %v2780_v13 }
 0x28d   : > { %v4359_v35 = vpop.eup %4358  ;;  %vm2849_vm4 = vweird.f32 %v6739_v22  ;;  %vm6771_vm5 = vcmp.eq.f32.partialorder %v2853_v44, 8.507059e+37  ;;  %v2856_v57 = vor.u32 1.1754944e-38, %v2855_v12  ;;  %4366 = vrcp.f32 %v6763_v23 }
 0x28e   : > { %v4361_v49 = vpop.eup %4360  ;;  %v6768_v45 = vadd.f32 1.0, %v4359_v35  ;;  %v2777_v29 = vsel %vm2776_vm2, %v4353_v42, %v2773_v53  ;;  %vm2864_vm6 = vweird.f32 %v6754_v61  ;;  %v2868_v21 = vand.u32 2147483647, %v6754_v61 }
 0x28f   : > { %v2845_v25 = vmul.f32 %v4361_v49, %v6739_v22  ;;  %v2782_v16 = vsel %vm2779_vm3, %v2781_v8, %v2777_v29  ;;  %v2870_v43 = vand.u32 2147483648, %v6754_v61  ;;  %v3794_v40 = vmul.f32 -1.442695, %v727_v60  ;;  %v682_v56 = vpop.f32.mrf.mxu0 }
 0x290   : > { %3360 = vst.msk [vmem:[%s4783_s25 + $0x2f8] sm:$0xff] %vm3271_vm1, %v2782_v16  ;;  %4368 = vrcp.f32 %v6768_v45  ;;  %v776_v27 = vadd.f32 %v775_v41, %v5843_v9  ;;  %v2883_v30 = vand.u32 2147483647, %v6763_v23  ;;  %v2885_v20 = vand.u32 2147483648, %v6763_v23 }
 0x291   : > { %v4363_v62 = vpop.eup %4362  ;;  %v2846_v48 = vsub.f32 1.0, %v2845_v25  ;;  %v825_v39 = vadd.f32 %v824_v14, %v5845_v38  ;;  %vm2850_vm7 = vweird.f32 %v4361_v49  ;;  %v2900_v58 = vand.u32 2147483648, %v6768_v45 }
 0x292   : > { %v4365_v17 = vpop.eup %4364  ;;  %v6785_v19 = vadd.f32 1.0, %v4363_v62  ;;  %vm6790_vm0 = vcmp.eq.f32.partialorder %v2868_v21, 8.507059e+37  ;;  %v2871_v37 = vor.u32 1.1754944e-38, %v2870_v43  ;;  %v2898_v46 = vand.u32 2147483647, %v6768_v45  ;;  %vm2851_vm9 = vmor %vm2849_vm4, %vm2850_vm7 }
 0x293   : > { %v2847_v28 = vmul.f32 %v4361_v49, %v2846_v48  ;;  %v2860_v24 = vmul.f32 %v4365_v17, %v6754_v61  ;;  %v4367_v59 = vpop.eup %4366  ;;  %vm2879_vm8 = vweird.f32 %v6763_v23  ;;  %vm2865_vm13 = vweird.f32 %v4365_v17 }
 0x294   : > { %4370 = vrcp.f32 %v6785_v19  ;;  %v2875_v31 = vmul.f32 %v4367_v59, %v6763_v23  ;;  %vm6800_vm10 = vcmp.eq.f32.partialorder %v2883_v30, 8.507059e+37  ;;  %v2886_v2 = vor.u32 1.1754944e-38, %v2885_v20  ;;  %vm2866_vm15 = vmor %vm2864_vm6, %vm2865_vm13 }
 0x295   : > { %v2848_v63 = vadd.f32 %v4361_v49, %v2847_v28  ;;  %v2861_v32 = vsub.f32 1.0, %v2860_v24  ;;  %4372 = vpow2.f32 %v3794_v40  ;;  %vm2894_vm11 = vweird.f32 %v6768_v45 }
 0x296   : > { %v3795_v42 = vmul.f32 -1.442695, %v776_v27  ;;  %v4369_v33 = vpop.eup %4368  ;;  %v2901_v7 = vor.u32 1.1754944e-38, %v2900_v58  ;;  %v3796_v22 = vmul.f32 -1.442695, %v825_v39  ;;  %v2876_v13 = vsub.f32 1.0, %v2875_v31 }
 0x297   : > { %v2852_v26 = vsel %vm2851_vm9, %v4361_v49, %v2848_v63  ;;  %v2862_v47 = vmul.f32 %v4365_v17, %v2861_v32  ;;  %vm2880_vm12 = vweird.f32 %v4367_v59  ;;  %v2890_v1 = vmul.f32 %v4369_v33, %v6768_v45 }
 0x298   : > { %v2857_v6 = vsel %vm6771_vm5, %v2856_v57, %v2852_v26  ;;  %vm6808_vm14 = vcmp.eq.f32.partialorder %v2898_v46, 8.507059e+37  ;;  %4374 = vpow2.f32 %v3795_v42  ;;  %v681_v10 = vadd.f32 %v680_v55, %v5822_v52  ;;  %vm2881_vm3 = vmor %vm2879_vm8, %vm2880_vm12 }
 0x299   : > { %3365 = vst [vmem:[%s4783_s25 + $0x320] sm:$0xff] %v2857_v6  ;;  %v2863_v54 = vadd.f32 %v4365_v17, %v2862_v47  ;;  %v730_v5 = vadd.f32 %v729_v51, %v5830_v3  ;;  %v2877_v15 = vmul.f32 %v4367_v59, %v2876_v13  ;;  %v2891_v50 = vsub.f32 1.0, %v2890_v1 }
 0x29a   : > { %v4371_v44 = vpop.eup %4370  ;;  %vm2895_vm2 = vweird.f32 %v4369_v33  ;;  %4376 = vpow2.f32 %v3796_v22  ;;  %v3801_v35 = vmul.f32 -1.442695, %v681_v10  ;;  %v779_v53 = vadd.f32 %v778_v0, %v5843_v9 }
 0x29b   : > { %v4373_v4 = vpop.eup %4372  ;;  %v2867_v11 = vsel %vm2866_vm15, %v4365_v17, %v2863_v54  ;;  %v2965_v12 = vmul.f32 %v4371_v44, %v6785_v19  ;;  %v2878_v49 = vadd.f32 %v4367_v59, %v2877_v15  ;;  %v2892_v8 = vmul.f32 %v4369_v33, %v2891_v50  ;;  %vm2896_vm4 = vmor %vm2894_vm11, %vm2895_vm2 }
 0x29c   : > { %v2872_v60 = vsel %vm6790_vm0, %v2871_v37, %v2867_v11  ;;  %v6822_v41 = vadd.f32 1.0, %v4373_v4  ;;  %v2973_v29 = vand.u32 2147483647, %v6785_v19  ;;  %4378 = vpow2.f32 %v3801_v35 }
 0x29d   : > { %3366 = vst [vmem:[%s4783_s25 + $0x328] sm:$0xff] %v2872_v60  ;;  %v2966_v61 = vsub.f32 1.0, %v2965_v12  ;;  %v3802_v25 = vmul.f32 -1.442695, %v730_v5  ;;  %v2882_v57 = vsel %vm2881_vm3, %v4367_v59, %v2878_v49  ;;  %v2893_v14 = vadd.f32 %v4369_v33, %v2892_v8 }
 0x29e   : > { %v2975_v16 = vand.u32 2147483648, %v6785_v19  ;;  %4380 = vrcp.f32 %v6822_v41  ;;  %v4375_v21 = vpop.eup %4374  ;;  %v2887_v43 = vsel %vm6800_vm10, %v2886_v2, %v2882_v57  ;;  %vm2970_vm5 = vweird.f32 %v4371_v44 }
 0x29f   : > { %v2967_v23 = vmul.f32 %v4371_v44, %v2966_v61  ;;  %v3803_v62 = vmul.f32 -1.442695, %v779_v53  ;;  %3367 = vst [vmem:[%s4783_s25 + $0x330] sm:$0xff] %v2887_v43  ;;  %v2897_v40 = vsel %vm2896_vm4, %v4369_v33, %v2893_v14  ;;  %v6837_v27 = vadd.f32 1.0, %v4375_v21 }
 0x2a0   : > { %v4377_v48 = vpop.eup %4376  ;;  %4382 = vpow2.f32 %v3802_v25  ;;  %v828_v17 = vadd.f32 %v827_v36, %v5845_v38  ;;  %v2902_v30 = vsel %vm6808_vm14, %v2901_v7, %v2897_v40  ;;  %vm2969_vm6 = vweird.f32 %v6785_v19 }
 0x2a1   : > { %v2968_v20 = vadd.f32 %v4371_v44, %v2967_v23  ;;  %3368 = vst.msk [vmem:[%s4783_s25 + $0x338] sm:$0xff] %vm3271_vm1, %v2902_v30  ;;  %vm2971_vm7 = vmor %vm2969_vm6, %vm2970_vm5  ;;  %vm2974_vm0 = vcmp.eq.f32.partialorder %v2973_v29, 8.507059e+37  ;;  %v2976_v45 = vor.u32 1.1754944e-38, %v2975_v16  ;;  %4384 = vrcp.f32 %v6837_v27 }
 0x2a2   : > { %v4379_v39 = vpop.eup %4378  ;;  %v2988_v24 = vand.u32 2147483647, %v6822_v41  ;;  %v6847_v58 = vadd.f32 1.0, %v4377_v48  ;;  %4386 = vpow2.f32 %v3803_v62  ;;  %v2990_v46 = vand.u32 2147483648, %v6822_v41  ;;  %v731_v62 = vpop.f32.mrf.mxu1 }
 0x2a3   : > { %v2972_v28 = vsel %vm2971_vm7, %v4371_v44, %v2968_v20  ;;  %v6850_v19 = vadd.f32 1.0, %v4379_v39  ;;  %v3804_v59 = vmul.f32 -1.442695, %v828_v17  ;;  %v3003_v32 = vand.u32 2147483647, %v6837_v27 }
 0x2a4   : > { %v4381_v34 = vpop.eup %4380  ;;  %v2977_v37 = vsel %vm2974_vm0, %v2976_v45, %v2972_v28  ;;  %v3005_v31 = vand.u32 2147483648, %v6837_v27  ;;  %4388 = vrcp.f32 %v6847_v58  ;;  %vm2984_vm8 = vweird.f32 %v6822_v41 }
 0x2a5   : > { %3373 = vst [vmem:[%s4783_s25 + $0x360] sm:$0xff] %v2977_v37  ;;  %v2980_v63 = vmul.f32 %v4381_v34, %v6822_v41  ;;  %4390 = vrcp.f32 %v6850_v19  ;;  %vm6859_vm9 = vcmp.eq.f32.partialorder %v2988_v24, 8.507059e+37  ;;  %v2991_v26 = vor.u32 1.1754944e-38, %v2990_v46 }
 0x2a6   : > { %v4383_v2 = vpop.eup %4382  ;;  %vm2999_vm13 = vweird.f32 %v6837_v27  ;;  %4392 = vpow2.f32 %v3804_v59  ;;  %v683_v47 = vadd.f32 %v682_v56, %v5822_v52  ;;  %vm2985_vm10 = vweird.f32 %v4381_v34  ;;  %v780_v59 = vpop.f32.mrf.mxu2 }
 0x2a7   : > { %v2981_v42 = vsub.f32 1.0, %v2980_v63  ;;  %v6863_v51 = vadd.f32 1.0, %v4383_v2  ;;  %v4385_v33 = vpop.eup %4384  ;;  %vm6868_vm11 = vcmp.eq.f32.partialorder %v3003_v32, 8.507059e+37  ;;  %v3006_v1 = vor.u32 1.1754944e-38, %v3005_v31  ;;  %vm2986_vm14 = vmor %vm2984_vm8, %vm2985_vm10  ;;  %v829_v63 = vpop.f32.mrf.mxu3 }
 0x2a8   : > { %v4387_v7 = vpop.eup %4386  ;;  %v2995_v6 = vmul.f32 %v4385_v33, %v6837_v27  ;;  %vm3014_vm12 = vweird.f32 %v6847_v58  ;;  %v3018_v18 = vand.u32 2147483647, %v6847_v58  ;;  %v3020_v0 = vand.u32 2147483648, %v6847_v58 }
 0x2a9   : > { %v2982_v22 = vmul.f32 %v4381_v34, %v2981_v42  ;;  %4394 = vrcp.f32 %v6863_v51  ;;  %v3093_v5 = vand.u32 2147483647, %v6850_v19  ;;  %v6877_v44 = vadd.f32 1.0, %v4387_v7 }
 0x2aa   : > { %v4389_v54 = vpop.eup %4388  ;;  %v2996_v10 = vsub.f32 1.0, %v2995_v6  ;;  %vm3089_vm15 = vweird.f32 %v6850_v19  ;;  %v3095_v4 = vand.u32 2147483648, %v6850_v19  ;;  %v3809_v11 = vmul.f32 -1.442695, %v683_v47 }
 0x2ab   : > { %v2983_v52 = vadd.f32 %v4381_v34, %v2982_v22  ;;  %v4391_v15 = vpop.eup %4390  ;;  %v3010_v50 = vmul.f32 %v4389_v54, %v6847_v58  ;;  %vm3000_vm2 = vweird.f32 %v4385_v33  ;;  %vm6887_vm3 = vcmp.eq.f32.partialorder %v3018_v18, 8.507059e+37 }
 0x2ac   : > { %v2997_v35 = vmul.f32 %v4385_v33, %v2996_v10  ;;  %v3085_v53 = vmul.f32 %v4391_v15, %v6850_v19  ;;  %v4393_v60 = vpop.eup %4392  ;;  %4396 = vrcp.f32 %v6877_v44  ;;  %v3021_v29 = vor.u32 1.1754944e-38, %v3020_v0  ;;  %vm3001_vm5 = vmor %vm2999_vm13, %vm3000_vm2 }
 0x2ad   : > { %v2987_v12 = vsel %vm2986_vm14, %v4381_v34, %v2983_v52  ;;  %v3011_v8 = vsub.f32 1.0, %v3010_v50  ;;  %vm6893_vm4 = vcmp.eq.f32.partialorder %v3093_v5, 8.507059e+37  ;;  %vm3015_vm6 = vweird.f32 %v4389_v54 }
 0x2ae   : > { %v2992_v49 = vsel %vm6859_vm9, %v2991_v26, %v2987_v12  ;;  %v2998_v61 = vadd.f32 %v4385_v33, %v2997_v35  ;;  %v3086_v25 = vsub.f32 1.0, %v3085_v53  ;;  %v6899_v16 = vadd.f32 1.0, %v4393_v60  ;;  %vm3016_vm0 = vmor %vm3014_vm12, %vm3015_vm6 }
 0x2af   : > { %3374 = vst [vmem:[%s4783_s25 + $0x368] sm:$0xff] %v2992_v49  ;;  %v4395_v57 = vpop.eup %4394  ;;  %v3012_v14 = vmul.f32 %v4389_v54, %v3011_v8  ;;  %4398 = vpow2.f32 %v3809_v11  ;;  %vm3090_vm7 = vweird.f32 %v4391_v15  ;;  %v3108_v17 = vand.u32 2147483647, %v6863_v51 }
 0x2b0   : > { %v3002_v21 = vsel %vm3001_vm5, %v4385_v33, %v2998_v61  ;;  %v3087_v43 = vmul.f32 %v4391_v15, %v3086_v25  ;;  %v3100_v23 = vmul.f32 %v4395_v57, %v6863_v51  ;;  %v3110_v27 = vand.u32 2147483648, %v6863_v51  ;;  %vm3091_vm8 = vmor %vm3089_vm15, %vm3090_vm7 }
 0x2b1   : > { %v3007_v48 = vsel %vm6868_vm11, %v3006_v1, %v3002_v21  ;;  %v3013_v40 = vadd.f32 %v4389_v54, %v3012_v14  ;;  %v3096_v20 = vor.u32 1.1754944e-38, %v3095_v4  ;;  %4400 = vrcp.f32 %v6899_v16 }
 0x2b2   : > { %3375 = vst [vmem:[%s4783_s25 + $0x370] sm:$0xff] %v3007_v48  ;;  %v3088_v30 = vadd.f32 %v4391_v15, %v3087_v43  ;;  %v3101_v45 = vsub.f32 1.0, %v3100_v23  ;;  %v4397_v39 = vpop.eup %4396  ;;  %vm3104_vm9 = vweird.f32 %v6863_v51  ;;  %vm3105_vm13 = vweird.f32 %v4395_v57 }
 0x2b3   : > { %v3017_v28 = vsel %vm3016_vm0, %v4389_v54, %v3013_v40  ;;  %v732_v24 = vadd.f32 %v731_v62, %v5830_v3  ;;  %v3115_v46 = vmul.f32 %v4397_v39, %v6877_v44  ;;  %vm6922_vm10 = vcmp.eq.f32.partialorder %v3108_v17, 8.507059e+37  ;;  %vm3106_vm11 = vmor %vm3104_vm9, %vm3105_vm13 }
 0x2b4   : > { %v3022_v58 = vsel %vm6887_vm3, %v3021_v29, %v3017_v28  ;;  %v3092_v34 = vsel %vm3091_vm8, %v4391_v15, %v3088_v30  ;;  %v3102_v37 = vmul.f32 %v4395_v57, %v3101_v45  ;;  %v3111_v3 = vor.u32 1.1754944e-38, %v3110_v27 }
 0x2b5   : > { %v4399_v32 = vpop.eup %4398  ;;  %3376 = vst.msk [vmem:[%s4783_s25 + $0x378] sm:$0xff] %vm3271_vm1, %v3022_v58  ;;  %v3097_v19 = vsel %vm6893_vm4, %v3096_v20, %v3092_v34  ;;  %v3116_v2 = vsub.f32 1.0, %v3115_v46  ;;  %v3810_v55 = vmul.f32 -1.442695, %v732_v24  ;;  %v3123_v33 = vand.u32 2147483647, %v6877_v44 }
 0x2b6   : > { %3381 = vst [vmem:[%s4783_s25 + $0x3a0] sm:$0xff] %v3097_v19  ;;  %v3103_v56 = vadd.f32 %v4395_v57, %v3102_v37  ;;  %v1340_v42 = vadd.f32 1.0, %v4399_v32  ;;  %v3125_v26 = vand.u32 2147483648, %v6877_v44  ;;  %v781_v47 = vadd.f32 %v780_v59, %v5843_v9 }
 0x2b7   : > { %v830_v7 = vadd.f32 %v829_v63, %v5845_v38  ;;  %v4401_v22 = vpop.eup %4400  ;;  %v3117_v13 = vmul.f32 %v4397_v39, %v3116_v2  ;;  %vm3120_vm12 = vweird.f32 %v4397_v39  ;;  %vm3119_vm14 = vweird.f32 %v6877_v44 }
 0x2b8   : > { %v3107_v6 = vsel %vm3106_vm11, %v4395_v57, %v3103_v56  ;;  %4402 = vrcp.f32 %v1340_v42  ;;  %v3130_v18 = vmul.f32 %v4401_v22, %v6899_v16  ;;  %v3811_v0 = vmul.f32 -1.442695, %v781_v47  ;;  %vm3121_vm15 = vmor %vm3119_vm14, %vm3120_vm12 }
 0x2b9   : > { %v3112_v1 = vsel %vm6922_vm10, %v3111_v3, %v3107_v6  ;;  %v3118_v51 = vadd.f32 %v4397_v39, %v3117_v13  ;;  %4404 = vpow2.f32 %v3810_v55  ;;  %vm3124_vm2 = vcmp.eq.f32.partialorder %v3123_v33, 8.507059e+37 }
 0x2ba   : > { %3382 = vst [vmem:[%s4783_s25 + $0x3a8] sm:$0xff] %v3112_v1  ;;  %v3126_v9 = vor.u32 1.1754944e-38, %v3125_v26  ;;  %v3131_v38 = vsub.f32 1.0, %v3130_v18  ;;  %v3812_v54 = vmul.f32 -1.442695, %v830_v7  ;;  %v3140_v5 = vand.u32 2147483648, %v6899_v16 }
 0x2bb   : > { %v3122_v52 = vsel %vm3121_vm15, %v4397_v39, %v3118_v51  ;;  %v3138_v10 = vand.u32 2147483647, %v6899_v16  ;;  %4406 = vpow2.f32 %v3811_v0  ;;  %vm3135_vm3 = vweird.f32 %v4401_v22 }
 0x2bc   : > { %v3127_v15 = vsel %vm3124_vm2, %v3126_v9, %v3122_v52  ;;  %v3132_v50 = vmul.f32 %v4401_v22, %v3131_v38  ;;  %4408 = vpow2.f32 %v3812_v54  ;;  %vm3134_vm4 = vweird.f32 %v6899_v16 }
 0x2bd   : > { %3383 = vst [vmem:[%s4783_s25 + $0x3b0] sm:$0xff] %v3127_v15  ;;  %vm3136_vm5 = vmor %vm3134_vm4, %vm3135_vm3  ;;  %v3141_v35 = vor.u32 1.1754944e-38, %v3140_v5  ;;  %vm3139_vm6 = vcmp.eq.f32.partialorder %v3138_v10, 8.507059e+37  ;;  %v3215_v61 = vand.u32 2147483648, %v1340_v42  ;;  %v3213_v36 = vand.u32 2147483647, %v1340_v42 }
 0x2be   : > { %v4403_v4 = vpop.eup %4402  ;;  %v3133_v44 = vadd.f32 %v4401_v22, %v3132_v50  ;;  %vm3209_vm0 = vweird.f32 %v1340_v42 }
 0x2bf   : > { %v3205_v11 = vmul.f32 %v4403_v4, %v1340_v42  ;;  %v4405_v12 = vpop.eup %4404  ;;  %vm3210_vm7 = vweird.f32 %v4403_v4  ;;  %v3216_v21 = vor.u32 1.1754944e-38, %v3215_v61  ;;  %vm3214_vm9 = vcmp.eq.f32.partialorder %v3213_v36, 8.507059e+37 }
 0x2c0   : > { %v3137_v53 = vsel %vm3136_vm5, %v4401_v22, %v3133_v44  ;;  %v1341_v49 = vadd.f32 1.0, %v4405_v12  ;;  %vm3211_vm8 = vmor %vm3209_vm0, %vm3210_vm7 }
 0x2c1   : > { %v3206_v60 = vsub.f32 1.0, %v3205_v11  ;;  %v4407_v8 = vpop.eup %4406  ;;  %v3142_v41 = vsel %vm3139_vm6, %v3141_v35, %v3137_v53 }
 0x2c2   : > { %v4409_v29 = vpop.eup %4408  ;;  %3384 = vst.msk [vmem:[%s4783_s25 + $0x3b8] sm:$0xff] %vm3271_vm1, %v3142_v41  ;;  %4410 = vrcp.f32 %v1341_v49  ;;  %v1342_v57 = vadd.f32 1.0, %v4407_v8  ;;  %v3228_v40 = vand.u32 2147483647, %v1341_v49  ;;  %v3230_v30 = vand.u32 2147483648, %v1341_v49 }
 0x2c3   : > { %v3207_v25 = vmul.f32 %v4403_v4, %v3206_v60  ;;  %v1343_v14 = vadd.f32 1.0, %v4409_v29  ;;  %vm3224_vm10 = vweird.f32 %v1341_v49 }
 0x2c4   : > { %4412 = vrcp.f32 %v1342_v57  ;;  %vm3229_vm11 = vcmp.eq.f32.partialorder %v3228_v40, 8.507059e+37  ;;  %v3231_v34 = vor.u32 1.1754944e-38, %v3230_v30  ;;  %v3245_v37 = vand.u32 2147483648, %v1342_v57 }
 0x2c5   : > { %v3208_v16 = vadd.f32 %v4403_v4, %v3207_v25  ;;  %4414 = vrcp.f32 %v1343_v14  ;;  %v3243_v63 = vand.u32 2147483647, %v1342_v57  ;;  %v3260_v32 = vand.u32 2147483648, %v1343_v14 }
 0x2c6   : > { %v3258_v3 = vand.u32 2147483647, %v1343_v14  ;;  %vm3239_vm2 = vweird.f32 %v1342_v57  ;;  %v3246_v42 = vor.u32 1.1754944e-38, %v3245_v37  ;;  %vm3254_vm4 = vweird.f32 %v1343_v14 }
 0x2c7   : > { %v3212_v43 = vsel %vm3211_vm8, %v4403_v4, %v3208_v16  ;;  %vm3244_vm5 = vcmp.eq.f32.partialorder %v3243_v63, 8.507059e+37  ;;  %v3261_v26 = vor.u32 1.1754944e-38, %v3260_v32 }
 0x2c8   : > { %v3217_v23 = vsel %vm3214_vm9, %v3216_v21, %v3212_v43  ;;  %v4411_v62 = vpop.eup %4410  ;;  %vm3259_vm7 = vcmp.eq.f32.partialorder %v3258_v3, 8.507059e+37 }
 0x2c9   : > { %3389 = vst [vmem:[%s4783_s25 + $0x3e0] sm:$0xff] %v3217_v23  ;;  %v3220_v48 = vmul.f32 %v4411_v62, %v1341_v49  ;;  %vm3225_vm13 = vweird.f32 %v4411_v62 }
 0x2ca   : > { %v4413_v17 = vpop.eup %4412  ;;  %vm3226_vm12 = vmor %vm3224_vm10, %vm3225_vm13 }
 0x2cb   : > { %v3221_v27 = vsub.f32 1.0, %v3220_v48  ;;  %v4415_v20 = vpop.eup %4414  ;;  %v3235_v45 = vmul.f32 %v4413_v17, %v1342_v57  ;;  %vm3240_vm14 = vweird.f32 %v4413_v17 }
 0x2cc   : > { %v3250_v28 = vmul.f32 %v4415_v20, %v1343_v14  ;;  %vm3255_vm15 = vweird.f32 %v4415_v20  ;;  %vm3241_vm3 = vmor %vm3239_vm2, %vm3240_vm14 }
 0x2cd   : > { %v3222_v39 = vmul.f32 %v4411_v62, %v3221_v27  ;;  %v3236_v24 = vsub.f32 1.0, %v3235_v45  ;;  %vm3256_vm6 = vmor %vm3254_vm4, %vm3255_vm15 }
 0x2ce   : > { %v3251_v46 = vsub.f32 1.0, %v3250_v28 }
 0x2cf   : > { %v3223_v58 = vadd.f32 %v4411_v62, %v3222_v39  ;;  %v3237_v59 = vmul.f32 %v4413_v17, %v3236_v24 }
 0x2d0   : > { %v3252_v31 = vmul.f32 %v4415_v20, %v3251_v46 }
 0x2d1   : > { %v3227_v19 = vsel %vm3226_vm12, %v4411_v62, %v3223_v58  ;;  %v3238_v2 = vadd.f32 %v4413_v17, %v3237_v59 }
 0x2d2   : > { %v3232_v56 = vsel %vm3229_vm11, %v3231_v34, %v3227_v19  ;;  %v3253_v55 = vadd.f32 %v4415_v20, %v3252_v31 }
 0x2d3   : > { %3390 = vst [vmem:[%s4783_s25 + $0x3e8] sm:$0xff] %v3232_v56  ;;  %v3242_v33 = vsel %vm3241_vm3, %v4413_v17, %v3238_v2 }
 0x2d4   : > { %v3247_v47 = vsel %vm3244_vm5, %v3246_v42, %v3242_v33  ;;  %v3257_v7 = vsel %vm3256_vm6, %v4415_v20, %v3253_v55 }
 0x2d5   : > { %3391 = vst [vmem:[%s4783_s25 + $0x3f0] sm:$0xff] %v3247_v47  ;;  %v3262_v22 = vsel %vm3259_vm7, %v3261_v26, %v3257_v7 }
 0x2d6   : > { %3392 = vst.msk [vmem:[%s4783_s25 + $0x3f8] sm:$0xff] %vm3271_vm1, %v3262_v22 }
 0x2d7 PF: > { %s15_s16 = sadd.s32 1, %s4525_s16   ;;  %s7181_s12 = smov %s4517_s14 }
 0x2d8   : > { %p12_p10 = scmp.ge.s32.totalorder %s15_s16, 8   ;;  %s7182_s13 = smov %s4521_s15 }
 0x2d9   : > { %s7183_s14 = smov %s7186_s18  ;;  %s7184_s15 = smov %s7190_s19 }
 0x2da   :  { %14 = sbr.rel (!%p12_p10) target bundleno = 4 (0x4), region = 71 }
 0x2df   :  { %3425 = vsyncpa [#allocation3], 1 }
 0x2e0   :  { %3427 = vsyncpa [#allocation3 + $0x1], 1 }
 0x2e1   :  { %3428 = vsyncpa [#allocation5], 1 }

</bundles_post_ra>
